<compile_context>
chip_gen: v5e
topology: v5e:2x2
jax: 0.10.0
libtpu: 0.0.40
codegen_flags: <defaults>
</compile_context>

<pallas_src>
import functools

import jax
import jax.numpy as jnp
from jax import lax
from jax.experimental import pallas as pl
from jax.experimental.pallas import tpu as pltpu

# ---- model hyperparameters (tie_weights=True forces V == n_input == H == E) ----
VOCAB = 128        # vocab_size
EMBED = 128        # embedding_dim
N_INPUT = 128      # n_input (LSTM input size)
HIDDEN = 128       # n_hidden_units
N_LAYERS = 2       # n_layers
BATCH = 8
SEQ = 8
# dropout: nn.Dropout is identity in eval mode -> modeled as identity here.


def _lstm_decoder_kernel(x_ref, h0_ref, c0_ref,
                         wih_ref, whh_ref, bias_ref,
                         decw_ref, decb_ref,
                         dec_ref, hn_ref, cn_ref,
                         seq_ref, gx_ref,
                         *, n_layers, hidden, seq_len, batch):
    """Multi-layer LSTM recurrence + tied-weight decoder, fully resident in VMEM.

    x_ref    : (T*B, D)  f32   time-major embedded input (row t*B + b)
    h0/c0    : (L, B, H) f32
    wih/whh  : (L, D, 4H) / (L, H, 4H)  bf16, gate order [i, f, o, g]
    bias_ref : (L, 1, 4H) f32  (= b_ih + b_hh, same gate order)
    decw     : (H, V) f32 tied encoder weight (pre-transposed); decb: (1, V) f32
    dec_ref  : (B, V)    decoded output (last timestep, top layer)
    hn/cn    : (L, B, H) final hidden / cell states (aliased onto h0/c0 buffers)
    seq_ref  : (T*B, H)  scratch: current layer's output sequence (next layer input)
    gx_ref   : (T*B, 4H) scratch: hoisted input-projection gates for current layer
    """
    T, B, H = seq_len, batch, hidden

    h_top = None
    for l in range(n_layers):                      # static python loop over layers
        # Hoisted input projection: one 64-row MXU matmul per layer instead of T
        # tiny per-step matmuls; bias folded in here.
        src = x_ref[...] if l == 0 else seq_ref[...]
        wih = wih_ref[l].astype(jnp.float32)       # (D, 4H) bf16 -> f32, once/layer
        whh = whh_ref[l].astype(jnp.float32)       # (H, 4H)
        gx_ref[...] = (jnp.dot(src, wih, preferred_element_type=jnp.float32)
                       + bias_ref[l])

        def step(t, carry):
            h, c = carry
            off = pl.multiple_of(t * B, B)
            gates = gx_ref[pl.ds(off, B), :] + jnp.dot(
                h, whh, preferred_element_type=jnp.float32)       # (B, 4H)
            # gate order [i, f, o, g]: one sigmoid over 3H lanes + one tanh over H.
            ifo = jax.nn.sigmoid(gates[:, :3 * H])
            g = jnp.tanh(gates[:, 3 * H:])
            i, f, o = ifo[:, :H], ifo[:, H:2 * H], ifo[:, 2 * H:]
            c_new = f * c + i * g
            h_new = o * jnp.tanh(c_new)
            seq_ref[pl.ds(off, B), :] = h_new      # layer output = next layer input
            return (h_new, c_new)

        # T is a short fixed trip count: fully unroll for cross-step interleave.
        h_fin, c_fin = lax.fori_loop(0, T, step, (h0_ref[l], c0_ref[l]),
                                     unroll=True)
        hn_ref[l] = h_fin
        cn_ref[l] = c_fin
        h_top = h_fin

    # Decoder on output[:, -1, :] == final hidden state of the top layer.
    dec_ref[...] = (jnp.dot(h_top, decw_ref[...],
                            preferred_element_type=jnp.float32)
                    + decb_ref[...])


def _reorder_gates(w):
    """PyTorch packs LSTM gates as [i, f, g, o]; reorder to [i, f, o, g]."""
    i, f, g, o = jnp.split(w, 4, axis=-1)
    return jnp.concatenate([i, f, o, g], axis=-1)


def embedding_lstm_forward(input_ids, hidden, params):
    """Equivalent of EmbeddingLSTM.forward(input, hidden) in eval mode."""
    enc_w, wih, whh, bih, bhh, dec_w, dec_b = params
    h0, c0 = hidden
    B, T = input_ids.shape
    H = HIDDEN
    V = dec_w.shape[0]
    D = wih.shape[-1]
    assert D == H, "stacked LSTM weights require n_input == n_hidden_units"

    # Glue: embedding gather directly in time-major order (no (B,T,E) transpose on
    # the serial path); eval-mode dropout is identity.
    x_tm = jnp.take(enc_w, input_ids.T, axis=0).reshape(T * B, D)   # (T*B, D) f32

    # Host-side weight prep: transpose for x @ W, reorder gates, fold biases,
    # store LSTM weights as bf16 (halves the weight DMA; f32 math in-kernel).
    wih_t = _reorder_gates(jnp.transpose(wih, (0, 2, 1))).astype(jnp.bfloat16)
    whh_t = _reorder_gates(jnp.transpose(whh, (0, 2, 1))).astype(jnp.bfloat16)
    bias = _reorder_gates(bih + bhh)[:, None, :]                    # (L, 1, 4H) f32

    kernel = functools.partial(_lstm_decoder_kernel, n_layers=N_LAYERS,
                               hidden=H, seq_len=T, batch=B)
    vmem = pl.BlockSpec(memory_space=pltpu.MemorySpace.VMEM)

    decoded, h_n, c_n = pl.pallas_call(
        kernel,
        out_shape=(
            jax.ShapeDtypeStruct((B, V), jnp.float32),
            jax.ShapeDtypeStruct((N_LAYERS, B, H), jnp.float32),
            jax.ShapeDtypeStruct((N_LAYERS, B, H), jnp.float32),
        ),
        in_specs=[vmem] * 8,
        out_specs=(vmem, vmem, vmem),
        scratch_shapes=[pltpu.VMEM((T * B, H), jnp.float32),
                        pltpu.VMEM((T * B, 4 * H), jnp.float32)],
        # Reuse the h0/c0 buffers for h_n/c_n (state carry for repeated decode).
        input_output_aliases={1: 1, 2: 2},
    )(x_tm, h0, c0, wih_t, whh_t, bias, dec_w.T, dec_b[None, :])
    return decoded, (h_n, c_n)


def init_params(key):
    """Deterministic parameter init mirroring the PyTorch module's __init__."""
    keys = jax.random.split(key, 2 + 4 * N_LAYERS)
    initrange = 0.1
    enc_w = jax.random.uniform(keys[0], (VOCAB, EMBED), jnp.float32,
                               -initrange, initrange)
    # tie_weights=True -> decoder.weight is the encoder weight
    dec_w = enc_w
    dec_b = jnp.zeros((N_INPUT,), jnp.float32)

    stdv = 1.0 / jnp.sqrt(HIDDEN)
    wih, whh, bih, bhh = [], [], [], []
    for l in range(N_LAYERS):
        in_sz = N_INPUT if l == 0 else HIDDEN
        k = keys[2 + 4 * l:2 + 4 * (l + 1)]
        wih.append(jax.random.uniform(k[0], (4 * HIDDEN, in_sz), jnp.float32, -stdv, stdv))
        whh.append(jax.random.uniform(k[1], (4 * HIDDEN, HIDDEN), jnp.float32, -stdv, stdv))
        bih.append(jax.random.uniform(k[2], (4 * HIDDEN,), jnp.float32, -stdv, stdv))
        bhh.append(jax.random.uniform(k[3], (4 * HIDDEN,), jnp.float32, -stdv, stdv))
    return (enc_w, jnp.stack(wih), jnp.stack(whh),
            jnp.stack(bih), jnp.stack(bhh), dec_w, dec_b)


def reference_forward(input_ids, hidden, params):
    """Pure-JAX reference of the PyTorch forward (eval mode).

    Emulates the kernel's bf16 weight *storage* by rounding w_ih / w_hh through
    bfloat16 (all math stays f32) so the comparison isolates kernel errors.
    """
    enc_w, wih, whh, bih, bhh, dec_w, dec_b = params
    h0, c0 = hidden
    B, T = input_ids.shape
    H = HIDDEN
    hp = jax.lax.Precision.HIGHEST
    seq = jnp.take(enc_w, input_ids, axis=0)        # (B, T, E)
    hs, cs = [], []
    for l in range(N_LAYERS):
        w_ih = wih[l].astype(jnp.bfloat16).astype(jnp.float32)
        w_hh = whh[l].astype(jnp.bfloat16).astype(jnp.float32)
        h, c = h0[l], c0[l]
        outs = []
        for t in range(T):
            gates = (jnp.dot(seq[:, t], w_ih.T, precision=hp)
                     + jnp.dot(h, w_hh.T, precision=hp) + bih[l] + bhh[l])
            i = jax.nn.sigmoid(gates[:, 0 * H:1 * H])
            f = jax.nn.sigmoid(gates[:, 1 * H:2 * H])
            g = jnp.tanh(gates[:, 2 * H:3 * H])
            o = jax.nn.sigmoid(gates[:, 3 * H:4 * H])
            c = f * c + i * g
            h = o * jnp.tanh(c)
            outs.append(h)
        seq = jnp.stack(outs, axis=1)
        hs.append(h)
        cs.append(c)
    decoded = jnp.dot(seq[:, -1], dec_w.T, precision=hp) + dec_b
    return decoded, (jnp.stack(hs), jnp.stack(cs))


if __name__ == "__main__":
    key = jax.random.PRNGKey(0)
    k_param, k_ids = jax.random.split(key)

    params = init_params(k_param)
    input_ids = jax.random.randint(k_ids, (BATCH, SEQ), 0, VOCAB, dtype=jnp.int32)
    # init_hidden(bsz): zeros of shape (n_layers, bsz, n_hidden_units)
    h0 = jnp.zeros((N_LAYERS, BATCH, HIDDEN), jnp.float32)
    c0 = jnp.zeros((N_LAYERS, BATCH, HIDDEN), jnp.float32)

    decoded, (h_n, c_n) = embedding_lstm_forward(input_ids, (h0, c0), params)
    decoded = jax.block_until_ready(decoded)
    h_n = jax.block_until_ready(h_n)
    c_n = jax.block_until_ready(c_n)

    # Reference uses freshly constructed zero states (h0/c0 buffers may be aliased).
    ref_hidden = (jnp.zeros((N_LAYERS, BATCH, HIDDEN), jnp.float32),
                  jnp.zeros((N_LAYERS, BATCH, HIDDEN), jnp.float32))
    ref_dec, (ref_h, ref_c) = reference_forward(input_ids, ref_hidden, params)

    assert decoded.shape == (BATCH, VOCAB)
    assert h_n.shape == (N_LAYERS, BATCH, HIDDEN)
    assert c_n.shape == (N_LAYERS, BATCH, HIDDEN)
    assert jnp.allclose(decoded, ref_dec, atol=1e-3, rtol=1e-3), "decoded mismatch"
    assert jnp.allclose(h_n, ref_h, atol=1e-3, rtol=1e-3), "h_n mismatch"
    assert jnp.allclose(c_n, ref_c, atol=1e-3, rtol=1e-3), "c_n mismatch"

    print("KERNEL_OK")
</pallas_src>

<mosaic_0001>
module attributes {stable_mosaic.version = 11 : i64} {
  func.func @_lstm_decoder_kernel(%arg0: memref<64x128xf32, #tpu.memory_space<vmem>>, %arg1: memref<2x8x128xf32, #tpu.memory_space<vmem>>, %arg2: memref<2x8x128xf32, #tpu.memory_space<vmem>>, %arg3: memref<2x128x512xbf16, #tpu.memory_space<vmem>>, %arg4: memref<2x128x512xbf16, #tpu.memory_space<vmem>>, %arg5: memref<2x1x512xf32, #tpu.memory_space<vmem>>, %arg6: memref<128x128xf32, #tpu.memory_space<vmem>>, %arg7: memref<1x128xf32, #tpu.memory_space<vmem>>, %arg8: memref<8x128xf32, #tpu.memory_space<vmem>>, %arg9: memref<2x8x128xf32, #tpu.memory_space<vmem>>, %arg10: memref<2x8x128xf32, #tpu.memory_space<vmem>>, %arg11: memref<64x128xf32, #tpu.memory_space<vmem>>, %arg12: memref<64x512xf32, #tpu.memory_space<vmem>>) attributes {dimension_semantics = [], scalar_prefetch = 0 : i64, scratch_operands = 2 : i64, tpu.core_type = #tpu.core_type<tc>} {
    %c0 = arith.constant 0 : index
    %c0_0 = arith.constant 0 : index
    %0 = vector.load %arg0[%c0, %c0_0] : memref<64x128xf32, #tpu.memory_space<vmem>>, vector<64x128xf32>
    %c0_1 = arith.constant 0 : index
    %c0_2 = arith.constant 0 : index
    %c0_3 = arith.constant 0 : index
    %1 = vector.load %arg3[%c0_1, %c0_2, %c0_3] : memref<2x128x512xbf16, #tpu.memory_space<vmem>>, vector<1x128x512xbf16>
    %2 = vector.shape_cast %1 : vector<1x128x512xbf16> to vector<128x512xbf16>
    %3 = arith.extf %2 : vector<128x512xbf16> to vector<128x512xf32>
    %c0_4 = arith.constant 0 : index
    %c0_5 = arith.constant 0 : index
    %c0_6 = arith.constant 0 : index
    %4 = vector.load %arg4[%c0_4, %c0_5, %c0_6] : memref<2x128x512xbf16, #tpu.memory_space<vmem>>, vector<1x128x512xbf16>
    %5 = vector.shape_cast %4 : vector<1x128x512xbf16> to vector<128x512xbf16>
    %6 = arith.extf %5 : vector<128x512xbf16> to vector<128x512xf32>
    %cst = arith.constant dense<0.000000e+00> : vector<64x512xf32>
    %7 = tpu.matmul %0, %3, %cst {dimension_numbers = #tpu.dot_dimension_numbers<[1], [0], [0], [1], [0, 0, 1, 1], [], []>} : vector<64x128xf32>, vector<128x512xf32>, vector<64x512xf32> -> vector<64x512xf32>
    %c0_7 = arith.constant 0 : index
    %c0_8 = arith.constant 0 : index
    %c0_9 = arith.constant 0 : index
    %8 = vector.load %arg5[%c0_7, %c0_8, %c0_9] : memref<2x1x512xf32, #tpu.memory_space<vmem>>, vector<1x1x512xf32>
    %9 = vector.shape_cast %8 : vector<1x1x512xf32> to vector<1x512xf32>
    %10 = vector.broadcast %9 : vector<1x512xf32> to vector<64x512xf32>
    %11 = arith.addf %7, %10 : vector<64x512xf32>
    %c0_10 = arith.constant 0 : index
    %c0_11 = arith.constant 0 : index
    %12 = vector.load %arg12[%c0_10, %c0_11] : memref<64x512xf32, #tpu.memory_space<vmem>>, vector<64x512xf32>
    tpu.vector_store %arg12[%c0_10, %c0_11], %11 {strides = array<i32>} : memref<64x512xf32, #tpu.memory_space<vmem>>, vector<64x512xf32>,
    %c0_12 = arith.constant 0 : index
    %c0_13 = arith.constant 0 : index
    %c0_14 = arith.constant 0 : index
    %13 = vector.load %arg1[%c0_12, %c0_13, %c0_14] : memref<2x8x128xf32, #tpu.memory_space<vmem>>, vector<1x8x128xf32>
    %14 = vector.shape_cast %13 : vector<1x8x128xf32> to vector<8x128xf32>
    %c0_15 = arith.constant 0 : index
    %c0_16 = arith.constant 0 : index
    %c0_17 = arith.constant 0 : index
    %15 = vector.load %arg2[%c0_15, %c0_16, %c0_17] : memref<2x8x128xf32, #tpu.memory_space<vmem>>, vector<1x8x128xf32>
    %16 = vector.shape_cast %15 : vector<1x8x128xf32> to vector<8x128xf32>
    %c0_i32 = arith.constant 0 : i32
    %c8_i32 = arith.constant 8 : i32
    %17 = arith.muli %c0_i32, %c8_i32 : i32
    %18 = tpu.assume_multiple %17, 8 : i32
    %19 = arith.index_cast %18 : i32 to index
    %c0_18 = arith.constant 0 : index
    %20 = vector.load %arg12[%19, %c0_18] : memref<64x512xf32, #tpu.memory_space<vmem>>, vector<8x512xf32>
    %cst_19 = arith.constant dense<0.000000e+00> : vector<8x512xf32>
    %21 = tpu.matmul %14, %6, %cst_19 {dimension_numbers = #tpu.dot_dimension_numbers<[1], [0], [0], [1], [0, 0, 1, 1], [], []>} : vector<8x128xf32>, vector<128x512xf32>, vector<8x512xf32> -> vector<8x512xf32>
    %22 = arith.addf %20, %21 : vector<8x512xf32>
    %23 = vector.extract_strided_slice %22 {offsets = [0, 0], sizes = [8, 384], strides = [1, 1]} : vector<8x512xf32> to vector<8x384xf32>
    %24 = arith.negf %23 : vector<8x384xf32>
    %25 = math.exp %24 : vector<8x384xf32>
    %cst_20 = arith.constant 1.000000e+00 : f32
    %26 = vector.broadcast %cst_20 : f32 to vector<8x384xf32>
    %27 = arith.addf %26, %25 : vector<8x384xf32>
    %28 = arith.divf %26, %27 : vector<8x384xf32>
    %29 = vector.extract_strided_slice %22 {offsets = [0, 384], sizes = [8, 128], strides = [1, 1]} : vector<8x512xf32> to vector<8x128xf32>
    %30 = math.tanh %29 : vector<8x128xf32>
    %31 = vector.extract_strided_slice %28 {offsets = [0, 0], sizes = [8, 128], strides = [1, 1]} : vector<8x384xf32> to vector<8x128xf32>
    %32 = vector.extract_strided_slice %28 {offsets = [0, 128], sizes = [8, 128], strides = [1, 1]} : vector<8x384xf32> to vector<8x128xf32>
    %33 = vector.extract_strided_slice %28 {offsets = [0, 256], sizes = [8, 128], strides = [1, 1]} : vector<8x384xf32> to vector<8x128xf32>
    %34 = arith.mulf %32, %16 : vector<8x128xf32>
    %35 = arith.mulf %31, %30 : vector<8x128xf32>
    %36 = arith.addf %34, %35 : vector<8x128xf32>
    %37 = math.tanh %36 : vector<8x128xf32>
    %38 = arith.mulf %33, %37 : vector<8x128xf32>
    %39 = arith.index_cast %18 : i32 to index
    %c0_21 = arith.constant 0 : index
    %40 = vector.load %arg11[%39, %c0_21] : memref<64x128xf32, #tpu.memory_space<vmem>>, vector<8x128xf32>
    tpu.vector_store %arg11[%39, %c0_21], %38 {strides = array<i32>} : memref<64x128xf32, #tpu.memory_space<vmem>>, vector<8x128xf32>,
    %c1_i32 = arith.constant 1 : i32
    %c8_i32_22 = arith.constant 8 : i32
    %41 = arith.muli %c1_i32, %c8_i32_22 : i32
    %42 = tpu.assume_multiple %41, 8 : i32
    %43 = arith.index_cast %42 : i32 to index
    %c0_23 = arith.constant 0 : index
    %44 = vector.load %arg12[%43, %c0_23] : memref<64x512xf32, #tpu.memory_space<vmem>>, vector<8x512xf32>
    %cst_24 = arith.constant dense<0.000000e+00> : vector<8x512xf32>
    %45 = tpu.matmul %38, %6, %cst_24 {dimension_numbers = #tpu.dot_dimension_numbers<[1], [0], [0], [1], [0, 0, 1, 1], [], []>} : vector<8x128xf32>, vector<128x512xf32>, vector<8x512xf32> -> vector<8x512xf32>
    %46 = arith.addf %44, %45 : vector<8x512xf32>
    %47 = vector.extract_strided_slice %46 {offsets = [0, 0], sizes = [8, 384], strides = [1, 1]} : vector<8x512xf32> to vector<8x384xf32>
    %48 = arith.negf %47 : vector<8x384xf32>
    %49 = math.exp %48 : vector<8x384xf32>
    %cst_25 = arith.constant 1.000000e+00 : f32
    %50 = vector.broadcast %cst_25 : f32 to vector<8x384xf32>
    %51 = arith.addf %50, %49 : vector<8x384xf32>
    %52 = arith.divf %50, %51 : vector<8x384xf32>
    %53 = vector.extract_strided_slice %46 {offsets = [0, 384], sizes = [8, 128], strides = [1, 1]} : vector<8x512xf32> to vector<8x128xf32>
    %54 = math.tanh %53 : vector<8x128xf32>
    %55 = vector.extract_strided_slice %52 {offsets = [0, 0], sizes = [8, 128], strides = [1, 1]} : vector<8x384xf32> to vector<8x128xf32>
    %56 = vector.extract_strided_slice %52 {offsets = [0, 128], sizes = [8, 128], strides = [1, 1]} : vector<8x384xf32> to vector<8x128xf32>
    %57 = vector.extract_strided_slice %52 {offsets = [0, 256], sizes = [8, 128], strides = [1, 1]} : vector<8x384xf32> to vector<8x128xf32>
    %58 = arith.mulf %56, %36 : vector<8x128xf32>
    %59 = arith.mulf %55, %54 : vector<8x128xf32>
    %60 = arith.addf %58, %59 : vector<8x128xf32>
    %61 = math.tanh %60 : vector<8x128xf32>
    %62 = arith.mulf %57, %61 : vector<8x128xf32>
    %63 = arith.index_cast %42 : i32 to index
    %c0_26 = arith.constant 0 : index
    %64 = vector.load %arg11[%63, %c0_26] : memref<64x128xf32, #tpu.memory_space<vmem>>, vector<8x128xf32>
    tpu.vector_store %arg11[%63, %c0_26], %62 {strides = array<i32>} : memref<64x128xf32, #tpu.memory_space<vmem>>, vector<8x128xf32>,
    %c2_i32 = arith.constant 2 : i32
    %c8_i32_27 = arith.constant 8 : i32
    %65 = arith.muli %c2_i32, %c8_i32_27 : i32
    %66 = tpu.assume_multiple %65, 8 : i32
    %67 = arith.index_cast %66 : i32 to index
    %c0_28 = arith.constant 0 : index
    %68 = vector.load %arg12[%67, %c0_28] : memref<64x512xf32, #tpu.memory_space<vmem>>, vector<8x512xf32>
    %cst_29 = arith.constant dense<0.000000e+00> : vector<8x512xf32>
    %69 = tpu.matmul %62, %6, %cst_29 {dimension_numbers = #tpu.dot_dimension_numbers<[1], [0], [0], [1], [0, 0, 1, 1], [], []>} : vector<8x128xf32>, vector<128x512xf32>, vector<8x512xf32> -> vector<8x512xf32>
    %70 = arith.addf %68, %69 : vector<8x512xf32>
    %71 = vector.extract_strided_slice %70 {offsets = [0, 0], sizes = [8, 384], strides = [1, 1]} : vector<8x512xf32> to vector<8x384xf32>
    %72 = arith.negf %71 : vector<8x384xf32>
    %73 = math.exp %72 : vector<8x384xf32>
    %cst_30 = arith.constant 1.000000e+00 : f32
    %74 = vector.broadcast %cst_30 : f32 to vector<8x384xf32>
    %75 = arith.addf %74, %73 : vector<8x384xf32>
    %76 = arith.divf %74, %75 : vector<8x384xf32>
    %77 = vector.extract_strided_slice %70 {offsets = [0, 384], sizes = [8, 128], strides = [1, 1]} : vector<8x512xf32> to vector<8x128xf32>
    %78 = math.tanh %77 : vector<8x128xf32>
    %79 = vector.extract_strided_slice %76 {offsets = [0, 0], sizes = [8, 128], strides = [1, 1]} : vector<8x384xf32> to vector<8x128xf32>
    %80 = vector.extract_strided_slice %76 {offsets = [0, 128], sizes = [8, 128], strides = [1, 1]} : vector<8x384xf32> to vector<8x128xf32>
    %81 = vector.extract_strided_slice %76 {offsets = [0, 256], sizes = [8, 128], strides = [1, 1]} : vector<8x384xf32> to vector<8x128xf32>
    %82 = arith.mulf %80, %60 : vector<8x128xf32>
    %83 = arith.mulf %79, %78 : vector<8x128xf32>
    %84 = arith.addf %82, %83 : vector<8x128xf32>
    %85 = math.tanh %84 : vector<8x128xf32>
    %86 = arith.mulf %81, %85 : vector<8x128xf32>
    %87 = arith.index_cast %66 : i32 to index
    %c0_31 = arith.constant 0 : index
    %88 = vector.load %arg11[%87, %c0_31] : memref<64x128xf32, #tpu.memory_space<vmem>>, vector<8x128xf32>
    tpu.vector_store %arg11[%87, %c0_31], %86 {strides = array<i32>} : memref<64x128xf32, #tpu.memory_space<vmem>>, vector<8x128xf32>,
    %c3_i32 = arith.constant 3 : i32
    %c8_i32_32 = arith.constant 8 : i32
    %89 = arith.muli %c3_i32, %c8_i32_32 : i32
    %90 = tpu.assume_multiple %89, 8 : i32
    %91 = arith.index_cast %90 : i32 to index
    %c0_33 = arith.constant 0 : index
    %92 = vector.load %arg12[%91, %c0_33] : memref<64x512xf32, #tpu.memory_space<vmem>>, vector<8x512xf32>
    %cst_34 = arith.constant dense<0.000000e+00> : vector<8x512xf32>
    %93 = tpu.matmul %86, %6, %cst_34 {dimension_numbers = #tpu.dot_dimension_numbers<[1], [0], [0], [1], [0, 0, 1, 1], [], []>} : vector<8x128xf32>, vector<128x512xf32>, vector<8x512xf32> -> vector<8x512xf32>
    %94 = arith.addf %92, %93 : vector<8x512xf32>
    %95 = vector.extract_strided_slice %94 {offsets = [0, 0], sizes = [8, 384], strides = [1, 1]} : vector<8x512xf32> to vector<8x384xf32>
    %96 = arith.negf %95 : vector<8x384xf32>
    %97 = math.exp %96 : vector<8x384xf32>
    %cst_35 = arith.constant 1.000000e+00 : f32
    %98 = vector.broadcast %cst_35 : f32 to vector<8x384xf32>
    %99 = arith.addf %98, %97 : vector<8x384xf32>
    %100 = arith.divf %98, %99 : vector<8x384xf32>
    %101 = vector.extract_strided_slice %94 {offsets = [0, 384], sizes = [8, 128], strides = [1, 1]} : vector<8x512xf32> to vector<8x128xf32>
    %102 = math.tanh %101 : vector<8x128xf32>
    %103 = vector.extract_strided_slice %100 {offsets = [0, 0], sizes = [8, 128], strides = [1, 1]} : vector<8x384xf32> to vector<8x128xf32>
    %104 = vector.extract_strided_slice %100 {offsets = [0, 128], sizes = [8, 128], strides = [1, 1]} : vector<8x384xf32> to vector<8x128xf32>
    %105 = vector.extract_strided_slice %100 {offsets = [0, 256], sizes = [8, 128], strides = [1, 1]} : vector<8x384xf32> to vector<8x128xf32>
    %106 = arith.mulf %104, %84 : vector<8x128xf32>
    %107 = arith.mulf %103, %102 : vector<8x128xf32>
    %108 = arith.addf %106, %107 : vector<8x128xf32>
    %109 = math.tanh %108 : vector<8x128xf32>
    %110 = arith.mulf %105, %109 : vector<8x128xf32>
    %111 = arith.index_cast %90 : i32 to index
    %c0_36 = arith.constant 0 : index
    %112 = vector.load %arg11[%111, %c0_36] : memref<64x128xf32, #tpu.memory_space<vmem>>, vector<8x128xf32>
    tpu.vector_store %arg11[%111, %c0_36], %110 {strides = array<i32>} : memref<64x128xf32, #tpu.memory_space<vmem>>, vector<8x128xf32>,
    %c4_i32 = arith.constant 4 : i32
    %c8_i32_37 = arith.constant 8 : i32
    %113 = arith.muli %c4_i32, %c8_i32_37 : i32
    %114 = tpu.assume_multiple %113, 8 : i32
    %115 = arith.index_cast %114 : i32 to index
    %c0_38 = arith.constant 0 : index
    %116 = vector.load %arg12[%115, %c0_38] : memref<64x512xf32, #tpu.memory_space<vmem>>, vector<8x512xf32>
    %cst_39 = arith.constant dense<0.000000e+00> : vector<8x512xf32>
    %117 = tpu.matmul %110, %6, %cst_39 {dimension_numbers = #tpu.dot_dimension_numbers<[1], [0], [0], [1], [0, 0, 1, 1], [], []>} : vector<8x128xf32>, vector<128x512xf32>, vector<8x512xf32> -> vector<8x512xf32>
    %118 = arith.addf %116, %117 : vector<8x512xf32>
    %119 = vector.extract_strided_slice %118 {offsets = [0, 0], sizes = [8, 384], strides = [1, 1]} : vector<8x512xf32> to vector<8x384xf32>
    %120 = arith.negf %119 : vector<8x384xf32>
    %121 = math.exp %120 : vector<8x384xf32>
    %cst_40 = arith.constant 1.000000e+00 : f32
    %122 = vector.broadcast %cst_40 : f32 to vector<8x384xf32>
    %123 = arith.addf %122, %121 : vector<8x384xf32>
    %124 = arith.divf %122, %123 : vector<8x384xf32>
    %125 = vector.extract_strided_slice %118 {offsets = [0, 384], sizes = [8, 128], strides = [1, 1]} : vector<8x512xf32> to vector<8x128xf32>
    %126 = math.tanh %125 : vector<8x128xf32>
    %127 = vector.extract_strided_slice %124 {offsets = [0, 0], sizes = [8, 128], strides = [1, 1]} : vector<8x384xf32> to vector<8x128xf32>
    %128 = vector.extract_strided_slice %124 {offsets = [0, 128], sizes = [8, 128], strides = [1, 1]} : vector<8x384xf32> to vector<8x128xf32>
    %129 = vector.extract_strided_slice %124 {offsets = [0, 256], sizes = [8, 128], strides = [1, 1]} : vector<8x384xf32> to vector<8x128xf32>
    %130 = arith.mulf %128, %108 : vector<8x128xf32>
    %131 = arith.mulf %127, %126 : vector<8x128xf32>
    %132 = arith.addf %130, %131 : vector<8x128xf32>
    %133 = math.tanh %132 : vector<8x128xf32>
    %134 = arith.mulf %129, %133 : vector<8x128xf32>
    %135 = arith.index_cast %114 : i32 to index
    %c0_41 = arith.constant 0 : index
    %136 = vector.load %arg11[%135, %c0_41] : memref<64x128xf32, #tpu.memory_space<vmem>>, vector<8x128xf32>
    tpu.vector_store %arg11[%135, %c0_41], %134 {strides = array<i32>} : memref<64x128xf32, #tpu.memory_space<vmem>>, vector<8x128xf32>,
    %c5_i32 = arith.constant 5 : i32
    %c8_i32_42 = arith.constant 8 : i32
    %137 = arith.muli %c5_i32, %c8_i32_42 : i32
    %138 = tpu.assume_multiple %137, 8 : i32
    %139 = arith.index_cast %138 : i32 to index
    %c0_43 = arith.constant 0 : index
    %140 = vector.load %arg12[%139, %c0_43] : memref<64x512xf32, #tpu.memory_space<vmem>>, vector<8x512xf32>
    %cst_44 = arith.constant dense<0.000000e+00> : vector<8x512xf32>
    %141 = tpu.matmul %134, %6, %cst_44 {dimension_numbers = #tpu.dot_dimension_numbers<[1], [0], [0], [1], [0, 0, 1, 1], [], []>} : vector<8x128xf32>, vector<128x512xf32>, vector<8x512xf32> -> vector<8x512xf32>
    %142 = arith.addf %140, %141 : vector<8x512xf32>
    %143 = vector.extract_strided_slice %142 {offsets = [0, 0], sizes = [8, 384], strides = [1, 1]} : vector<8x512xf32> to vector<8x384xf32>
    %144 = arith.negf %143 : vector<8x384xf32>
    %145 = math.exp %144 : vector<8x384xf32>
    %cst_45 = arith.constant 1.000000e+00 : f32
    %146 = vector.broadcast %cst_45 : f32 to vector<8x384xf32>
    %147 = arith.addf %146, %145 : vector<8x384xf32>
    %148 = arith.divf %146, %147 : vector<8x384xf32>
    %149 = vector.extract_strided_slice %142 {offsets = [0, 384], sizes = [8, 128], strides = [1, 1]} : vector<8x512xf32> to vector<8x128xf32>
    %150 = math.tanh %149 : vector<8x128xf32>
    %151 = vector.extract_strided_slice %148 {offsets = [0, 0], sizes = [8, 128], strides = [1, 1]} : vector<8x384xf32> to vector<8x128xf32>
    %152 = vector.extract_strided_slice %148 {offsets = [0, 128], sizes = [8, 128], strides = [1, 1]} : vector<8x384xf32> to vector<8x128xf32>
    %153 = vector.extract_strided_slice %148 {offsets = [0, 256], sizes = [8, 128], strides = [1, 1]} : vector<8x384xf32> to vector<8x128xf32>
    %154 = arith.mulf %152, %132 : vector<8x128xf32>
    %155 = arith.mulf %151, %150 : vector<8x128xf32>
    %156 = arith.addf %154, %155 : vector<8x128xf32>
    %157 = math.tanh %156 : vector<8x128xf32>
    %158 = arith.mulf %153, %157 : vector<8x128xf32>
    %159 = arith.index_cast %138 : i32 to index
    %c0_46 = arith.constant 0 : index
    %160 = vector.load %arg11[%159, %c0_46] : memref<64x128xf32, #tpu.memory_space<vmem>>, vector<8x128xf32>
    tpu.vector_store %arg11[%159, %c0_46], %158 {strides = array<i32>} : memref<64x128xf32, #tpu.memory_space<vmem>>, vector<8x128xf32>,
    %c6_i32 = arith.constant 6 : i32
    %c8_i32_47 = arith.constant 8 : i32
    %161 = arith.muli %c6_i32, %c8_i32_47 : i32
    %162 = tpu.assume_multiple %161, 8 : i32
    %163 = arith.index_cast %162 : i32 to index
    %c0_48 = arith.constant 0 : index
    %164 = vector.load %arg12[%163, %c0_48] : memref<64x512xf32, #tpu.memory_space<vmem>>, vector<8x512xf32>
    %cst_49 = arith.constant dense<0.000000e+00> : vector<8x512xf32>
    %165 = tpu.matmul %158, %6, %cst_49 {dimension_numbers = #tpu.dot_dimension_numbers<[1], [0], [0], [1], [0, 0, 1, 1], [], []>} : vector<8x128xf32>, vector<128x512xf32>, vector<8x512xf32> -> vector<8x512xf32>
    %166 = arith.addf %164, %165 : vector<8x512xf32>
    %167 = vector.extract_strided_slice %166 {offsets = [0, 0], sizes = [8, 384], strides = [1, 1]} : vector<8x512xf32> to vector<8x384xf32>
    %168 = arith.negf %167 : vector<8x384xf32>
    %169 = math.exp %168 : vector<8x384xf32>
    %cst_50 = arith.constant 1.000000e+00 : f32
    %170 = vector.broadcast %cst_50 : f32 to vector<8x384xf32>
    %171 = arith.addf %170, %169 : vector<8x384xf32>
    %172 = arith.divf %170, %171 : vector<8x384xf32>
    %173 = vector.extract_strided_slice %166 {offsets = [0, 384], sizes = [8, 128], strides = [1, 1]} : vector<8x512xf32> to vector<8x128xf32>
    %174 = math.tanh %173 : vector<8x128xf32>
    %175 = vector.extract_strided_slice %172 {offsets = [0, 0], sizes = [8, 128], strides = [1, 1]} : vector<8x384xf32> to vector<8x128xf32>
    %176 = vector.extract_strided_slice %172 {offsets = [0, 128], sizes = [8, 128], strides = [1, 1]} : vector<8x384xf32> to vector<8x128xf32>
    %177 = vector.extract_strided_slice %172 {offsets = [0, 256], sizes = [8, 128], strides = [1, 1]} : vector<8x384xf32> to vector<8x128xf32>
    %178 = arith.mulf %176, %156 : vector<8x128xf32>
    %179 = arith.mulf %175, %174 : vector<8x128xf32>
    %180 = arith.addf %178, %179 : vector<8x128xf32>
    %181 = math.tanh %180 : vector<8x128xf32>
    %182 = arith.mulf %177, %181 : vector<8x128xf32>
    %183 = arith.index_cast %162 : i32 to index
    %c0_51 = arith.constant 0 : index
    %184 = vector.load %arg11[%183, %c0_51] : memref<64x128xf32, #tpu.memory_space<vmem>>, vector<8x128xf32>
    tpu.vector_store %arg11[%183, %c0_51], %182 {strides = array<i32>} : memref<64x128xf32, #tpu.memory_space<vmem>>, vector<8x128xf32>,
    %c7_i32 = arith.constant 7 : i32
    %c8_i32_52 = arith.constant 8 : i32
    %185 = arith.muli %c7_i32, %c8_i32_52 : i32
    %186 = tpu.assume_multiple %185, 8 : i32
    %187 = arith.index_cast %186 : i32 to index
    %c0_53 = arith.constant 0 : index
    %188 = vector.load %arg12[%187, %c0_53] : memref<64x512xf32, #tpu.memory_space<vmem>>, vector<8x512xf32>
    %cst_54 = arith.constant dense<0.000000e+00> : vector<8x512xf32>
    %189 = tpu.matmul %182, %6, %cst_54 {dimension_numbers = #tpu.dot_dimension_numbers<[1], [0], [0], [1], [0, 0, 1, 1], [], []>} : vector<8x128xf32>, vector<128x512xf32>, vector<8x512xf32> -> vector<8x512xf32>
    %190 = arith.addf %188, %189 : vector<8x512xf32>
    %191 = vector.extract_strided_slice %190 {offsets = [0, 0], sizes = [8, 384], strides = [1, 1]} : vector<8x512xf32> to vector<8x384xf32>
    %192 = arith.negf %191 : vector<8x384xf32>
    %193 = math.exp %192 : vector<8x384xf32>
    %cst_55 = arith.constant 1.000000e+00 : f32
    %194 = vector.broadcast %cst_55 : f32 to vector<8x384xf32>
    %195 = arith.addf %194, %193 : vector<8x384xf32>
    %196 = arith.divf %194, %195 : vector<8x384xf32>
    %197 = vector.extract_strided_slice %190 {offsets = [0, 384], sizes = [8, 128], strides = [1, 1]} : vector<8x512xf32> to vector<8x128xf32>
    %198 = math.tanh %197 : vector<8x128xf32>
    %199 = vector.extract_strided_slice %196 {offsets = [0, 0], sizes = [8, 128], strides = [1, 1]} : vector<8x384xf32> to vector<8x128xf32>
    %200 = vector.extract_strided_slice %196 {offsets = [0, 128], sizes = [8, 128], strides = [1, 1]} : vector<8x384xf32> to vector<8x128xf32>
    %201 = vector.extract_strided_slice %196 {offsets = [0, 256], sizes = [8, 128], strides = [1, 1]} : vector<8x384xf32> to vector<8x128xf32>
    %202 = arith.mulf %200, %180 : vector<8x128xf32>
    %203 = arith.mulf %199, %198 : vector<8x128xf32>
    %204 = arith.addf %202, %203 : vector<8x128xf32>
    %205 = math.tanh %204 : vector<8x128xf32>
    %206 = arith.mulf %201, %205 : vector<8x128xf32>
    %207 = arith.index_cast %186 : i32 to index
    %c0_56 = arith.constant 0 : index
    %208 = vector.load %arg11[%207, %c0_56] : memref<64x128xf32, #tpu.memory_space<vmem>>, vector<8x128xf32>
    tpu.vector_store %arg11[%207, %c0_56], %206 {strides = array<i32>} : memref<64x128xf32, #tpu.memory_space<vmem>>, vector<8x128xf32>,
    %c8_i32_57 = arith.constant 8 : i32
    %c0_58 = arith.constant 0 : index
    %c0_59 = arith.constant 0 : index
    %c0_60 = arith.constant 0 : index
    %209 = vector.load %arg9[%c0_58, %c0_59, %c0_60] : memref<2x8x128xf32, #tpu.memory_space<vmem>>, vector<1x8x128xf32>
    %210 = vector.shape_cast %209 : vector<1x8x128xf32> to vector<8x128xf32>
    %211 = vector.shape_cast %206 : vector<8x128xf32> to vector<1x8x128xf32>
    tpu.vector_store %arg9[%c0_58, %c0_59, %c0_60], %211 {strides = array<i32>} : memref<2x8x128xf32, #tpu.memory_space<vmem>>, vector<1x8x128xf32>,
    %c0_61 = arith.constant 0 : index
    %c0_62 = arith.constant 0 : index
    %c0_63 = arith.constant 0 : index
    %212 = vector.load %arg10[%c0_61, %c0_62, %c0_63] : memref<2x8x128xf32, #tpu.memory_space<vmem>>, vector<1x8x128xf32>
    %213 = vector.shape_cast %212 : vector<1x8x128xf32> to vector<8x128xf32>
    %214 = vector.shape_cast %204 : vector<8x128xf32> to vector<1x8x128xf32>
    tpu.vector_store %arg10[%c0_61, %c0_62, %c0_63], %214 {strides = array<i32>} : memref<2x8x128xf32, #tpu.memory_space<vmem>>, vector<1x8x128xf32>,
    %c0_64 = arith.constant 0 : index
    %c0_65 = arith.constant 0 : index
    %215 = vector.load %arg11[%c0_64, %c0_65] : memref<64x128xf32, #tpu.memory_space<vmem>>, vector<64x128xf32>
    %c1 = arith.constant 1 : index
    %c0_66 = arith.constant 0 : index
    %c0_67 = arith.constant 0 : index
    %216 = vector.load %arg3[%c1, %c0_66, %c0_67] : memref<2x128x512xbf16, #tpu.memory_space<vmem>>, vector<1x128x512xbf16>
    %217 = vector.shape_cast %216 : vector<1x128x512xbf16> to vector<128x512xbf16>
    %218 = arith.extf %217 : vector<128x512xbf16> to vector<128x512xf32>
    %c1_68 = arith.constant 1 : index
    %c0_69 = arith.constant 0 : index
    %c0_70 = arith.constant 0 : index
    %219 = vector.load %arg4[%c1_68, %c0_69, %c0_70] : memref<2x128x512xbf16, #tpu.memory_space<vmem>>, vector<1x128x512xbf16>
    %220 = vector.shape_cast %219 : vector<1x128x512xbf16> to vector<128x512xbf16>
    %221 = arith.extf %220 : vector<128x512xbf16> to vector<128x512xf32>
    %cst_71 = arith.constant dense<0.000000e+00> : vector<64x512xf32>
    %222 = tpu.matmul %215, %218, %cst_71 {dimension_numbers = #tpu.dot_dimension_numbers<[1], [0], [0], [1], [0, 0, 1, 1], [], []>} : vector<64x128xf32>, vector<128x512xf32>, vector<64x512xf32> -> vector<64x512xf32>
    %c1_72 = arith.constant 1 : index
    %c0_73 = arith.constant 0 : index
    %c0_74 = arith.constant 0 : index
    %223 = vector.load %arg5[%c1_72, %c0_73, %c0_74] : memref<2x1x512xf32, #tpu.memory_space<vmem>>, vector<1x1x512xf32>
    %224 = vector.shape_cast %223 : vector<1x1x512xf32> to vector<1x512xf32>
    %225 = vector.broadcast %224 : vector<1x512xf32> to vector<64x512xf32>
    %226 = arith.addf %222, %225 : vector<64x512xf32>
    %c0_75 = arith.constant 0 : index
    %c0_76 = arith.constant 0 : index
    %227 = vector.load %arg12[%c0_75, %c0_76] : memref<64x512xf32, #tpu.memory_space<vmem>>, vector<64x512xf32>
    tpu.vector_store %arg12[%c0_75, %c0_76], %226 {strides = array<i32>} : memref<64x512xf32, #tpu.memory_space<vmem>>, vector<64x512xf32>,
    %c1_77 = arith.constant 1 : index
    %c0_78 = arith.constant 0 : index
    %c0_79 = arith.constant 0 : index
    %228 = vector.load %arg1[%c1_77, %c0_78, %c0_79] : memref<2x8x128xf32, #tpu.memory_space<vmem>>, vector<1x8x128xf32>
    %229 = vector.shape_cast %228 : vector<1x8x128xf32> to vector<8x128xf32>
    %c1_80 = arith.constant 1 : index
    %c0_81 = arith.constant 0 : index
    %c0_82 = arith.constant 0 : index
    %230 = vector.load %arg2[%c1_80, %c0_81, %c0_82] : memref<2x8x128xf32, #tpu.memory_space<vmem>>, vector<1x8x128xf32>
    %231 = vector.shape_cast %230 : vector<1x8x128xf32> to vector<8x128xf32>
    %c0_i32_83 = arith.constant 0 : i32
    %c8_i32_84 = arith.constant 8 : i32
    %232 = arith.muli %c0_i32_83, %c8_i32_84 : i32
    %233 = tpu.assume_multiple %232, 8 : i32
    %234 = arith.index_cast %233 : i32 to index
    %c0_85 = arith.constant 0 : index
    %235 = vector.load %arg12[%234, %c0_85] : memref<64x512xf32, #tpu.memory_space<vmem>>, vector<8x512xf32>
    %cst_86 = arith.constant dense<0.000000e+00> : vector<8x512xf32>
    %236 = tpu.matmul %229, %221, %cst_86 {dimension_numbers = #tpu.dot_dimension_numbers<[1], [0], [0], [1], [0, 0, 1, 1], [], []>} : vector<8x128xf32>, vector<128x512xf32>, vector<8x512xf32> -> vector<8x512xf32>
    %237 = arith.addf %235, %236 : vector<8x512xf32>
    %238 = vector.extract_strided_slice %237 {offsets = [0, 0], sizes = [8, 384], strides = [1, 1]} : vector<8x512xf32> to vector<8x384xf32>
    %239 = arith.negf %238 : vector<8x384xf32>
    %240 = math.exp %239 : vector<8x384xf32>
    %cst_87 = arith.constant 1.000000e+00 : f32
    %241 = vector.broadcast %cst_87 : f32 to vector<8x384xf32>
    %242 = arith.addf %241, %240 : vector<8x384xf32>
    %243 = arith.divf %241, %242 : vector<8x384xf32>
    %244 = vector.extract_strided_slice %237 {offsets = [0, 384], sizes = [8, 128], strides = [1, 1]} : vector<8x512xf32> to vector<8x128xf32>
    %245 = math.tanh %244 : vector<8x128xf32>
    %246 = vector.extract_strided_slice %243 {offsets = [0, 0], sizes = [8, 128], strides = [1, 1]} : vector<8x384xf32> to vector<8x128xf32>
    %247 = vector.extract_strided_slice %243 {offsets = [0, 128], sizes = [8, 128], strides = [1, 1]} : vector<8x384xf32> to vector<8x128xf32>
    %248 = vector.extract_strided_slice %243 {offsets = [0, 256], sizes = [8, 128], strides = [1, 1]} : vector<8x384xf32> to vector<8x128xf32>
    %249 = arith.mulf %247, %231 : vector<8x128xf32>
    %250 = arith.mulf %246, %245 : vector<8x128xf32>
    %251 = arith.addf %249, %250 : vector<8x128xf32>
    %252 = math.tanh %251 : vector<8x128xf32>
    %253 = arith.mulf %248, %252 : vector<8x128xf32>
    %254 = arith.index_cast %233 : i32 to index
    %c0_88 = arith.constant 0 : index
    %255 = vector.load %arg11[%254, %c0_88] : memref<64x128xf32, #tpu.memory_space<vmem>>, vector<8x128xf32>
    tpu.vector_store %arg11[%254, %c0_88], %253 {strides = array<i32>} : memref<64x128xf32, #tpu.memory_space<vmem>>, vector<8x128xf32>,
    %c1_i32_89 = arith.constant 1 : i32
    %c8_i32_90 = arith.constant 8 : i32
    %256 = arith.muli %c1_i32_89, %c8_i32_90 : i32
    %257 = tpu.assume_multiple %256, 8 : i32
    %258 = arith.index_cast %257 : i32 to index
    %c0_91 = arith.constant 0 : index
    %259 = vector.load %arg12[%258, %c0_91] : memref<64x512xf32, #tpu.memory_space<vmem>>, vector<8x512xf32>
    %cst_92 = arith.constant dense<0.000000e+00> : vector<8x512xf32>
    %260 = tpu.matmul %253, %221, %cst_92 {dimension_numbers = #tpu.dot_dimension_numbers<[1], [0], [0], [1], [0, 0, 1, 1], [], []>} : vector<8x128xf32>, vector<128x512xf32>, vector<8x512xf32> -> vector<8x512xf32>
    %261 = arith.addf %259, %260 : vector<8x512xf32>
    %262 = vector.extract_strided_slice %261 {offsets = [0, 0], sizes = [8, 384], strides = [1, 1]} : vector<8x512xf32> to vector<8x384xf32>
    %263 = arith.negf %262 : vector<8x384xf32>
    %264 = math.exp %263 : vector<8x384xf32>
    %cst_93 = arith.constant 1.000000e+00 : f32
    %265 = vector.broadcast %cst_93 : f32 to vector<8x384xf32>
    %266 = arith.addf %265, %264 : vector<8x384xf32>
    %267 = arith.divf %265, %266 : vector<8x384xf32>
    %268 = vector.extract_strided_slice %261 {offsets = [0, 384], sizes = [8, 128], strides = [1, 1]} : vector<8x512xf32> to vector<8x128xf32>
    %269 = math.tanh %268 : vector<8x128xf32>
    %270 = vector.extract_strided_slice %267 {offsets = [0, 0], sizes = [8, 128], strides = [1, 1]} : vector<8x384xf32> to vector<8x128xf32>
    %271 = vector.extract_strided_slice %267 {offsets = [0, 128], sizes = [8, 128], strides = [1, 1]} : vector<8x384xf32> to vector<8x128xf32>
    %272 = vector.extract_strided_slice %267 {offsets = [0, 256], sizes = [8, 128], strides = [1, 1]} : vector<8x384xf32> to vector<8x128xf32>
    %273 = arith.mulf %271, %251 : vector<8x128xf32>
    %274 = arith.mulf %270, %269 : vector<8x128xf32>
    %275 = arith.addf %273, %274 : vector<8x128xf32>
    %276 = math.tanh %275 : vector<8x128xf32>
    %277 = arith.mulf %272, %276 : vector<8x128xf32>
    %278 = arith.index_cast %257 : i32 to index
    %c0_94 = arith.constant 0 : index
    %279 = vector.load %arg11[%278, %c0_94] : memref<64x128xf32, #tpu.memory_space<vmem>>, vector<8x128xf32>
    tpu.vector_store %arg11[%278, %c0_94], %277 {strides = array<i32>} : memref<64x128xf32, #tpu.memory_space<vmem>>, vector<8x128xf32>,
    %c2_i32_95 = arith.constant 2 : i32
    %c8_i32_96 = arith.constant 8 : i32
    %280 = arith.muli %c2_i32_95, %c8_i32_96 : i32
    %281 = tpu.assume_multiple %280, 8 : i32
    %282 = arith.index_cast %281 : i32 to index
    %c0_97 = arith.constant 0 : index
    %283 = vector.load %arg12[%282, %c0_97] : memref<64x512xf32, #tpu.memory_space<vmem>>, vector<8x512xf32>
    %cst_98 = arith.constant dense<0.000000e+00> : vector<8x512xf32>
    %284 = tpu.matmul %277, %221, %cst_98 {dimension_numbers = #tpu.dot_dimension_numbers<[1], [0], [0], [1], [0, 0, 1, 1], [], []>} : vector<8x128xf32>, vector<128x512xf32>, vector<8x512xf32> -> vector<8x512xf32>
    %285 = arith.addf %283, %284 : vector<8x512xf32>
    %286 = vector.extract_strided_slice %285 {offsets = [0, 0], sizes = [8, 384], strides = [1, 1]} : vector<8x512xf32> to vector<8x384xf32>
    %287 = arith.negf %286 : vector<8x384xf32>
    %288 = math.exp %287 : vector<8x384xf32>
    %cst_99 = arith.constant 1.000000e+00 : f32
    %289 = vector.broadcast %cst_99 : f32 to vector<8x384xf32>
    %290 = arith.addf %289, %288 : vector<8x384xf32>
    %291 = arith.divf %289, %290 : vector<8x384xf32>
    %292 = vector.extract_strided_slice %285 {offsets = [0, 384], sizes = [8, 128], strides = [1, 1]} : vector<8x512xf32> to vector<8x128xf32>
    %293 = math.tanh %292 : vector<8x128xf32>
    %294 = vector.extract_strided_slice %291 {offsets = [0, 0], sizes = [8, 128], strides = [1, 1]} : vector<8x384xf32> to vector<8x128xf32>
    %295 = vector.extract_strided_slice %291 {offsets = [0, 128], sizes = [8, 128], strides = [1, 1]} : vector<8x384xf32> to vector<8x128xf32>
    %296 = vector.extract_strided_slice %291 {offsets = [0, 256], sizes = [8, 128], strides = [1, 1]} : vector<8x384xf32> to vector<8x128xf32>
    %297 = arith.mulf %295, %275 : vector<8x128xf32>
    %298 = arith.mulf %294, %293 : vector<8x128xf32>
    %299 = arith.addf %297, %298 : vector<8x128xf32>
    %300 = math.tanh %299 : vector<8x128xf32>
    %301 = arith.mulf %296, %300 : vector<8x128xf32>
    %302 = arith.index_cast %281 : i32 to index
    %c0_100 = arith.constant 0 : index
    %303 = vector.load %arg11[%302, %c0_100] : memref<64x128xf32, #tpu.memory_space<vmem>>, vector<8x128xf32>
    tpu.vector_store %arg11[%302, %c0_100], %301 {strides = array<i32>} : memref<64x128xf32, #tpu.memory_space<vmem>>, vector<8x128xf32>,
    %c3_i32_101 = arith.constant 3 : i32
    %c8_i32_102 = arith.constant 8 : i32
    %304 = arith.muli %c3_i32_101, %c8_i32_102 : i32
    %305 = tpu.assume_multiple %304, 8 : i32
    %306 = arith.index_cast %305 : i32 to index
    %c0_103 = arith.constant 0 : index
    %307 = vector.load %arg12[%306, %c0_103] : memref<64x512xf32, #tpu.memory_space<vmem>>, vector<8x512xf32>
    %cst_104 = arith.constant dense<0.000000e+00> : vector<8x512xf32>
    %308 = tpu.matmul %301, %221, %cst_104 {dimension_numbers = #tpu.dot_dimension_numbers<[1], [0], [0], [1], [0, 0, 1, 1], [], []>} : vector<8x128xf32>, vector<128x512xf32>, vector<8x512xf32> -> vector<8x512xf32>
    %309 = arith.addf %307, %308 : vector<8x512xf32>
    %310 = vector.extract_strided_slice %309 {offsets = [0, 0], sizes = [8, 384], strides = [1, 1]} : vector<8x512xf32> to vector<8x384xf32>
    %311 = arith.negf %310 : vector<8x384xf32>
    %312 = math.exp %311 : vector<8x384xf32>
    %cst_105 = arith.constant 1.000000e+00 : f32
    %313 = vector.broadcast %cst_105 : f32 to vector<8x384xf32>
    %314 = arith.addf %313, %312 : vector<8x384xf32>
    %315 = arith.divf %313, %314 : vector<8x384xf32>
    %316 = vector.extract_strided_slice %309 {offsets = [0, 384], sizes = [8, 128], strides = [1, 1]} : vector<8x512xf32> to vector<8x128xf32>
    %317 = math.tanh %316 : vector<8x128xf32>
    %318 = vector.extract_strided_slice %315 {offsets = [0, 0], sizes = [8, 128], strides = [1, 1]} : vector<8x384xf32> to vector<8x128xf32>
    %319 = vector.extract_strided_slice %315 {offsets = [0, 128], sizes = [8, 128], strides = [1, 1]} : vector<8x384xf32> to vector<8x128xf32>
    %320 = vector.extract_strided_slice %315 {offsets = [0, 256], sizes = [8, 128], strides = [1, 1]} : vector<8x384xf32> to vector<8x128xf32>
    %321 = arith.mulf %319, %299 : vector<8x128xf32>
    %322 = arith.mulf %318, %317 : vector<8x128xf32>
    %323 = arith.addf %321, %322 : vector<8x128xf32>
    %324 = math.tanh %323 : vector<8x128xf32>
    %325 = arith.mulf %320, %324 : vector<8x128xf32>
    %326 = arith.index_cast %305 : i32 to index
    %c0_106 = arith.constant 0 : index
    %327 = vector.load %arg11[%326, %c0_106] : memref<64x128xf32, #tpu.memory_space<vmem>>, vector<8x128xf32>
    tpu.vector_store %arg11[%326, %c0_106], %325 {strides = array<i32>} : memref<64x128xf32, #tpu.memory_space<vmem>>, vector<8x128xf32>,
    %c4_i32_107 = arith.constant 4 : i32
    %c8_i32_108 = arith.constant 8 : i32
    %328 = arith.muli %c4_i32_107, %c8_i32_108 : i32
    %329 = tpu.assume_multiple %328, 8 : i32
    %330 = arith.index_cast %329 : i32 to index
    %c0_109 = arith.constant 0 : index
    %331 = vector.load %arg12[%330, %c0_109] : memref<64x512xf32, #tpu.memory_space<vmem>>, vector<8x512xf32>
    %cst_110 = arith.constant dense<0.000000e+00> : vector<8x512xf32>
    %332 = tpu.matmul %325, %221, %cst_110 {dimension_numbers = #tpu.dot_dimension_numbers<[1], [0], [0], [1], [0, 0, 1, 1], [], []>} : vector<8x128xf32>, vector<128x512xf32>, vector<8x512xf32> -> vector<8x512xf32>
    %333 = arith.addf %331, %332 : vector<8x512xf32>
    %334 = vector.extract_strided_slice %333 {offsets = [0, 0], sizes = [8, 384], strides = [1, 1]} : vector<8x512xf32> to vector<8x384xf32>
    %335 = arith.negf %334 : vector<8x384xf32>
    %336 = math.exp %335 : vector<8x384xf32>
    %cst_111 = arith.constant 1.000000e+00 : f32
    %337 = vector.broadcast %cst_111 : f32 to vector<8x384xf32>
    %338 = arith.addf %337, %336 : vector<8x384xf32>
    %339 = arith.divf %337, %338 : vector<8x384xf32>
    %340 = vector.extract_strided_slice %333 {offsets = [0, 384], sizes = [8, 128], strides = [1, 1]} : vector<8x512xf32> to vector<8x128xf32>
    %341 = math.tanh %340 : vector<8x128xf32>
    %342 = vector.extract_strided_slice %339 {offsets = [0, 0], sizes = [8, 128], strides = [1, 1]} : vector<8x384xf32> to vector<8x128xf32>
    %343 = vector.extract_strided_slice %339 {offsets = [0, 128], sizes = [8, 128], strides = [1, 1]} : vector<8x384xf32> to vector<8x128xf32>
    %344 = vector.extract_strided_slice %339 {offsets = [0, 256], sizes = [8, 128], strides = [1, 1]} : vector<8x384xf32> to vector<8x128xf32>
    %345 = arith.mulf %343, %323 : vector<8x128xf32>
    %346 = arith.mulf %342, %341 : vector<8x128xf32>
    %347 = arith.addf %345, %346 : vector<8x128xf32>
    %348 = math.tanh %347 : vector<8x128xf32>
    %349 = arith.mulf %344, %348 : vector<8x128xf32>
    %350 = arith.index_cast %329 : i32 to index
    %c0_112 = arith.constant 0 : index
    %351 = vector.load %arg11[%350, %c0_112] : memref<64x128xf32, #tpu.memory_space<vmem>>, vector<8x128xf32>
    tpu.vector_store %arg11[%350, %c0_112], %349 {strides = array<i32>} : memref<64x128xf32, #tpu.memory_space<vmem>>, vector<8x128xf32>,
    %c5_i32_113 = arith.constant 5 : i32
    %c8_i32_114 = arith.constant 8 : i32
    %352 = arith.muli %c5_i32_113, %c8_i32_114 : i32
    %353 = tpu.assume_multiple %352, 8 : i32
    %354 = arith.index_cast %353 : i32 to index
    %c0_115 = arith.constant 0 : index
    %355 = vector.load %arg12[%354, %c0_115] : memref<64x512xf32, #tpu.memory_space<vmem>>, vector<8x512xf32>
    %cst_116 = arith.constant dense<0.000000e+00> : vector<8x512xf32>
    %356 = tpu.matmul %349, %221, %cst_116 {dimension_numbers = #tpu.dot_dimension_numbers<[1], [0], [0], [1], [0, 0, 1, 1], [], []>} : vector<8x128xf32>, vector<128x512xf32>, vector<8x512xf32> -> vector<8x512xf32>
    %357 = arith.addf %355, %356 : vector<8x512xf32>
    %358 = vector.extract_strided_slice %357 {offsets = [0, 0], sizes = [8, 384], strides = [1, 1]} : vector<8x512xf32> to vector<8x384xf32>
    %359 = arith.negf %358 : vector<8x384xf32>
    %360 = math.exp %359 : vector<8x384xf32>
    %cst_117 = arith.constant 1.000000e+00 : f32
    %361 = vector.broadcast %cst_117 : f32 to vector<8x384xf32>
    %362 = arith.addf %361, %360 : vector<8x384xf32>
    %363 = arith.divf %361, %362 : vector<8x384xf32>
    %364 = vector.extract_strided_slice %357 {offsets = [0, 384], sizes = [8, 128], strides = [1, 1]} : vector<8x512xf32> to vector<8x128xf32>
    %365 = math.tanh %364 : vector<8x128xf32>
    %366 = vector.extract_strided_slice %363 {offsets = [0, 0], sizes = [8, 128], strides = [1, 1]} : vector<8x384xf32> to vector<8x128xf32>
    %367 = vector.extract_strided_slice %363 {offsets = [0, 128], sizes = [8, 128], strides = [1, 1]} : vector<8x384xf32> to vector<8x128xf32>
    %368 = vector.extract_strided_slice %363 {offsets = [0, 256], sizes = [8, 128], strides = [1, 1]} : vector<8x384xf32> to vector<8x128xf32>
    %369 = arith.mulf %367, %347 : vector<8x128xf32>
    %370 = arith.mulf %366, %365 : vector<8x128xf32>
    %371 = arith.addf %369, %370 : vector<8x128xf32>
    %372 = math.tanh %371 : vector<8x128xf32>
    %373 = arith.mulf %368, %372 : vector<8x128xf32>
    %374 = arith.index_cast %353 : i32 to index
    %c0_118 = arith.constant 0 : index
    %375 = vector.load %arg11[%374, %c0_118] : memref<64x128xf32, #tpu.memory_space<vmem>>, vector<8x128xf32>
    tpu.vector_store %arg11[%374, %c0_118], %373 {strides = array<i32>} : memref<64x128xf32, #tpu.memory_space<vmem>>, vector<8x128xf32>,
    %c6_i32_119 = arith.constant 6 : i32
    %c8_i32_120 = arith.constant 8 : i32
    %376 = arith.muli %c6_i32_119, %c8_i32_120 : i32
    %377 = tpu.assume_multiple %376, 8 : i32
    %378 = arith.index_cast %377 : i32 to index
    %c0_121 = arith.constant 0 : index
    %379 = vector.load %arg12[%378, %c0_121] : memref<64x512xf32, #tpu.memory_space<vmem>>, vector<8x512xf32>
    %cst_122 = arith.constant dense<0.000000e+00> : vector<8x512xf32>
    %380 = tpu.matmul %373, %221, %cst_122 {dimension_numbers = #tpu.dot_dimension_numbers<[1], [0], [0], [1], [0, 0, 1, 1], [], []>} : vector<8x128xf32>, vector<128x512xf32>, vector<8x512xf32> -> vector<8x512xf32>
    %381 = arith.addf %379, %380 : vector<8x512xf32>
    %382 = vector.extract_strided_slice %381 {offsets = [0, 0], sizes = [8, 384], strides = [1, 1]} : vector<8x512xf32> to vector<8x384xf32>
    %383 = arith.negf %382 : vector<8x384xf32>
    %384 = math.exp %383 : vector<8x384xf32>
    %cst_123 = arith.constant 1.000000e+00 : f32
    %385 = vector.broadcast %cst_123 : f32 to vector<8x384xf32>
    %386 = arith.addf %385, %384 : vector<8x384xf32>
    %387 = arith.divf %385, %386 : vector<8x384xf32>
    %388 = vector.extract_strided_slice %381 {offsets = [0, 384], sizes = [8, 128], strides = [1, 1]} : vector<8x512xf32> to vector<8x128xf32>
    %389 = math.tanh %388 : vector<8x128xf32>
    %390 = vector.extract_strided_slice %387 {offsets = [0, 0], sizes = [8, 128], strides = [1, 1]} : vector<8x384xf32> to vector<8x128xf32>
    %391 = vector.extract_strided_slice %387 {offsets = [0, 128], sizes = [8, 128], strides = [1, 1]} : vector<8x384xf32> to vector<8x128xf32>
    %392 = vector.extract_strided_slice %387 {offsets = [0, 256], sizes = [8, 128], strides = [1, 1]} : vector<8x384xf32> to vector<8x128xf32>
    %393 = arith.mulf %391, %371 : vector<8x128xf32>
    %394 = arith.mulf %390, %389 : vector<8x128xf32>
    %395 = arith.addf %393, %394 : vector<8x128xf32>
    %396 = math.tanh %395 : vector<8x128xf32>
    %397 = arith.mulf %392, %396 : vector<8x128xf32>
    %398 = arith.index_cast %377 : i32 to index
    %c0_124 = arith.constant 0 : index
    %399 = vector.load %arg11[%398, %c0_124] : memref<64x128xf32, #tpu.memory_space<vmem>>, vector<8x128xf32>
    tpu.vector_store %arg11[%398, %c0_124], %397 {strides = array<i32>} : memref<64x128xf32, #tpu.memory_space<vmem>>, vector<8x128xf32>,
    %c7_i32_125 = arith.constant 7 : i32
    %c8_i32_126 = arith.constant 8 : i32
    %400 = arith.muli %c7_i32_125, %c8_i32_126 : i32
    %401 = tpu.assume_multiple %400, 8 : i32
    %402 = arith.index_cast %401 : i32 to index
    %c0_127 = arith.constant 0 : index
    %403 = vector.load %arg12[%402, %c0_127] : memref<64x512xf32, #tpu.memory_space<vmem>>, vector<8x512xf32>
    %cst_128 = arith.constant dense<0.000000e+00> : vector<8x512xf32>
    %404 = tpu.matmul %397, %221, %cst_128 {dimension_numbers = #tpu.dot_dimension_numbers<[1], [0], [0], [1], [0, 0, 1, 1], [], []>} : vector<8x128xf32>, vector<128x512xf32>, vector<8x512xf32> -> vector<8x512xf32>
    %405 = arith.addf %403, %404 : vector<8x512xf32>
    %406 = vector.extract_strided_slice %405 {offsets = [0, 0], sizes = [8, 384], strides = [1, 1]} : vector<8x512xf32> to vector<8x384xf32>
    %407 = arith.negf %406 : vector<8x384xf32>
    %408 = math.exp %407 : vector<8x384xf32>
    %cst_129 = arith.constant 1.000000e+00 : f32
    %409 = vector.broadcast %cst_129 : f32 to vector<8x384xf32>
    %410 = arith.addf %409, %408 : vector<8x384xf32>
    %411 = arith.divf %409, %410 : vector<8x384xf32>
    %412 = vector.extract_strided_slice %405 {offsets = [0, 384], sizes = [8, 128], strides = [1, 1]} : vector<8x512xf32> to vector<8x128xf32>
    %413 = math.tanh %412 : vector<8x128xf32>
    %414 = vector.extract_strided_slice %411 {offsets = [0, 0], sizes = [8, 128], strides = [1, 1]} : vector<8x384xf32> to vector<8x128xf32>
    %415 = vector.extract_strided_slice %411 {offsets = [0, 128], sizes = [8, 128], strides = [1, 1]} : vector<8x384xf32> to vector<8x128xf32>
    %416 = vector.extract_strided_slice %411 {offsets = [0, 256], sizes = [8, 128], strides = [1, 1]} : vector<8x384xf32> to vector<8x128xf32>
    %417 = arith.mulf %415, %395 : vector<8x128xf32>
    %418 = arith.mulf %414, %413 : vector<8x128xf32>
    %419 = arith.addf %417, %418 : vector<8x128xf32>
    %420 = math.tanh %419 : vector<8x128xf32>
    %421 = arith.mulf %416, %420 : vector<8x128xf32>
    %422 = arith.index_cast %401 : i32 to index
    %c0_130 = arith.constant 0 : index
    %423 = vector.load %arg11[%422, %c0_130] : memref<64x128xf32, #tpu.memory_space<vmem>>, vector<8x128xf32>
    tpu.vector_store %arg11[%422, %c0_130], %421 {strides = array<i32>} : memref<64x128xf32, #tpu.memory_space<vmem>>, vector<8x128xf32>,
    %c8_i32_131 = arith.constant 8 : i32
    %c1_132 = arith.constant 1 : index
    %c0_133 = arith.constant 0 : index
    %c0_134 = arith.constant 0 : index
    %424 = vector.load %arg9[%c1_132, %c0_133, %c0_134] : memref<2x8x128xf32, #tpu.memory_space<vmem>>, vector<1x8x128xf32>
    %425 = vector.shape_cast %424 : vector<1x8x128xf32> to vector<8x128xf32>
    %426 = vector.shape_cast %421 : vector<8x128xf32> to vector<1x8x128xf32>
    tpu.vector_store %arg9[%c1_132, %c0_133, %c0_134], %426 {strides = array<i32>} : memref<2x8x128xf32, #tpu.memory_space<vmem>>, vector<1x8x128xf32>,
    %c1_135 = arith.constant 1 : index
    %c0_136 = arith.constant 0 : index
    %c0_137 = arith.constant 0 : index
    %427 = vector.load %arg10[%c1_135, %c0_136, %c0_137] : memref<2x8x128xf32, #tpu.memory_space<vmem>>, vector<1x8x128xf32>
    %428 = vector.shape_cast %427 : vector<1x8x128xf32> to vector<8x128xf32>
    %429 = vector.shape_cast %419 : vector<8x128xf32> to vector<1x8x128xf32>
    tpu.vector_store %arg10[%c1_135, %c0_136, %c0_137], %429 {strides = array<i32>} : memref<2x8x128xf32, #tpu.memory_space<vmem>>, vector<1x8x128xf32>,
    %c0_138 = arith.constant 0 : index
    %c0_139 = arith.constant 0 : index
    %430 = vector.load %arg6[%c0_138, %c0_139] : memref<128x128xf32, #tpu.memory_space<vmem>>, vector<128x128xf32>
    %cst_140 = arith.constant dense<0.000000e+00> : vector<8x128xf32>
    %431 = tpu.matmul %421, %430, %cst_140 {dimension_numbers = #tpu.dot_dimension_numbers<[1], [0], [0], [1], [0, 0, 1, 1], [], []>} : vector<8x128xf32>, vector<128x128xf32>, vector<8x128xf32> -> vector<8x128xf32>
    %c0_141 = arith.constant 0 : index
    %c0_142 = arith.constant 0 : index
    %432 = vector.load %arg7[%c0_141, %c0_142] : memref<1x128xf32, #tpu.memory_space<vmem>>, vector<1x128xf32>
    %433 = vector.broadcast %432 : vector<1x128xf32> to vector<8x128xf32>
    %434 = arith.addf %431, %433 : vector<8x128xf32>
    %c0_143 = arith.constant 0 : index
    %c0_144 = arith.constant 0 : index
    %435 = vector.load %arg8[%c0_143, %c0_144] : memref<8x128xf32, #tpu.memory_space<vmem>>, vector<8x128xf32>
    tpu.vector_store %arg8[%c0_143, %c0_144], %434 {strides = array<i32>} : memref<8x128xf32, #tpu.memory_space<vmem>>, vector<8x128xf32>,
    return
  }
}

</mosaic_0001>

<bundles_post_ra>
// kernel: tpu_custom_call.1
= control target key start
LH: loop header
LB: loop body
LE: loop exit
PB: predicated region body
PF: predicated region fallthrough
CT: control target
= control target key end

     0   :  { %16 = vsyncpa [#allocation5], 0  ;;  %s5885_s0 = inlined_call_operand.hbm [shape: f32[64,128], index: 0, kind: input, shape index: {}]   ;;  %s5886_s1 = inlined_call_operand.hbm [shape: f32[2,8,128], index: 1, kind: input, shape index: {}, may-alias: {1,9}]   ;;  %s5887_s2 = inlined_call_operand.hbm [shape: f32[2,8,128], index: 2, kind: input, shape index: {}, may-alias: {2,10}]   ;;  %s5888_s3 = inlined_call_operand.hbm [shape: bf16[2,128,512], index: 3, kind: input, shape index: {}]   ;;  %s5889_s4 = inlined_call_operand.hbm [shape: bf16[2,128,512], index: 4, kind: input, shape index: {}]   ;;  %s5890_s5 = inlined_call_operand.vmem [shape: f32[2,1,512], index: 5, kind: input, shape index: {}]   ;;  %s5891_s6 = inlined_call_operand.hbm [shape: f32[128,128], index: 6, kind: input, shape index: {}]   ;;  %s5892_s7 = inlined_call_operand.vmem [shape: f32[1,128], index: 7, kind: input, shape index: {}]   ;;  %s5893_s8 = inlined_call_operand.hbm [shape: f32[8,128], index: 8, kind: output, shape index: {0}]   ;;  %s5894_s9 = inlined_call_operand.hbm [shape: f32[2,8,128], index: 9, kind: output, shape index: {1}, may-alias: {1,9}]   ;;  %s5895_s10 = inlined_call_operand.hbm [shape: f32[2,8,128], index: 10, kind: output, shape index: {2}, may-alias: {2,10}]  }
   0x1   :  { %17 = vsyncpa [#allocation8], 0 }
   0x2   :  { %18 = vsyncpa [#allocation11], 0 }
   0x3   :  { %19 = vsyncpa [#allocation14], 0 }
   0x4   :  { %20 = vsyncpa [#allocation6], 0 }
   0x5   :  { %21 = vsyncpa [#allocation17], 0  ;;  %s39_s15 = sshll.u32 %s5886_s1, 4  ;;  %s4068_s16 = smov [#allocation7]   ;;  %s40_s15 = int_to_ptr.hbm [resolvable:$true] %s39_s15 }
   0x6   :  { %s41_s17 = sshll.u32 %s4068_s16, 4  ;;  %s65_s20 = sshll.u32 %s5888_s3, 4  ;;  %s42_s17 = int_to_ptr.vmem [resolvable:$true] %s41_s17  ;;  %s66_s20 = int_to_ptr.hbm [resolvable:$true] %s65_s20 }
   0x7   :  { %s4069_s21 = smov 128   ;;  %s4070_s22 = smov 8  }
   0x8   :  { %47 = dma.hbm_to_vmem [thread:$0]  %s40_s15, 256, %s42_s17, [#allocation8], %s4069_s21, %s4069_s21, %s4070_s22  }
   0x9   :  { %s4071_s23 = smov [#allocation10]   ;;  %s4072_s25 = smov 256  }
   0xa   :  { %s67_s24 = sshll.u32 %s4071_s23, 4  ;;  %s4073_s1 = smov 16   ;;  %s68_s24 = int_to_ptr.vmem [resolvable:$true] %s67_s24 }
   0xb   :  { %73 = dma.hbm_to_vmem [thread:$0]  %s66_s20, 8192, %s68_s24, [#allocation11], %s4072_s25, %s4072_s25, %s4073_s1  }
   0xc   :  { %s26_s28 = sshll.u32 %s5885_s0, 4  ;;  %s4074_s29 = smov [#allocation4]   ;;  %s27_s28 = int_to_ptr.hbm [resolvable:$true] %s26_s28 }
   0xd   :  { %s28_s3 = sshll.u32 %s4074_s29, 4  ;;  %s52_s12 = sshll.u32 %s5887_s2, 4  ;;  %s29_s3 = int_to_ptr.vmem [resolvable:$true] %s28_s3  ;;  %s53_s12 = int_to_ptr.hbm [resolvable:$true] %s52_s12 }
   0xe   :  { %34 = dma.hbm_to_vmem [thread:$0]  %s27_s28, 1024, %s29_s3, [#allocation5], %s4069_s21, %s4069_s21, %s4070_s22  }
   0xf   :  { %s4075_s13 = smov [#allocation9]   ;;  %s78_s17 = sshll.u32 %s5889_s4, 4  ;;  %s79_s17 = int_to_ptr.hbm [resolvable:$true] %s78_s17 }
  0x10   :  { %s54_s14 = sshll.u32 %s4075_s13, 4  ;;  %s93_s2 = sshll.u32 %s5891_s6, 4  ;;  %s55_s14 = int_to_ptr.vmem [resolvable:$true] %s54_s14  ;;  %s94_s2 = int_to_ptr.hbm [resolvable:$true] %s93_s2 }
  0x11   :  { %60 = dma.hbm_to_vmem [thread:$0]  %s53_s12, 256, %s55_s14, [#allocation8], %s4069_s21, %s4069_s21, %s4070_s22  }
  0x12   :  { %s4076_s19 = smov [#allocation12]   ;;  %s4077_s23 = smov [#allocation13]  }
  0x13   :  { %s80_s20 = sshll.u32 %s4076_s19, 4  ;;  %s95_s24 = sshll.u32 %s4077_s23, 4  ;;  %s81_s20 = int_to_ptr.vmem [resolvable:$true] %s80_s20  ;;  %s96_s24 = int_to_ptr.vmem [resolvable:$true] %s95_s24 }
  0x14   :  { %86 = dma.hbm_to_vmem [thread:$0]  %s79_s17, 8192, %s81_s20, [#allocation11], %s4072_s25, %s4072_s25, %s4073_s1  }
  0x15   :  { %101 = dma.hbm_to_vmem [thread:$0]  %s94_s2, 2048, %s96_s24, [#allocation14], %s4069_s21, %s4069_s21, %s4070_s22  }
  0x16   :  { %4056 = dma.done.wait [#allocation5], 1024  }
  0x17   :  { %4057 = vsyncadd [#allocation5], 4294966272 }
  0x18   :  { %4058 = dma.done.wait [#allocation8], 512  }
  0x19   :  { %4059 = vsyncadd [#allocation8], 4294966784 }
  0x1a   :  { %4060 = dma.done.wait [#allocation11], 16384  }
  0x1b   :  { %4061 = vsyncadd [#allocation11], 4294950912 }
  0x1c   :  { %4062 = dma.done.wait [#allocation14], 2048  }
  0x1d   :  { %4063 = vsyncadd [#allocation14], 4294965248  ;;  %v166_v0 = vld [vmem:[#allocation10 + $0xf0] sm:$0xff]  ;;  %v167_v1 = vld [vmem:[#allocation10 + $0xf8] sm:$0xff]  ;;  %s3476_s29 = sshll.u32 %s5894_s9, 4  ;;  %s4079_s3 = smov [#allocation18]   ;;  %s3477_s29 = int_to_ptr.hbm [resolvable:$true] %s3476_s29 }
  0x1e   :  { %v164_v2 = vld [vmem:[#allocation10 + $0xe0] sm:$0xff]  ;;  %v228_v3 = vunpack.c.l.bf16 %v166_v0  ;;  %v229_v4 = vunpack.c.h.bf16 %v166_v0  ;;  %v230_v5 = vunpack.c.l.bf16 %v167_v1  ;;  %v231_v6 = vunpack.c.h.bf16 %v167_v1  ;;  %v165_v7 = vld [vmem:[#allocation10 + $0xe8] sm:$0xff]  ;;  %v162_v8 = vld [vmem:[#allocation10 + $0xd0] sm:$0xff]  ;;  %s3487_s30 = sshll.u32 %s4079_s3, 4  ;;  %s3489_s13 = sshll.u32 %s5895_s10, 4  ;;  %s3488_s30 = int_to_ptr.vmem [resolvable:$true] %s3487_s30  ;;  %s3490_s13 = int_to_ptr.hbm [resolvable:$true] %s3489_s13 }
  0x1f   :  { %v163_v9 = vld [vmem:[#allocation10 + $0xd8] sm:$0xff]  ;;  %v224_v10 = vunpack.c.l.bf16 %v164_v2  ;;  %v225_v11 = vunpack.c.h.bf16 %v164_v2  ;;  %v226_v12 = vunpack.c.l.bf16 %v165_v7  ;;  %v227_v13 = vunpack.c.h.bf16 %v165_v7  ;;  %v160_v14 = vld [vmem:[#allocation10 + $0xc0] sm:$0xff]  ;;  %v161_v17 = vld [vmem:[#allocation10 + $0xc8] sm:$0xff]  ;;  %s4080_s15 = smov [#allocation15]   ;;  %s3466_s18 = sshll.u32 %s5893_s8, 4  ;;  %s3467_s18 = int_to_ptr.hbm [resolvable:$true] %s3466_s18 }
  0x20   :  { %338 = vmatpush.msra.mxu0 %v228_v3  ;;  %379 = vmatpush.msra.mxu1 %v229_v4  ;;  %v220_v15 = vunpack.c.l.bf16 %v162_v8  ;;  %v221_v16 = vunpack.c.h.bf16 %v162_v8  ;;  %v222_v18 = vunpack.c.l.bf16 %v163_v9  ;;  %v223_v19 = vunpack.c.h.bf16 %v163_v9  ;;  %v158_v20 = vld [vmem:[#allocation10 + $0xb0] sm:$0xff]  ;;  %v159_v23 = vld [vmem:[#allocation10 + $0xb8] sm:$0xff]  ;;  %v156_v26 = vld [vmem:[#allocation10 + $0xa0] sm:$0xff]  ;;  %s3464_s16 = sshll.u32 %s4080_s15, 4  ;;  %s3465_s16 = int_to_ptr.vmem [resolvable:$true] %s3464_s16 }
  0x21   :  { %420 = vmatpush.msra.mxu2 %v230_v5  ;;  %461 = vmatpush.msra.mxu3 %v231_v6  ;;  %v216_v21 = vunpack.c.l.bf16 %v160_v14  ;;  %v217_v22 = vunpack.c.h.bf16 %v160_v14  ;;  %v218_v24 = vunpack.c.l.bf16 %v161_v17  ;;  %v219_v25 = vunpack.c.h.bf16 %v161_v17  ;;  %v157_v29 = vld [vmem:[#allocation10 + $0xa8] sm:$0xff]  ;;  %v154_v32 = vld [vmem:[#allocation10 + $0x90] sm:$0xff]  ;;  %v155_v35 = vld [vmem:[#allocation10 + $0x98] sm:$0xff] }
  0x22   :  { %339 = vmatpush.msra.mxu0 %v224_v10  ;;  %380 = vmatpush.msra.mxu1 %v225_v11  ;;  %v212_v27 = vunpack.c.l.bf16 %v158_v20  ;;  %v213_v28 = vunpack.c.h.bf16 %v158_v20  ;;  %v214_v30 = vunpack.c.l.bf16 %v159_v23  ;;  %v215_v31 = vunpack.c.h.bf16 %v159_v23  ;;  %v152_v38 = vld [vmem:[#allocation10 + $0x80] sm:$0xff]  ;;  %v153_v41 = vld [vmem:[#allocation10 + $0x88] sm:$0xff]  ;;  %v150_v44 = vld [vmem:[#allocation10 + $0x70] sm:$0xff] }
  0x23   :  { %421 = vmatpush.msra.mxu2 %v226_v12  ;;  %462 = vmatpush.msra.mxu3 %v227_v13  ;;  %v208_v33 = vunpack.c.l.bf16 %v156_v26  ;;  %v209_v34 = vunpack.c.h.bf16 %v156_v26  ;;  %v210_v36 = vunpack.c.l.bf16 %v157_v29  ;;  %v211_v37 = vunpack.c.h.bf16 %v157_v29  ;;  %v151_v47 = vld [vmem:[#allocation10 + $0x78] sm:$0xff]  ;;  %v148_v50 = vld [vmem:[#allocation10 + $0x60] sm:$0xff]  ;;  %v149_v53 = vld [vmem:[#allocation10 + $0x68] sm:$0xff] }
  0x24   :  { %340 = vmatpush.msra.mxu0 %v220_v15  ;;  %381 = vmatpush.msra.mxu1 %v221_v16  ;;  %v204_v39 = vunpack.c.l.bf16 %v154_v32  ;;  %v205_v40 = vunpack.c.h.bf16 %v154_v32  ;;  %v206_v42 = vunpack.c.l.bf16 %v155_v35  ;;  %v207_v43 = vunpack.c.h.bf16 %v155_v35  ;;  %v146_v56 = vld [vmem:[#allocation10 + $0x50] sm:$0xff]  ;;  %v147_v59 = vld [vmem:[#allocation10 + $0x58] sm:$0xff]  ;;  %v144_v62 = vld [vmem:[#allocation10 + $0x40] sm:$0xff] }
  0x25   :  { %422 = vmatpush.msra.mxu2 %v222_v18  ;;  %463 = vmatpush.msra.mxu3 %v223_v19  ;;  %v200_v45 = vunpack.c.l.bf16 %v152_v38  ;;  %v201_v46 = vunpack.c.h.bf16 %v152_v38  ;;  %v202_v48 = vunpack.c.l.bf16 %v153_v41  ;;  %v203_v49 = vunpack.c.h.bf16 %v153_v41  ;;  %v145_v1 = vld [vmem:[#allocation10 + $0x48] sm:$0xff]  ;;  %v142_v4 = vld [vmem:[#allocation10 + $0x30] sm:$0xff]  ;;  %v143_v7 = vld [vmem:[#allocation10 + $0x38] sm:$0xff] }
  0x26   :  { %341 = vmatpush.msra.mxu0 %v216_v21  ;;  %382 = vmatpush.msra.mxu1 %v217_v22  ;;  %v196_v51 = vunpack.c.l.bf16 %v150_v44  ;;  %v197_v52 = vunpack.c.h.bf16 %v150_v44  ;;  %v198_v54 = vunpack.c.l.bf16 %v151_v47  ;;  %v199_v55 = vunpack.c.h.bf16 %v151_v47  ;;  %v140_v10 = vld [vmem:[#allocation10 + $0x20] sm:$0xff]  ;;  %v141_v13 = vld [vmem:[#allocation10 + $0x28] sm:$0xff]  ;;  %v138_v16 = vld [vmem:[#allocation10 + $0x10] sm:$0xff] }
  0x27   :  { %423 = vmatpush.msra.mxu2 %v218_v24  ;;  %464 = vmatpush.msra.mxu3 %v219_v25  ;;  %v192_v57 = vunpack.c.l.bf16 %v148_v50  ;;  %v193_v58 = vunpack.c.h.bf16 %v148_v50  ;;  %v194_v60 = vunpack.c.l.bf16 %v149_v53  ;;  %v195_v61 = vunpack.c.h.bf16 %v149_v53  ;;  %v139_v19 = vld [vmem:[#allocation10 + $0x18] sm:$0xff]  ;;  %v136_v22 = vld [vmem:[#allocation10] sm:$0xff]  ;;  %v137_v25 = vld [vmem:[#allocation10 + $0x8] sm:$0xff] }
  0x28   :  { %342 = vmatpush.msra.mxu0 %v212_v27  ;;  %383 = vmatpush.msra.mxu1 %v213_v28  ;;  %v188_v63 = vunpack.c.l.bf16 %v146_v56  ;;  %v189_v0 = vunpack.c.h.bf16 %v146_v56  ;;  %v190_v2 = vunpack.c.l.bf16 %v147_v59  ;;  %v191_v3 = vunpack.c.h.bf16 %v147_v59  ;;  %v262_v32 = vld [vmem:[#allocation12 + $0xf0] sm:$0xff]  ;;  %v260_v35 = vld [vmem:[#allocation12 + $0xe0] sm:$0xff]  ;;  %v261_v38 = vld [vmem:[#allocation12 + $0xe8] sm:$0xff] }
  0x29   :  { %424 = vmatpush.msra.mxu2 %v214_v30  ;;  %465 = vmatpush.msra.mxu3 %v215_v31  ;;  %v184_v5 = vunpack.c.l.bf16 %v144_v62  ;;  %v185_v6 = vunpack.c.h.bf16 %v144_v62  ;;  %v186_v8 = vunpack.c.l.bf16 %v145_v1  ;;  %v187_v9 = vunpack.c.h.bf16 %v145_v1  ;;  %v259_v44 = vld [vmem:[#allocation12 + $0xd8] sm:$0xff]  ;;  %v129_v53 = vld [vmem:[#allocation4 + $0x8] sm:$0xff]  ;;  %v252_v59 = vld [vmem:[#allocation12 + $0xa0] sm:$0xff] }
  0x2a   :  { %343 = vmatpush.msra.mxu0 %v208_v33  ;;  %384 = vmatpush.msra.mxu1 %v209_v34  ;;  %v180_v11 = vunpack.c.l.bf16 %v142_v4  ;;  %v181_v12 = vunpack.c.h.bf16 %v142_v4  ;;  %v182_v14 = vunpack.c.l.bf16 %v143_v7  ;;  %v183_v15 = vunpack.c.h.bf16 %v143_v7  ;;  %v263_v33 = vld [vmem:[#allocation12 + $0xf8] sm:$0xff]  ;;  %v128_v34 = vld [vmem:[#allocation4] sm:$0xff]  ;;  %v250_v4 = vld [vmem:[#allocation12 + $0x90] sm:$0xff] }
  0x2b   :  { %425 = vmatpush.msra.mxu2 %v210_v36  ;;  %466 = vmatpush.msra.mxu3 %v211_v37  ;;  %v176_v17 = vunpack.c.l.bf16 %v140_v10  ;;  %v177_v18 = vunpack.c.h.bf16 %v140_v10  ;;  %v178_v20 = vunpack.c.l.bf16 %v141_v13  ;;  %v179_v21 = vunpack.c.h.bf16 %v141_v13  ;;  %v251_v7 = vld [vmem:[#allocation12 + $0x98] sm:$0xff] }
  0x2c   :  { %344 = vmatpush.msra.mxu0 %v204_v39  ;;  %385 = vmatpush.msra.mxu1 %v205_v40  ;;  %v172_v23 = vunpack.c.l.bf16 %v138_v16  ;;  %v173_v24 = vunpack.c.h.bf16 %v138_v16  ;;  %v174_v26 = vunpack.c.l.bf16 %v139_v19  ;;  %v175_v27 = vunpack.c.h.bf16 %v139_v19  ;;  %v258_v40 = vld [vmem:[#allocation12 + $0xd0] sm:$0xff] }
  0x2d   :  { %426 = vmatpush.msra.mxu2 %v206_v42  ;;  %467 = vmatpush.msra.mxu3 %v207_v43  ;;  %v168_v28 = vunpack.c.l.bf16 %v136_v22  ;;  %v169_v29 = vunpack.c.h.bf16 %v136_v22  ;;  %v170_v30 = vunpack.c.l.bf16 %v137_v25  ;;  %v171_v31 = vunpack.c.h.bf16 %v137_v25 }
  0x2e   :  { %345 = vmatpush.msra.mxu0 %v200_v45  ;;  %386 = vmatpush.msra.mxu1 %v201_v46  ;;  %v4166_v36 = vunpack.c.l.bf16 %v262_v32  ;;  %v4168_v37 = vunpack.c.h.bf16 %v262_v32  ;;  %v4170_v39 = vunpack.c.l.bf16 %v263_v33  ;;  %v4172_v41 = vunpack.c.h.bf16 %v263_v33  ;;  %v240_v33 = vld [vmem:[#allocation12 + $0x40] sm:$0xff] }
  0x2f   :  { %427 = vmatpush.msra.mxu2 %v202_v48  ;;  %468 = vmatpush.msra.mxu3 %v203_v49  ;;  %v4174_v42 = vunpack.c.l.bf16 %v260_v35  ;;  %v4176_v43 = vunpack.c.h.bf16 %v260_v35  ;;  %v4178_v45 = vunpack.c.l.bf16 %v261_v38  ;;  %v4180_v46 = vunpack.c.h.bf16 %v261_v38  ;;  %v256_v49 = vld [vmem:[#allocation12 + $0xc0] sm:$0xff] }
  0x30   :  { %346 = vmatpush.msra.mxu0 %v196_v51  ;;  %387 = vmatpush.msra.mxu1 %v197_v52  ;;  %v4184_v47 = vunpack.c.l.bf16 %v258_v40  ;;  %v4186_v48 = vunpack.c.h.bf16 %v258_v40  ;;  %v4189_v50 = vunpack.c.l.bf16 %v259_v44  ;;  %v4192_v51 = vunpack.c.h.bf16 %v259_v44  ;;  %v257_v52 = vld [vmem:[#allocation12 + $0xc8] sm:$0xff] }
  0x31   :  { %428 = vmatpush.msra.mxu2 %v198_v54  ;;  %469 = vmatpush.msra.mxu3 %v199_v55  ;;  %v254_v54 = vld [vmem:[#allocation12 + $0xb0] sm:$0xff]  ;;  %v4200_v55 = vunpack.c.l.bf16 %v256_v49  ;;  %v4202_v56 = vunpack.c.h.bf16 %v256_v49  ;;  %v4236_v10 = vunpack.c.l.bf16 %v250_v4  ;;  %v4241_v13 = vunpack.c.l.bf16 %v251_v7  ;;  %v241_v40 = vld [vmem:[#allocation12 + $0x48] sm:$0xff] }
  0x32   :  { %347 = vmatpush.msra.mxu0 %v192_v57  ;;  %388 = vmatpush.msra.mxu1 %v193_v58  ;;  %v255_v57 = vld [vmem:[#allocation12 + $0xb8] sm:$0xff]  ;;  %v4205_v58 = vunpack.c.l.bf16 %v257_v52  ;;  %v4212_v62 = vunpack.c.h.bf16 %v254_v54 }
  0x33   :  { %429 = vmatpush.msra.mxu2 %v194_v60  ;;  %470 = vmatpush.msra.mxu3 %v195_v61  ;;  %v4208_v60 = vunpack.c.h.bf16 %v257_v52  ;;  %v4210_v61 = vunpack.c.l.bf16 %v254_v54  ;;  %v4216_v1 = vunpack.c.h.bf16 %v255_v57  ;;  %v4292_v52 = vunpack.c.l.bf16 %v240_v33  ;;  %v238_v54 = vld [vmem:[#allocation12 + $0x30] sm:$0xff] }
  0x34   :  { %348 = vmatpush.msra.mxu0 %v188_v63  ;;  %389 = vmatpush.msra.mxu1 %v189_v0  ;;  %v253_v63 = vld [vmem:[#allocation12 + $0xa8] sm:$0xff]  ;;  %v4214_v0 = vunpack.c.l.bf16 %v255_v57  ;;  %v4297_v57 = vunpack.c.l.bf16 %v241_v40 }
  0x35   :  { %430 = vmatpush.msra.mxu2 %v190_v2  ;;  %471 = vmatpush.msra.mxu3 %v191_v3  ;;  %v4220_v2 = vunpack.c.l.bf16 %v252_v59  ;;  %v4222_v3 = vunpack.c.h.bf16 %v252_v59  ;;  %6058 = vst [vmem:[#allocation31_spill] sm:$0xff] %v4292_v52  ;;  %v4300_v59 = vunpack.c.h.bf16 %v241_v40 }
  0x36   :  { %349 = vmatpush.msra.mxu0 %v184_v5  ;;  %390 = vmatpush.msra.mxu1 %v185_v6  ;;  %v4225_v5 = vunpack.c.l.bf16 %v253_v63  ;;  %v4228_v6 = vunpack.c.h.bf16 %v253_v63  ;;  %6060 = vst [vmem:[#allocation33_spill] sm:$0xff] %v4297_v57  ;;  %v239_v63 = vld [vmem:[#allocation12 + $0x38] sm:$0xff] }
  0x37   :  { %431 = vmatpush.msra.mxu2 %v186_v8  ;;  %472 = vmatpush.msra.mxu3 %v187_v9  ;;  %v130_v8 = vld [vmem:[#allocation4 + $0x10] sm:$0xff]  ;;  %v248_v9 = vld [vmem:[#allocation12 + $0x80] sm:$0xff]  ;;  %6061 = vst [vmem:[#allocation34_spill] sm:$0xff] %v4300_v59 }
  0x38   :  { %350 = vmatpush.msra.mxu0 %v180_v11  ;;  %391 = vmatpush.msra.mxu1 %v181_v12  ;;  %v4238_v11 = vunpack.c.h.bf16 %v250_v4  ;;  %v249_v12 = vld [vmem:[#allocation12 + $0x88] sm:$0xff]  ;;  %v4246_v16 = vunpack.c.l.bf16 %v248_v9  ;;  %v132_v4 = vld [vmem:[#allocation4 + $0x20] sm:$0xff] }
  0x39   :  { %432 = vmatpush.msra.mxu2 %v182_v14  ;;  %473 = vmatpush.msra.mxu3 %v183_v15  ;;  %v246_v14 = vld [vmem:[#allocation12 + $0x70] sm:$0xff]  ;;  %v4244_v15 = vunpack.c.h.bf16 %v251_v7  ;;  %v4250_v19 = vunpack.c.l.bf16 %v249_v12  ;;  %v236_v7 = vld [vmem:[#allocation12 + $0x20] sm:$0xff] }
  0x3a   :  { %351 = vmatpush.msra.mxu0 %v176_v17  ;;  %392 = vmatpush.msra.mxu1 %v177_v18  ;;  %v4248_v17 = vunpack.c.h.bf16 %v248_v9  ;;  %v247_v18 = vld [vmem:[#allocation12 + $0x78] sm:$0xff]  ;;  %v4258_v22 = vunpack.c.h.bf16 %v246_v14  ;;  %v4310_v9 = vunpack.c.h.bf16 %v238_v54 }
  0x3b   :  { %433 = vmatpush.msra.mxu2 %v178_v20  ;;  %474 = vmatpush.msra.mxu3 %v179_v21  ;;  %v4252_v20 = vunpack.c.h.bf16 %v249_v12  ;;  %v4256_v21 = vunpack.c.l.bf16 %v246_v14  ;;  %v4264_v25 = vunpack.c.h.bf16 %v247_v18  ;;  %v237_v12 = vld [vmem:[#allocation12 + $0x28] sm:$0xff]  ;;  %v4313_v14 = vunpack.c.l.bf16 %v239_v63 }
  0x3c   :  { %352 = vmatpush.msra.mxu0 %v172_v23  ;;  %393 = vmatpush.msra.mxu1 %v173_v24  ;;  %v244_v23 = vld [vmem:[#allocation12 + $0x60] sm:$0xff]  ;;  %v4261_v24 = vunpack.c.l.bf16 %v247_v18  ;;  %6063 = vst [vmem:[#allocation36_spill] sm:$0xff] %v4310_v9  ;;  %v234_v18 = vld [vmem:[#allocation12 + $0x10] sm:$0xff] }
  0x3d   :  { %434 = vmatpush.msra.mxu2 %v174_v26  ;;  %475 = vmatpush.msra.mxu3 %v175_v27  ;;  %v245_v26 = vld [vmem:[#allocation12 + $0x68] sm:$0xff]  ;;  %v131_v27 = vld [vmem:[#allocation4 + $0x18] sm:$0xff]  ;;  %6064 = vst [vmem:[#allocation37_spill] sm:$0xff] %v4313_v14  ;;  %v4328_v40 = vunpack.c.l.bf16 %v234_v18 }
  0x3e   :  { %353 = vmatpush.msra.mxu0 %v168_v28  ;;  %394 = vmatpush.msra.mxu1 %v169_v29  ;;  %v242_v28 = vld [vmem:[#allocation12 + $0x50] sm:$0xff]  ;;  %v4272_v29 = vunpack.c.l.bf16 %v244_v23  ;;  %v4277_v32 = vunpack.c.l.bf16 %v245_v26 }
  0x3f   :  { %435 = vmatpush.msra.mxu2 %v170_v30  ;;  %476 = vmatpush.msra.mxu3 %v171_v31  ;;  %v4274_v30 = vunpack.c.h.bf16 %v244_v23  ;;  %v243_v31 = vld [vmem:[#allocation12 + $0x58] sm:$0xff]  ;;  %v4282_v35 = vunpack.c.l.bf16 %v242_v28  ;;  %v4284_v38 = vunpack.c.h.bf16 %v242_v28  ;;  %v4316_v23 = vunpack.c.h.bf16 %v239_v63  ;;  %6070 = vst [vmem:[#allocation43_spill] sm:$0xff] %v4328_v40  ;;  %v232_v63 = vld [vmem:[#allocation12] sm:$0xff] }
  0x40   :  { %354 = vmatmul.f32.vlgmr.msra.gmra.mxu0 %v128_v34  ;;  %395 = vmatmul.f32.vlgmr.msra.gmra.mxu1 %v128_v34  ;;  %6052 = vst [vmem:[#allocation25_spill] sm:$0xff] %v4277_v32  ;;  %v4286_v44 = vunpack.c.l.bf16 %v243_v31  ;;  %v4288_v49 = vunpack.c.h.bf16 %v243_v31  ;;  %v235_v28 = vld [vmem:[#allocation12 + $0x18] sm:$0xff]  ;;  %v4322_v31 = vunpack.c.l.bf16 %v237_v12 }
  0x41   :  { %436 = vmatmul.f32.vlgmr.msra.gmra.mxu2 %v128_v34  ;;  %477 = vmatmul.f32.vlgmr.msra.gmra.mxu3 %v128_v34  ;;  %v4280_v34 = vunpack.c.h.bf16 %v245_v26  ;;  %6054 = vst [vmem:[#allocation27_spill] sm:$0xff] %v4282_v35  ;;  %v4318_v26 = vunpack.c.l.bf16 %v236_v7 }
  0x42   :  { %543 = vmatpush.msrb.mxu0 %v4166_v36  ;;  %563 = vmatpush.msrb.mxu1 %v4168_v37  ;;  %6055 = vst [vmem:[#allocation28_spill] sm:$0xff] %v4284_v38 }
  0x43   :  { %583 = vmatpush.msrb.mxu2 %v4170_v39  ;;  %603 = vmatpush.msrb.mxu3 %v4172_v41  ;;  %6053 = vst [vmem:[#allocation26_spill] sm:$0xff] %v4280_v34 }
  0x44   :  { %544 = vmatpush.msrb.mxu0 %v4174_v42  ;;  %564 = vmatpush.msrb.mxu1 %v4176_v43  ;;  %6056 = vst [vmem:[#allocation29_spill] sm:$0xff] %v4286_v44 }
  0x45   :  { %584 = vmatpush.msrb.mxu2 %v4178_v45  ;;  %604 = vmatpush.msrb.mxu3 %v4180_v46  ;;  %6057 = vst [vmem:[#allocation30_spill] sm:$0xff] %v4288_v49 }
  0x46   :  { %545 = vmatpush.msrb.mxu0 %v4184_v47  ;;  %565 = vmatpush.msrb.mxu1 %v4186_v48  ;;  %6065 = vst [vmem:[#allocation38_spill] sm:$0xff] %v4316_v23 }
  0x47   :  { %585 = vmatpush.msrb.mxu2 %v4189_v50  ;;  %605 = vmatpush.msrb.mxu3 %v4192_v51  ;;  %6066 = vst [vmem:[#allocation39_spill] sm:$0xff] %v4318_v26 }
  0x48   :  { %357 = vmatmul.f32.gmra.mxu0 %v129_v53  ;;  %398 = vmatmul.f32.gmra.mxu1 %v129_v53  ;;  %6068 = vst [vmem:[#allocation41_spill] sm:$0xff] %v4322_v31 }
  0x49   :  { %439 = vmatmul.f32.gmra.mxu2 %v129_v53  ;;  %480 = vmatmul.f32.gmra.mxu3 %v129_v53  ;;  %v4294_v53 = vunpack.c.h.bf16 %v240_v33  ;;  %v4324_v33 = vunpack.c.h.bf16 %v237_v12  ;;  %v233_v12 = vld [vmem:[#allocation12 + $0x8] sm:$0xff] }
  0x4a   :  { %546 = vmatpush.msrb.mxu0 %v4200_v55  ;;  %566 = vmatpush.msrb.mxu1 %v4202_v56 }
  0x4b   :  { %586 = vmatpush.msrb.mxu2 %v4205_v58  ;;  %606 = vmatpush.msrb.mxu3 %v4208_v60  ;;  %6059 = vst [vmem:[#allocation32_spill] sm:$0xff] %v4294_v53 }
  0x4c   :  { %547 = vmatpush.msrb.mxu0 %v4210_v61  ;;  %567 = vmatpush.msrb.mxu1 %v4212_v62  ;;  %6069 = vst [vmem:[#allocation42_spill] sm:$0xff] %v4324_v33 }
  0x4d   :  { %587 = vmatpush.msrb.mxu2 %v4214_v0  ;;  %607 = vmatpush.msrb.mxu3 %v4216_v1 }
  0x4e   :  { %548 = vmatpush.msrb.mxu0 %v4220_v2  ;;  %568 = vmatpush.msrb.mxu1 %v4222_v3 }
  0x4f   :  { %588 = vmatpush.msrb.mxu2 %v4225_v5  ;;  %608 = vmatpush.msrb.mxu3 %v4228_v6 }
  0x50   :  { %360 = vmatmul.f32.gmra.mxu0 %v130_v8  ;;  %401 = vmatmul.f32.gmra.mxu1 %v130_v8 }
  0x51   :  { %442 = vmatmul.f32.gmra.mxu2 %v130_v8  ;;  %483 = vmatmul.f32.gmra.mxu3 %v130_v8  ;;  %v4308_v8 = vunpack.c.l.bf16 %v238_v54  ;;  %v4330_v54 = vunpack.c.h.bf16 %v234_v18  ;;  %v4344_v18 = vunpack.c.l.bf16 %v232_v63 }
  0x52   :  { %549 = vmatpush.msrb.mxu0 %v4236_v10  ;;  %569 = vmatpush.msrb.mxu1 %v4238_v11 }
  0x53   :  { %589 = vmatpush.msrb.mxu2 %v4241_v13  ;;  %609 = vmatpush.msrb.mxu3 %v4244_v15  ;;  %6062 = vst [vmem:[#allocation35_spill] sm:$0xff] %v4308_v8 }
  0x54   :  { %550 = vmatpush.msrb.mxu0 %v4246_v16  ;;  %570 = vmatpush.msrb.mxu1 %v4248_v17  ;;  %6071 = vst [vmem:[#allocation44_spill] sm:$0xff] %v4330_v54 }
  0x55   :  { %590 = vmatpush.msrb.mxu2 %v4250_v19  ;;  %610 = vmatpush.msrb.mxu3 %v4252_v20  ;;  %6074 = vst [vmem:[#allocation47_spill] sm:$0xff] %v4344_v18 }
  0x56   :  { %551 = vmatpush.msrb.mxu0 %v4256_v21  ;;  %571 = vmatpush.msrb.mxu1 %v4258_v22 }
  0x57   :  { %591 = vmatpush.msrb.mxu2 %v4261_v24  ;;  %611 = vmatpush.msrb.mxu3 %v4264_v25 }
  0x58   :  { %363 = vmatmul.f32.gmra.mxu0 %v131_v27  ;;  %404 = vmatmul.f32.gmra.mxu1 %v131_v27 }
  0x59   :  { %445 = vmatmul.f32.gmra.mxu2 %v131_v27  ;;  %486 = vmatmul.f32.gmra.mxu3 %v131_v27  ;;  %v4320_v27 = vunpack.c.h.bf16 %v236_v7  ;;  %v4334_v7 = vunpack.c.l.bf16 %v235_v28 }
  0x5a   :  { %552 = vmatpush.msrb.mxu0 %v4272_v29  ;;  %572 = vmatpush.msrb.mxu1 %v4274_v30 }
  0x5b   :  { %592 = vmatpush.msrb.mxu2 %v4277_v32  ;;  %612 = vmatpush.msrb.mxu3 %v4280_v34  ;;  %6067 = vst [vmem:[#allocation40_spill] sm:$0xff] %v4320_v27 }
  0x5c   :  { %553 = vmatpush.msrb.mxu0 %v4282_v35  ;;  %573 = vmatpush.msrb.mxu1 %v4284_v38  ;;  %6072 = vst [vmem:[#allocation45_spill] sm:$0xff] %v4334_v7 }
  0x5d   :  { %593 = vmatpush.msrb.mxu2 %v4286_v44  ;;  %613 = vmatpush.msrb.mxu3 %v4288_v49 }
  0x5e   :  { %554 = vmatpush.msrb.mxu0 %v4292_v52  ;;  %574 = vmatpush.msrb.mxu1 %v4294_v53 }
  0x5f   :  { %594 = vmatpush.msrb.mxu2 %v4297_v57  ;;  %614 = vmatpush.msrb.mxu3 %v4300_v59 }
  0x60   :  { %366 = vmatmul.f32.gmra.mxu0 %v132_v4  ;;  %407 = vmatmul.f32.gmra.mxu1 %v132_v4 }
  0x61   :  { %448 = vmatmul.f32.gmra.mxu2 %v132_v4  ;;  %489 = vmatmul.f32.gmra.mxu3 %v132_v4  ;;  %v4336_v4 = vunpack.c.h.bf16 %v235_v28  ;;  %v4350_v28 = vunpack.c.l.bf16 %v233_v12 }
  0x62   :  { %555 = vmatpush.msrb.mxu0 %v4308_v8  ;;  %575 = vmatpush.msrb.mxu1 %v4310_v9  ;;  %v133_v8 = vld [vmem:[#allocation4 + $0x28] sm:$0xff] }
  0x63   :  { %595 = vmatpush.msrb.mxu2 %v4313_v14  ;;  %615 = vmatpush.msrb.mxu3 %v4316_v23  ;;  %6073 = vst [vmem:[#allocation46_spill] sm:$0xff] %v4336_v4  ;;  %v4346_v23 = vunpack.c.h.bf16 %v232_v63  ;;  %v134_v63 = vld [vmem:[#allocation4 + $0x30] sm:$0xff] }
  0x64   :  { %556 = vmatpush.msrb.mxu0 %v4318_v26  ;;  %576 = vmatpush.msrb.mxu1 %v4320_v27  ;;  %6076 = vst [vmem:[#allocation49_spill] sm:$0xff] %v4350_v28  ;;  %v4352_v27 = vunpack.c.h.bf16 %v233_v12  ;;  %v534_v12 = vld [vmem:[#allocation7] sm:$0xff] }
  0x65   :  { %596 = vmatpush.msrb.mxu2 %v4322_v31  ;;  %616 = vmatpush.msrb.mxu3 %v4324_v33  ;;  %6075 = vst [vmem:[#allocation48_spill] sm:$0xff] %v4346_v23 }
  0x66   :  { %557 = vmatpush.msrb.mxu0 %v4328_v40  ;;  %577 = vmatpush.msrb.mxu1 %v4330_v54  ;;  %6077 = vst [vmem:[#allocation50_spill] sm:$0xff] %v4352_v27 }
  0x67   :  { %597 = vmatpush.msrb.mxu2 %v4334_v7  ;;  %617 = vmatpush.msrb.mxu3 %v4336_v4 }
  0x68   :  { %369 = vmatmul.f32.gmra.mxu0 %v133_v8  ;;  %410 = vmatmul.f32.gmra.mxu1 %v133_v8 }
  0x69   :  { %451 = vmatmul.f32.gmra.mxu2 %v133_v8  ;;  %492 = vmatmul.f32.gmra.mxu3 %v133_v8  ;;  %v135_v8 = vld [vmem:[#allocation4 + $0x38] sm:$0xff] }
  0x6a   :  { %558 = vmatpush.msrb.mxu0 %v4344_v18  ;;  %578 = vmatpush.msrb.mxu1 %v4346_v23 }
  0x6b   :  { %598 = vmatpush.msrb.mxu2 %v4350_v28  ;;  %618 = vmatpush.msrb.mxu3 %v4352_v27 }
  0x6c   :  { %698 = vmatpush.msra.mxu0 %v4166_v36  ;;  %718 = vmatpush.msra.mxu1 %v4168_v37 }
  0x6d   :  { %738 = vmatpush.msra.mxu2 %v4170_v39  ;;  %758 = vmatpush.msra.mxu3 %v4172_v41 }
  0x6e   :  { %699 = vmatpush.msra.mxu0 %v4174_v42  ;;  %719 = vmatpush.msra.mxu1 %v4176_v43 }
  0x6f   :  { %739 = vmatpush.msra.mxu2 %v4178_v45  ;;  %759 = vmatpush.msra.mxu3 %v4180_v46 }
  0x70   :  { %372 = vmatmul.f32.gmra.mxu0 %v134_v63  ;;  %413 = vmatmul.f32.gmra.mxu1 %v134_v63 }
  0x71   :  { %454 = vmatmul.f32.gmra.mxu2 %v134_v63  ;;  %495 = vmatmul.f32.gmra.mxu3 %v134_v63  ;;  %v6078_v63 = vld [vmem:[#allocation35_spill] sm:$0xff] }
  0x72   :  { %700 = vmatpush.msra.mxu0 %v4184_v47  ;;  %720 = vmatpush.msra.mxu1 %v4186_v48 }
  0x73   :  { %740 = vmatpush.msra.mxu2 %v4189_v50  ;;  %760 = vmatpush.msra.mxu3 %v4192_v51 }
  0x74   :  { %701 = vmatpush.msra.mxu0 %v4200_v55  ;;  %721 = vmatpush.msra.mxu1 %v4202_v56 }
  0x75   :  { %741 = vmatpush.msra.mxu2 %v4205_v58  ;;  %761 = vmatpush.msra.mxu3 %v4208_v60 }
  0x76   :  { %702 = vmatpush.msra.mxu0 %v4210_v61  ;;  %722 = vmatpush.msra.mxu1 %v4212_v62 }
  0x77   :  { %742 = vmatpush.msra.mxu2 %v4214_v0  ;;  %762 = vmatpush.msra.mxu3 %v4216_v1 }
  0x78   :  { %375 = vmatmul.f32.gmra.mxu0 %v135_v8  ;;  %416 = vmatmul.f32.gmra.mxu1 %v135_v8 }
  0x79   :  { %457 = vmatmul.f32.gmra.mxu2 %v135_v8  ;;  %498 = vmatmul.f32.gmra.mxu3 %v135_v8  ;;  %v6079_v8 = vld [vmem:[#allocation38_spill] sm:$0xff] }
  0x7a   :  { %703 = vmatpush.msra.mxu0 %v4220_v2  ;;  %723 = vmatpush.msra.mxu1 %v4222_v3 }
  0x7b   :  { %743 = vmatpush.msra.mxu2 %v4225_v5  ;;  %763 = vmatpush.msra.mxu3 %v4228_v6 }
  0x7c   :  { %704 = vmatpush.msra.mxu0 %v4236_v10  ;;  %724 = vmatpush.msra.mxu1 %v4238_v11 }
  0x7d   :  { %744 = vmatpush.msra.mxu2 %v4241_v13  ;;  %764 = vmatpush.msra.mxu3 %v4244_v15 }
  0x7e   :  { %705 = vmatpush.msra.mxu0 %v4246_v16  ;;  %725 = vmatpush.msra.mxu1 %v4248_v17 }
  0x7f   :  { %745 = vmatpush.msra.mxu2 %v4250_v19  ;;  %765 = vmatpush.msra.mxu3 %v4252_v20 }
  0x80   :  { %559 = vmatmul.f32.vlgmr.msrb.gmra.mxu0 %v534_v12  ;;  %579 = vmatmul.f32.vlgmr.msrb.gmra.mxu1 %v534_v12 }
  0x81   :  { %599 = vmatmul.f32.vlgmr.msrb.gmra.mxu2 %v534_v12  ;;  %619 = vmatmul.f32.vlgmr.msrb.gmra.mxu3 %v534_v12  ;;  %v6080_v12 = vld [vmem:[#allocation40_spill] sm:$0xff] }
  0x82   :  { %706 = vmatpush.msra.mxu0 %v4256_v21  ;;  %726 = vmatpush.msra.mxu1 %v4258_v22 }
  0x83   :  { %746 = vmatpush.msra.mxu2 %v4261_v24  ;;  %766 = vmatpush.msra.mxu3 %v4264_v25 }
  0x84   :  { %707 = vmatpush.msra.mxu0 %v4272_v29  ;;  %727 = vmatpush.msra.mxu1 %v4274_v30 }
  0x85   :  { %747 = vmatpush.msra.mxu2 %v4277_v32  ;;  %767 = vmatpush.msra.mxu3 %v4280_v34 }
  0x86   :  { %708 = vmatpush.msra.mxu0 %v4282_v35  ;;  %728 = vmatpush.msra.mxu1 %v4284_v38 }
  0x87   :  { %748 = vmatpush.msra.mxu2 %v4286_v44  ;;  %768 = vmatpush.msra.mxu3 %v4288_v49 }
  0x88   :  { %709 = vmatpush.msra.mxu0 %v4292_v52  ;;  %729 = vmatpush.msra.mxu1 %v4294_v53 }
  0x89   :  { %749 = vmatpush.msra.mxu2 %v4297_v57  ;;  %769 = vmatpush.msra.mxu3 %v4300_v59 }
  0x8a   :  { %710 = vmatpush.msra.mxu0 %v6078_v63  ;;  %730 = vmatpush.msra.mxu1 %v4310_v9 }
  0x8b   :  { %750 = vmatpush.msra.mxu2 %v4313_v14  ;;  %770 = vmatpush.msra.mxu3 %v6079_v8 }
  0x8c   :  { %711 = vmatpush.msra.mxu0 %v4318_v26  ;;  %731 = vmatpush.msra.mxu1 %v6080_v12 }
  0x8d   :  { %751 = vmatpush.msra.mxu2 %v4322_v31  ;;  %771 = vmatpush.msra.mxu3 %v4324_v33 }
  0x8e   :  { %712 = vmatpush.msra.mxu0 %v4328_v40  ;;  %732 = vmatpush.msra.mxu1 %v4330_v54 }
  0x8f   :  { %752 = vmatpush.msra.mxu2 %v4334_v7  ;;  %772 = vmatpush.msra.mxu3 %v4336_v4 }
  0x90   :  { %713 = vmatpush.msra.mxu0 %v4344_v18  ;;  %733 = vmatpush.msra.mxu1 %v4346_v23 }
  0x91   :  { %753 = vmatpush.msra.mxu2 %v4350_v28  ;;  %773 = vmatpush.msra.mxu3 %v4352_v27 }
  0x92   :  { %854 = vmatpush.msrb.mxu0 %v4166_v36  ;;  %874 = vmatpush.msrb.mxu1 %v4168_v37 }
  0x93   :  { %894 = vmatpush.msrb.mxu2 %v4170_v39  ;;  %914 = vmatpush.msrb.mxu3 %v4172_v41 }
  0x94   :  { %855 = vmatpush.msrb.mxu0 %v4174_v42  ;;  %875 = vmatpush.msrb.mxu1 %v4176_v43 }
  0x95   :  { %895 = vmatpush.msrb.mxu2 %v4178_v45  ;;  %915 = vmatpush.msrb.mxu3 %v4180_v46 }
  0x96   :  { %856 = vmatpush.msrb.mxu0 %v4184_v47  ;;  %876 = vmatpush.msrb.mxu1 %v4186_v48 }
  0x97   :  { %896 = vmatpush.msrb.mxu2 %v4189_v50  ;;  %916 = vmatpush.msrb.mxu3 %v4192_v51 }
  0x98   :  { %857 = vmatpush.msrb.mxu0 %v4200_v55  ;;  %877 = vmatpush.msrb.mxu1 %v4202_v56 }
  0x99   :  { %897 = vmatpush.msrb.mxu2 %v4205_v58  ;;  %917 = vmatpush.msrb.mxu3 %v4208_v60 }
  0x9a   :  { %858 = vmatpush.msrb.mxu0 %v4210_v61  ;;  %878 = vmatpush.msrb.mxu1 %v4212_v62 }
  0x9b   :  { %898 = vmatpush.msrb.mxu2 %v4214_v0  ;;  %918 = vmatpush.msrb.mxu3 %v4216_v1 }
  0x9c   :  { %859 = vmatpush.msrb.mxu0 %v4220_v2  ;;  %879 = vmatpush.msrb.mxu1 %v4222_v3 }
  0x9d   :  { %899 = vmatpush.msrb.mxu2 %v4225_v5  ;;  %919 = vmatpush.msrb.mxu3 %v4228_v6 }
  0x9e   :  { %860 = vmatpush.msrb.mxu0 %v4236_v10  ;;  %880 = vmatpush.msrb.mxu1 %v4238_v11 }
  0x9f   :  { %900 = vmatpush.msrb.mxu2 %v4241_v13  ;;  %920 = vmatpush.msrb.mxu3 %v4244_v15 }
  0xa0   :  { %861 = vmatpush.msrb.mxu0 %v4246_v16  ;;  %881 = vmatpush.msrb.mxu1 %v4248_v17 }
  0xa1   :  { %901 = vmatpush.msrb.mxu2 %v4250_v19  ;;  %921 = vmatpush.msrb.mxu3 %v4252_v20 }
  0xa2   :  { %862 = vmatpush.msrb.mxu0 %v4256_v21  ;;  %882 = vmatpush.msrb.mxu1 %v4258_v22 }
  0xa3   :  { %902 = vmatpush.msrb.mxu2 %v4261_v24  ;;  %922 = vmatpush.msrb.mxu3 %v4264_v25 }
  0xa4   :  { %863 = vmatpush.msrb.mxu0 %v4272_v29  ;;  %883 = vmatpush.msrb.mxu1 %v4274_v30 }
  0xa5   :  { %903 = vmatpush.msrb.mxu2 %v4277_v32  ;;  %923 = vmatpush.msrb.mxu3 %v4280_v34 }
  0xa6   :  { %864 = vmatpush.msrb.mxu0 %v4282_v35  ;;  %884 = vmatpush.msrb.mxu1 %v4284_v38 }
  0xa7   :  { %904 = vmatpush.msrb.mxu2 %v4286_v44  ;;  %924 = vmatpush.msrb.mxu3 %v4288_v49 }
  0xa8   :  { %865 = vmatpush.msrb.mxu0 %v4292_v52  ;;  %885 = vmatpush.msrb.mxu1 %v4294_v53 }
  0xa9   :  { %905 = vmatpush.msrb.mxu2 %v4297_v57  ;;  %925 = vmatpush.msrb.mxu3 %v4300_v59 }
  0xaa   :  { %866 = vmatpush.msrb.mxu0 %v6078_v63  ;;  %886 = vmatpush.msrb.mxu1 %v4310_v9 }
  0xab   :  { %906 = vmatpush.msrb.mxu2 %v4313_v14  ;;  %926 = vmatpush.msrb.mxu3 %v6079_v8 }
  0xac   :  { %867 = vmatpush.msrb.mxu0 %v4318_v26  ;;  %887 = vmatpush.msrb.mxu1 %v6080_v12 }
  0xad   :  { %907 = vmatpush.msrb.mxu2 %v4322_v31  ;;  %927 = vmatpush.msrb.mxu3 %v4324_v33 }
  0xae   :  { %868 = vmatpush.msrb.mxu0 %v4328_v40  ;;  %888 = vmatpush.msrb.mxu1 %v4330_v54 }
  0xaf   :  { %908 = vmatpush.msrb.mxu2 %v4334_v7  ;;  %928 = vmatpush.msrb.mxu3 %v4336_v4 }
  0xb0   :  { %869 = vmatpush.msrb.mxu0 %v4344_v18  ;;  %889 = vmatpush.msrb.mxu1 %v4346_v23 }
  0xb1   :  { %909 = vmatpush.msrb.mxu2 %v4350_v28  ;;  %929 = vmatpush.msrb.mxu3 %v4352_v27 }
  0xbd   :  { %v355_v12 = vpop.f32.mrf.mxu0  ;;  %v396_v31 = vpop.f32.mrf.mxu1 }
  0xc4   :  { %v437_v26 = vpop.f32.mrf.mxu2  ;;  %v478_v33 = vpop.f32.mrf.mxu3 }
  0xc5   :  { %v4486_v8 = vpop.f32.mrf.mxu0  ;;  %v4488_v40 = vpop.f32.mrf.mxu1 }
  0xc6   :  { %6081 = vst [vmem:[#allocation51_spill] sm:$0xff] %v4486_v8 }
  0xc7   :  { %6082 = vst [vmem:[#allocation52_spill] sm:$0xff] %v4488_v40 }
  0xcc   :  { %v4490_v54 = vpop.f32.mrf.mxu2  ;;  %v4492_v7 = vpop.f32.mrf.mxu3 }
  0xcd   :  { %6083 = vst [vmem:[#allocation53_spill] sm:$0xff] %v4490_v54  ;;  %v4494_v4 = vpop.f32.mrf.mxu0  ;;  %v4496_v18 = vpop.f32.mrf.mxu1 }
  0xce   :  { %6084 = vst [vmem:[#allocation54_spill] sm:$0xff] %v4492_v7 }
  0xcf   :  { %6085 = vst [vmem:[#allocation55_spill] sm:$0xff] %v4494_v4 }
  0xd0   :  { %6086 = vst [vmem:[#allocation56_spill] sm:$0xff] %v4496_v18 }
  0xd4   :  { %v4498_v23 = vpop.f32.mrf.mxu2  ;;  %v4500_v28 = vpop.f32.mrf.mxu3 }
  0xd5   :  { %6087 = vst [vmem:[#allocation57_spill] sm:$0xff] %v4498_v23  ;;  %v4502_v27 = vpop.f32.mrf.mxu0  ;;  %v4504_v14 = vpop.f32.mrf.mxu1 }
  0xd6   :  { %6088 = vst [vmem:[#allocation58_spill] sm:$0xff] %v4500_v28 }
  0xd7   :  { %6089 = vst [vmem:[#allocation59_spill] sm:$0xff] %v4502_v27 }
  0xd8   :  { %6090 = vst [vmem:[#allocation60_spill] sm:$0xff] %v4504_v14 }
  0xdc   :  { %v4506_v9 = vpop.f32.mrf.mxu2  ;;  %v4508_v8 = vpop.f32.mrf.mxu3 }
  0xdd   :  { %6091 = vst [vmem:[#allocation61_spill] sm:$0xff] %v4506_v9  ;;  %v4510_v40 = vpop.f32.mrf.mxu0  ;;  %v4512_v54 = vpop.f32.mrf.mxu1 }
  0xde   :  { %6092 = vst [vmem:[#allocation62_spill] sm:$0xff] %v4508_v8 }
  0xdf   :  { %6093 = vst [vmem:[#allocation63_spill] sm:$0xff] %v4510_v40 }
  0xe0   :  { %6094 = vst [vmem:[#allocation64_spill] sm:$0xff] %v4512_v54 }
  0xe4   :  { %v4514_v7 = vpop.f32.mrf.mxu2  ;;  %v4520_v23 = vpop.f32.mrf.mxu3 }
  0xe5   :  { %6095 = vst [vmem:[#allocation65_spill] sm:$0xff] %v4514_v7  ;;  %v4516_v4 = vpop.f32.mrf.mxu0  ;;  %v4518_v18 = vpop.f32.mrf.mxu1  ;;  %v328_v7 = vld [vmem:[%s5890_s5] sm:$0xf] }
  0xe6   :  { %6096 = vst [vmem:[#allocation66_spill] sm:$0xff] %v4516_v4  ;;  %v4549_v57 = vperm.slane %v328_v7, 2 }
  0xe7   :  { %6097 = vst [vmem:[#allocation67_spill] sm:$0xff] %v4518_v18  ;;  %v4539_v18 = vperm.slane %v328_v7, 0 }
  0xe8   :  { %6098 = vst [vmem:[#allocation68_spill] sm:$0xff] %v4520_v23  ;;  %v4541_v23 = vperm.slane %v328_v7, 1  ;;  %v438_v53 = vadd.f32 %v437_v26, %v4549_v57 }
  0xe9   :  { %6106 = vst [vmem:[#allocation76_spill] sm:$0xff] %v4539_v18 }
  0xea   :  { %6107 = vst [vmem:[#allocation77_spill] sm:$0xff] %v4541_v23 }
  0xeb   :  { %6110 = vst [vmem:[#allocation80_spill] sm:$0xff] %v4549_v57 }
  0xec   :  { %v4522_v28 = vpop.f32.mrf.mxu2  ;;  %v4528_v9 = vpop.f32.mrf.mxu3 }
  0xed   :  { %6099 = vst [vmem:[#allocation69_spill] sm:$0xff] %v4522_v28  ;;  %v4524_v27 = vpop.f32.mrf.mxu0  ;;  %v4526_v14 = vpop.f32.mrf.mxu1 }
  0xee   :  { %6100 = vst [vmem:[#allocation70_spill] sm:$0xff] %v4524_v27  ;;  %v397_v27 = vadd.f32 %v396_v31, %v4541_v23 }
  0xef   :  { %6101 = vst [vmem:[#allocation71_spill] sm:$0xff] %v4526_v14  ;;  %v356_v14 = vadd.f32 %v355_v12, %v4539_v18 }
  0xf0   :  { %6102 = vst [vmem:[#allocation72_spill] sm:$0xff] %v4528_v9 }
  0xf4   :  { %v4530_v8 = vpop.f32.mrf.mxu2  ;;  %v4543_v28 = vpop.f32.mrf.mxu3 }
  0xf5   :  { %6103 = vst [vmem:[#allocation73_spill] sm:$0xff] %v4530_v8  ;;  %v4535_v54 = vpop.f32.mrf.mxu0  ;;  %v4537_v4 = vpop.f32.mrf.mxu1 }
  0xf6   :  { %6104 = vst [vmem:[#allocation74_spill] sm:$0xff] %v4535_v54 }
  0xf7   :  { %6105 = vst [vmem:[#allocation75_spill] sm:$0xff] %v4537_v4 }
  0xf8   :  { %6108 = vst [vmem:[#allocation78_spill] sm:$0xff] %v4543_v28 }
  0xfc   :  { %v4547_v9 = vpop.f32.mrf.mxu2  ;;  %v4552_v52 = vpop.f32.mrf.mxu3 }
  0xfd   :  { %6109 = vst [vmem:[#allocation79_spill] sm:$0xff] %v4547_v9  ;;  %v560_v8 = vpop.f32.mrf.mxu0  ;;  %v580_v40 = vpop.f32.mrf.mxu1 }
  0xfe   :  { %v623_v63 = vadd.f32 %v560_v8, %v356_v14  ;;  %v624_v59 = vadd.f32 %v580_v40, %v397_v27  ;;  %6111 = vst [vmem:[#allocation81_spill] sm:$0xff] %v4552_v52  ;;  %v4554_v14 = vperm.slane %v328_v7, 3 }
 0x100   :  { %v3521_v54 = vmul.f32 -1.442695, %v623_v63  ;;  %v3522_v4 = vmul.f32 -1.442695, %v624_v59  ;;  %6112 = vst [vmem:[#allocation82_spill] sm:$0xff] %v4554_v14  ;;  %v479_v40 = vadd.f32 %v478_v33, %v4554_v14 }
 0x102   :  { %3584 = vpow2.f32 %v3521_v54 }
 0x103   :  { %3586 = vpow2.f32 %v3522_v4 }
 0x104   :  { %v600_v28 = vpop.f32.mrf.mxu2  ;;  %v620_v27 = vpop.f32.mrf.mxu3 }
 0x105   :  { %v625_v12 = vadd.f32 %v600_v28, %v438_v53  ;;  %v626_v4 = vadd.f32 %v620_v27, %v479_v40 }
 0x107   :  { %v3523_v18 = vmul.f32 -1.442695, %v625_v12 }
 0x108   :  { %v3585_v31 = vpop.eup %3584 }
 0x109   :  { %v3587_v23 = vpop.eup %3586  ;;  %v636_v9 = vadd.f32 1.0, %v3585_v31  ;;  %3588 = vpow2.f32 %v3523_v18 }
 0x10a   :  { %v637_v49 = vadd.f32 1.0, %v3587_v23 }
 0x10b   :  { %3590 = vrcp.f32 %v636_v9  ;;  %v650_v31 = vand.u32 2147483648, %v636_v9  ;;  %v648_v18 = vand.u32 2147483647, %v636_v9  ;;  %vm644_vm2 = vweird.f32 %v636_v9 }
 0x10c   :  { %3592 = vrcp.f32 %v637_v49  ;;  %v665_v23 = vand.u32 2147483648, %v637_v49  ;;  %v663_v57 = vand.u32 2147483647, %v637_v49  ;;  %vm659_vm3 = vweird.f32 %v637_v49 }
 0x10d   :  { %vm649_vm6 = vcmp.eq.f32.partialorder %v648_v18, 8.507059e+37  ;;  %v6120_v18 = vld [vmem:[#allocation31_spill] sm:$0xff] }
 0x10e   :  { %vm664_vm7 = vcmp.eq.f32.partialorder %v663_v57, 8.507059e+37 }
 0x10f   :  { %v3589_v59 = vpop.eup %3588 }
 0x110   :  { %v638_v26 = vadd.f32 1.0, %v3589_v59  ;;  %v651_v59 = vor.u32 1.1754944e-38, %v650_v31 }
 0x111   :  { %v3591_v54 = vpop.eup %3590 }
 0x112   :  { %v3593_v63 = vpop.eup %3592  ;;  %v640_v8 = vmul.f32 %v3591_v54, %v636_v9  ;;  %3594 = vrcp.f32 %v638_v26  ;;  %vm645_vm0 = vweird.f32 %v3591_v54  ;;  %v680_v31 = vand.u32 2147483648, %v638_v26 }
 0x113   :  { %v655_v53 = vmul.f32 %v3593_v63, %v637_v49  ;;  %3596 = vtanh.f32 %v626_v4  ;;  %vm660_vm1 = vweird.f32 %v3593_v63  ;;  %vm646_vm4 = vmor %vm644_vm2, %vm645_vm0  ;;  %vm674_vm9 = vweird.f32 %v638_v26 }
 0x114   :  { %v641_v28 = vsub.f32 1.0, %v640_v8  ;;  %vm661_vm5 = vmor %vm659_vm3, %vm660_vm1  ;;  %v666_v8 = vor.u32 1.1754944e-38, %v665_v23  ;;  %v681_v23 = vor.u32 1.1754944e-38, %v680_v31  ;;  %v6132_v31 = vld [vmem:[#allocation43_spill] sm:$0xff] }
 0x115   :  { %v656_v12 = vsub.f32 1.0, %v655_v53  ;;  %v535_v53 = vld [vmem:[#allocation9] sm:$0xff] }
 0x116   :  { %v642_v7 = vmul.f32 %v3591_v54, %v641_v28 }
 0x117   :  { %v657_v52 = vmul.f32 %v3593_v63, %v656_v12 }
 0x118   :  { %v3595_v44 = vpop.eup %3594  ;;  %v643_v33 = vadd.f32 %v3591_v54, %v642_v7 }
 0x119   :  { %v670_v27 = vmul.f32 %v3595_v44, %v638_v26  ;;  %v658_v40 = vadd.f32 %v3593_v63, %v657_v52  ;;  %v3597_v4 = vpop.eup %3596  ;;  %vm675_vm8 = vweird.f32 %v3595_v44  ;;  %v678_v52 = vand.u32 2147483647, %v638_v26  ;;  %v6119_v26 = vld [vmem:[#allocation30_spill] sm:$0xff] }
 0x11a   :  { %v647_v14 = vsel %vm646_vm4, %v3591_v54, %v643_v33  ;;  %vm676_vm10 = vmor %vm674_vm9, %vm675_vm8  ;;  %v6121_v33 = vld [vmem:[#allocation32_spill] sm:$0xff] }
 0x11b   :  { %v671_v28 = vsub.f32 1.0, %v670_v27  ;;  %v652_v38 = vsel %vm649_vm6, %v651_v59, %v647_v14  ;;  %v662_v35 = vsel %vm661_vm5, %v3593_v63, %v658_v40  ;;  %vm679_vm11 = vcmp.eq.f32.partialorder %v678_v52, 8.507059e+37  ;;  %v6122_v27 = vld [vmem:[#allocation33_spill] sm:$0xff]  ;;  %v6123_v59 = vld [vmem:[#allocation34_spill] sm:$0xff]  ;;  %v6124_v40 = vld [vmem:[#allocation35_spill] sm:$0xff] }
 0x11c   :  { %v667_v12 = vsel %vm664_vm7, %v666_v8, %v662_v35  ;;  %v686_v34 = vmul.f32 %v3597_v4, %v652_v38  ;;  %v6116_v35 = vld [vmem:[#allocation27_spill] sm:$0xff]  ;;  %v6117_v38 = vld [vmem:[#allocation28_spill] sm:$0xff]  ;;  %v6127_v4 = vld [vmem:[#allocation38_spill] sm:$0xff] }
 0x11d   :  { %v672_v32 = vmul.f32 %v3595_v44, %v671_v28  ;;  %v685_v7 = vmul.f32 %v667_v12, %v535_v53  ;;  %v6125_v8 = vld [vmem:[#allocation36_spill] sm:$0xff]  ;;  %v6126_v53 = vld [vmem:[#allocation37_spill] sm:$0xff]  ;;  %v6128_v28 = vld [vmem:[#allocation39_spill] sm:$0xff] }
 0x11e   :  { %v6129_v12 = vld [vmem:[#allocation40_spill] sm:$0xff] }
 0x11f   :  { %v4557_v9 = vadd.f32 %v686_v34, %v685_v7  ;;  %v673_v49 = vadd.f32 %v3595_v44, %v672_v32  ;;  %v6114_v32 = vld [vmem:[#allocation25_spill] sm:$0xff]  ;;  %v6115_v34 = vld [vmem:[#allocation26_spill] sm:$0xff]  ;;  %v6133_v52 = vld [vmem:[#allocation44_spill] sm:$0xff] }
 0x120   :  { %v6130_v7 = vld [vmem:[#allocation41_spill] sm:$0xff] }
 0x121   :  { %3598 = vtanh.f32 %v4557_v9  ;;  %v677_v54 = vsel %vm676_vm10, %v3595_v44, %v673_v49  ;;  %v6118_v44 = vld [vmem:[#allocation29_spill] sm:$0xff]  ;;  %v6131_v49 = vld [vmem:[#allocation42_spill] sm:$0xff] }
 0x122   :  { %v682_v63 = vsel %vm679_vm11, %v681_v23, %v677_v54  ;;  %v6134_v54 = vld [vmem:[#allocation45_spill] sm:$0xff]  ;;  %v6135_v23 = vld [vmem:[#allocation46_spill] sm:$0xff] }
 0x127   :  { %v3599_v14 = vpop.eup %3598 }
 0x128   :  { %v4560_v57 = vmul.f32 %v3599_v14, %v682_v63  ;;  %v6136_v14 = vld [vmem:[#allocation47_spill] sm:$0xff]  ;;  %v6137_v63 = vld [vmem:[#allocation48_spill] sm:$0xff] }
 0x12a   :  { %6113 = vst [vmem:[#allocation83_spill] sm:$0xff] %v4560_v57  ;;  %714 = vmatmul.f32.vlgmr.msra.gmra.mxu0 %v4560_v57  ;;  %734 = vmatmul.f32.vlgmr.msra.gmra.mxu1 %v4560_v57 }
 0x12b   :  { %754 = vmatmul.f32.vlgmr.msra.gmra.mxu2 %v4560_v57  ;;  %774 = vmatmul.f32.vlgmr.msra.gmra.mxu3 %v4560_v57  ;;  %v6138_v57 = vld [vmem:[#allocation49_spill] sm:$0xff] }
 0x12c   :  { %1010 = vmatpush.msra.mxu0 %v4166_v36  ;;  %1030 = vmatpush.msra.mxu1 %v4168_v37 }
 0x12d   :  { %1050 = vmatpush.msra.mxu2 %v4170_v39  ;;  %1070 = vmatpush.msra.mxu3 %v4172_v41 }
 0x12e   :  { %1011 = vmatpush.msra.mxu0 %v4174_v42  ;;  %1031 = vmatpush.msra.mxu1 %v4176_v43 }
 0x12f   :  { %1051 = vmatpush.msra.mxu2 %v4178_v45  ;;  %1071 = vmatpush.msra.mxu3 %v4180_v46 }
 0x130   :  { %1012 = vmatpush.msra.mxu0 %v4184_v47  ;;  %1032 = vmatpush.msra.mxu1 %v4186_v48 }
 0x131   :  { %1052 = vmatpush.msra.mxu2 %v4189_v50  ;;  %1072 = vmatpush.msra.mxu3 %v4192_v51 }
 0x132   :  { %1013 = vmatpush.msra.mxu0 %v4200_v55  ;;  %1033 = vmatpush.msra.mxu1 %v4202_v56 }
 0x133   :  { %1053 = vmatpush.msra.mxu2 %v4205_v58  ;;  %1073 = vmatpush.msra.mxu3 %v4208_v60 }
 0x134   :  { %1014 = vmatpush.msra.mxu0 %v4210_v61  ;;  %1034 = vmatpush.msra.mxu1 %v4212_v62 }
 0x135   :  { %1054 = vmatpush.msra.mxu2 %v4214_v0  ;;  %1074 = vmatpush.msra.mxu3 %v4216_v1 }
 0x136   :  { %1015 = vmatpush.msra.mxu0 %v4220_v2  ;;  %1035 = vmatpush.msra.mxu1 %v4222_v3 }
 0x137   :  { %1055 = vmatpush.msra.mxu2 %v4225_v5  ;;  %1075 = vmatpush.msra.mxu3 %v4228_v6 }
 0x138   :  { %1016 = vmatpush.msra.mxu0 %v4236_v10  ;;  %1036 = vmatpush.msra.mxu1 %v4238_v11 }
 0x139   :  { %1056 = vmatpush.msra.mxu2 %v4241_v13  ;;  %1076 = vmatpush.msra.mxu3 %v4244_v15 }
 0x13a   :  { %1017 = vmatpush.msra.mxu0 %v4246_v16  ;;  %1037 = vmatpush.msra.mxu1 %v4248_v17 }
 0x13b   :  { %1057 = vmatpush.msra.mxu2 %v4250_v19  ;;  %1077 = vmatpush.msra.mxu3 %v4252_v20 }
 0x13c   :  { %1018 = vmatpush.msra.mxu0 %v4256_v21  ;;  %1038 = vmatpush.msra.mxu1 %v4258_v22 }
 0x13d   :  { %1058 = vmatpush.msra.mxu2 %v4261_v24  ;;  %1078 = vmatpush.msra.mxu3 %v4264_v25 }
 0x13e   :  { %1019 = vmatpush.msra.mxu0 %v4272_v29  ;;  %1039 = vmatpush.msra.mxu1 %v4274_v30 }
 0x13f   :  { %1059 = vmatpush.msra.mxu2 %v6114_v32  ;;  %1079 = vmatpush.msra.mxu3 %v6115_v34 }
 0x140   :  { %1020 = vmatpush.msra.mxu0 %v6116_v35  ;;  %1040 = vmatpush.msra.mxu1 %v6117_v38 }
 0x141   :  { %1060 = vmatpush.msra.mxu2 %v6118_v44  ;;  %1080 = vmatpush.msra.mxu3 %v6119_v26 }
 0x142   :  { %1021 = vmatpush.msra.mxu0 %v6120_v18  ;;  %1041 = vmatpush.msra.mxu1 %v6121_v33 }
 0x143   :  { %1061 = vmatpush.msra.mxu2 %v6122_v27  ;;  %1081 = vmatpush.msra.mxu3 %v6123_v59  ;;  %v6145_v27 = vld [vmem:[#allocation53_spill] sm:$0xff] }
 0x144   :  { %1022 = vmatpush.msra.mxu0 %v6124_v40  ;;  %1042 = vmatpush.msra.mxu1 %v6125_v8 }
 0x145   :  { %1062 = vmatpush.msra.mxu2 %v6126_v53  ;;  %1082 = vmatpush.msra.mxu3 %v6127_v4  ;;  %v6143_v53 = vld [vmem:[#allocation52_spill] sm:$0xff] }
 0x146   :  { %1023 = vmatpush.msra.mxu0 %v6128_v28  ;;  %1043 = vmatpush.msra.mxu1 %v6129_v12  ;;  %v6139_v28 = vld [vmem:[#allocation50_spill] sm:$0xff]  ;;  %v6140_v12 = vld [vmem:[#allocation76_spill] sm:$0xff] }
 0x147   :  { %1063 = vmatpush.msra.mxu2 %v6130_v7  ;;  %1083 = vmatpush.msra.mxu3 %v6131_v49  ;;  %v6141_v7 = vld [vmem:[#allocation51_spill] sm:$0xff]  ;;  %v6142_v49 = vld [vmem:[#allocation77_spill] sm:$0xff] }
 0x148   :  { %1024 = vmatpush.msra.mxu0 %v6132_v31  ;;  %1044 = vmatpush.msra.mxu1 %v6133_v52  ;;  %v359_v4 = vadd.f32 %v6141_v7, %v6140_v12  ;;  %v400_v31 = vadd.f32 %v6143_v53, %v6142_v49 }
 0x149   :  { %1064 = vmatpush.msra.mxu2 %v6134_v54  ;;  %1084 = vmatpush.msra.mxu3 %v6135_v23 }
 0x14a   :  { %1025 = vmatpush.msra.mxu0 %v6136_v14  ;;  %1045 = vmatpush.msra.mxu1 %v6137_v63  ;;  %v6144_v14 = vld [vmem:[#allocation80_spill] sm:$0xff] }
 0x14b   :  { %1065 = vmatpush.msra.mxu2 %v6138_v57  ;;  %1085 = vmatpush.msra.mxu3 %v6139_v28  ;;  %v441_v63 = vadd.f32 %v6145_v27, %v6144_v14 }
 0x1a7   :  { %v715_v8 = vpop.f32.mrf.mxu0  ;;  %v735_v52 = vpop.f32.mrf.mxu1 }
 0x1a8   :  { %v778_v40 = vadd.f32 %v715_v8, %v359_v4  ;;  %v779_v54 = vadd.f32 %v735_v52, %v400_v31  ;;  %v6146_v4 = vld [vmem:[#allocation82_spill] sm:$0xff] }
 0x1aa   :  { %v3524_v59 = vmul.f32 -1.442695, %v778_v40  ;;  %v3525_v23 = vmul.f32 -1.442695, %v779_v54  ;;  %v6147_v40 = vld [vmem:[#allocation54_spill] sm:$0xff] }
 0x1ab   :  { %v482_v31 = vadd.f32 %v6147_v40, %v6146_v4 }
 0x1ac   :  { %3600 = vpow2.f32 %v3524_v59 }
 0x1ad   :  { %3602 = vpow2.f32 %v3525_v23 }
 0x1ae   :  { %v755_v57 = vpop.f32.mrf.mxu2  ;;  %v775_v53 = vpop.f32.mrf.mxu3 }
 0x1af   :  { %v780_v33 = vadd.f32 %v755_v57, %v441_v63  ;;  %v781_v54 = vadd.f32 %v775_v53, %v482_v31 }
 0x1b1   :  { %v3526_v28 = vmul.f32 -1.442695, %v780_v33 }
 0x1b2   :  { %v3601_v18 = vpop.eup %3600 }
 0x1b3   :  { %v3603_v26 = vpop.eup %3602  ;;  %v791_v7 = vadd.f32 1.0, %v3601_v18  ;;  %3604 = vpow2.f32 %v3526_v28 }
 0x1b4   :  { %v792_v12 = vadd.f32 1.0, %v3603_v26 }
 0x1b5   :  { %3606 = vrcp.f32 %v791_v7  ;;  %v805_v14 = vand.u32 2147483648, %v791_v7  ;;  %v803_v28 = vand.u32 2147483647, %v791_v7  ;;  %vm799_vm14 = vweird.f32 %v791_v7 }
 0x1b6   :  { %3608 = vrcp.f32 %v792_v12  ;;  %v820_v18 = vand.u32 2147483648, %v792_v12  ;;  %v818_v44 = vand.u32 2147483647, %v792_v12  ;;  %vm814_vm15 = vweird.f32 %v792_v12 }
 0x1b7   :  { %vm804_vm2 = vcmp.eq.f32.partialorder %v803_v28, 8.507059e+37  ;;  %v6155_v28 = vld [vmem:[#allocation31_spill] sm:$0xff] }
 0x1b8   :  { %vm819_vm3 = vcmp.eq.f32.partialorder %v818_v44, 8.507059e+37 }
 0x1b9   :  { %v3605_v8 = vpop.eup %3604 }
 0x1ba   :  { %v793_v59 = vadd.f32 1.0, %v3605_v8  ;;  %v806_v8 = vor.u32 1.1754944e-38, %v805_v14 }
 0x1bb   :  { %v3607_v52 = vpop.eup %3606 }
 0x1bc   :  { %v3609_v27 = vpop.eup %3608  ;;  %v795_v23 = vmul.f32 %v3607_v52, %v791_v7  ;;  %3610 = vrcp.f32 %v793_v59  ;;  %vm800_vm12 = vweird.f32 %v3607_v52  ;;  %v835_v14 = vand.u32 2147483648, %v793_v59 }
 0x1bd   :  { %v810_v57 = vmul.f32 %v3609_v27, %v792_v12  ;;  %3612 = vtanh.f32 %v781_v54  ;;  %vm815_vm13 = vweird.f32 %v3609_v27  ;;  %vm801_vm0 = vmor %vm799_vm14, %vm800_vm12  ;;  %vm829_vm5 = vweird.f32 %v793_v59 }
 0x1be   :  { %v796_v33 = vsub.f32 1.0, %v795_v23  ;;  %vm816_vm1 = vmor %vm814_vm15, %vm815_vm13  ;;  %v821_v23 = vor.u32 1.1754944e-38, %v820_v18  ;;  %v836_v18 = vor.u32 1.1754944e-38, %v835_v14  ;;  %v6167_v14 = vld [vmem:[#allocation43_spill] sm:$0xff] }
 0x1bf   :  { %v811_v63 = vsub.f32 1.0, %v810_v57 }
 0x1c0   :  { %v797_v26 = vmul.f32 %v3607_v52, %v796_v33 }
 0x1c1   :  { %v812_v49 = vmul.f32 %v3609_v27, %v811_v63 }
 0x1c2   :  { %v3611_v38 = vpop.eup %3610  ;;  %v798_v40 = vadd.f32 %v3607_v52, %v797_v26 }
 0x1c3   :  { %v825_v53 = vmul.f32 %v3611_v38, %v793_v59  ;;  %v813_v31 = vadd.f32 %v3609_v27, %v812_v49  ;;  %v3613_v54 = vpop.eup %3612  ;;  %vm830_vm4 = vweird.f32 %v3611_v38  ;;  %v833_v49 = vand.u32 2147483647, %v793_v59  ;;  %v6154_v59 = vld [vmem:[#allocation30_spill] sm:$0xff] }
 0x1c4   :  { %v802_v57 = vsel %vm801_vm0, %v3607_v52, %v798_v40  ;;  %vm831_vm6 = vmor %vm829_vm5, %vm830_vm4  ;;  %v6156_v40 = vld [vmem:[#allocation32_spill] sm:$0xff] }
 0x1c5   :  { %v826_v4 = vsub.f32 1.0, %v825_v53  ;;  %v807_v33 = vsel %vm804_vm2, %v806_v8, %v802_v57  ;;  %v817_v35 = vsel %vm816_vm1, %v3609_v27, %v813_v31  ;;  %vm834_vm7 = vcmp.eq.f32.partialorder %v833_v49, 8.507059e+37  ;;  %v6157_v53 = vld [vmem:[#allocation33_spill] sm:$0xff]  ;;  %v6158_v8 = vld [vmem:[#allocation34_spill] sm:$0xff]  ;;  %v6159_v31 = vld [vmem:[#allocation35_spill] sm:$0xff] }
 0x1c6   :  { %v822_v63 = vsel %vm819_vm3, %v821_v23, %v817_v35  ;;  %v841_v34 = vmul.f32 %v3613_v54, %v807_v33  ;;  %v6160_v23 = vld [vmem:[#allocation36_spill] sm:$0xff]  ;;  %v6161_v57 = vld [vmem:[#allocation37_spill] sm:$0xff]  ;;  %v6162_v54 = vld [vmem:[#allocation38_spill] sm:$0xff] }
 0x1c7   :  { %v827_v32 = vmul.f32 %v3611_v38, %v826_v4  ;;  %v840_v26 = vmul.f32 %v822_v63, %v4557_v9  ;;  %v6149_v9 = vld [vmem:[#allocation25_spill] sm:$0xff]  ;;  %v6163_v33 = vld [vmem:[#allocation39_spill] sm:$0xff]  ;;  %v6164_v63 = vld [vmem:[#allocation40_spill] sm:$0xff] }
 0x1c8   :  { %v6153_v4 = vld [vmem:[#allocation29_spill] sm:$0xff]  ;;  %v6168_v49 = vld [vmem:[#allocation44_spill] sm:$0xff] }
 0x1c9   :  { %v4639_v7 = vadd.f32 %v841_v34, %v840_v26  ;;  %v828_v12 = vadd.f32 %v3611_v38, %v827_v32  ;;  %v6150_v32 = vld [vmem:[#allocation26_spill] sm:$0xff]  ;;  %v6151_v34 = vld [vmem:[#allocation27_spill] sm:$0xff]  ;;  %v6165_v26 = vld [vmem:[#allocation41_spill] sm:$0xff] }
 0x1cb   :  { %3614 = vtanh.f32 %v4639_v7  ;;  %v832_v52 = vsel %vm831_vm6, %v3611_v38, %v828_v12  ;;  %v6152_v38 = vld [vmem:[#allocation28_spill] sm:$0xff]  ;;  %v6166_v12 = vld [vmem:[#allocation42_spill] sm:$0xff] }
 0x1cc   :  { %v837_v44 = vsel %vm834_vm7, %v836_v18, %v832_v52  ;;  %v6169_v52 = vld [vmem:[#allocation45_spill] sm:$0xff]  ;;  %v6170_v18 = vld [vmem:[#allocation46_spill] sm:$0xff] }
 0x1d1   :  { %v3615_v27 = vpop.eup %3614 }
 0x1d2   :  { %v4642_v35 = vmul.f32 %v3615_v27, %v837_v44  ;;  %v6171_v27 = vld [vmem:[#allocation47_spill] sm:$0xff]  ;;  %v6172_v44 = vld [vmem:[#allocation48_spill] sm:$0xff] }
 0x1d4   :  { %6148 = vst [vmem:[#allocation51_spill] sm:$0xff] %v4642_v35  ;;  %870 = vmatmul.f32.vlgmr.msrb.gmra.mxu0 %v4642_v35  ;;  %890 = vmatmul.f32.vlgmr.msrb.gmra.mxu1 %v4642_v35 }
 0x1d5   :  { %910 = vmatmul.f32.vlgmr.msrb.gmra.mxu2 %v4642_v35  ;;  %930 = vmatmul.f32.vlgmr.msrb.gmra.mxu3 %v4642_v35  ;;  %v6173_v35 = vld [vmem:[#allocation49_spill] sm:$0xff] }
 0x1d6   :  { %1166 = vmatpush.msrb.mxu0 %v4166_v36  ;;  %1186 = vmatpush.msrb.mxu1 %v4168_v37 }
 0x1d7   :  { %1206 = vmatpush.msrb.mxu2 %v4170_v39  ;;  %1226 = vmatpush.msrb.mxu3 %v4172_v41 }
 0x1d8   :  { %1167 = vmatpush.msrb.mxu0 %v4174_v42  ;;  %1187 = vmatpush.msrb.mxu1 %v4176_v43 }
 0x1d9   :  { %1207 = vmatpush.msrb.mxu2 %v4178_v45  ;;  %1227 = vmatpush.msrb.mxu3 %v4180_v46 }
 0x1da   :  { %1168 = vmatpush.msrb.mxu0 %v4184_v47  ;;  %1188 = vmatpush.msrb.mxu1 %v4186_v48 }
 0x1db   :  { %1208 = vmatpush.msrb.mxu2 %v4189_v50  ;;  %1228 = vmatpush.msrb.mxu3 %v4192_v51 }
 0x1dc   :  { %1169 = vmatpush.msrb.mxu0 %v4200_v55  ;;  %1189 = vmatpush.msrb.mxu1 %v4202_v56 }
 0x1dd   :  { %1209 = vmatpush.msrb.mxu2 %v4205_v58  ;;  %1229 = vmatpush.msrb.mxu3 %v4208_v60 }
 0x1de   :  { %1170 = vmatpush.msrb.mxu0 %v4210_v61  ;;  %1190 = vmatpush.msrb.mxu1 %v4212_v62 }
 0x1df   :  { %1210 = vmatpush.msrb.mxu2 %v4214_v0  ;;  %1230 = vmatpush.msrb.mxu3 %v4216_v1 }
 0x1e0   :  { %1171 = vmatpush.msrb.mxu0 %v4220_v2  ;;  %1191 = vmatpush.msrb.mxu1 %v4222_v3 }
 0x1e1   :  { %1211 = vmatpush.msrb.mxu2 %v4225_v5  ;;  %1231 = vmatpush.msrb.mxu3 %v4228_v6 }
 0x1e2   :  { %1172 = vmatpush.msrb.mxu0 %v4236_v10  ;;  %1192 = vmatpush.msrb.mxu1 %v4238_v11 }
 0x1e3   :  { %1212 = vmatpush.msrb.mxu2 %v4241_v13  ;;  %1232 = vmatpush.msrb.mxu3 %v4244_v15 }
 0x1e4   :  { %1173 = vmatpush.msrb.mxu0 %v4246_v16  ;;  %1193 = vmatpush.msrb.mxu1 %v4248_v17 }
 0x1e5   :  { %1213 = vmatpush.msrb.mxu2 %v4250_v19  ;;  %1233 = vmatpush.msrb.mxu3 %v4252_v20 }
 0x1e6   :  { %1174 = vmatpush.msrb.mxu0 %v4256_v21  ;;  %1194 = vmatpush.msrb.mxu1 %v4258_v22 }
 0x1e7   :  { %1214 = vmatpush.msrb.mxu2 %v4261_v24  ;;  %1234 = vmatpush.msrb.mxu3 %v4264_v25 }
 0x1e8   :  { %1175 = vmatpush.msrb.mxu0 %v4272_v29  ;;  %1195 = vmatpush.msrb.mxu1 %v4274_v30 }
 0x1e9   :  { %1215 = vmatpush.msrb.mxu2 %v6149_v9  ;;  %1235 = vmatpush.msrb.mxu3 %v6150_v32 }
 0x1ea   :  { %1176 = vmatpush.msrb.mxu0 %v6151_v34  ;;  %1196 = vmatpush.msrb.mxu1 %v6152_v38 }
 0x1eb   :  { %1216 = vmatpush.msrb.mxu2 %v6153_v4  ;;  %1236 = vmatpush.msrb.mxu3 %v6154_v59 }
 0x1ec   :  { %1177 = vmatpush.msrb.mxu0 %v6155_v28  ;;  %1197 = vmatpush.msrb.mxu1 %v6156_v40 }
 0x1ed   :  { %1217 = vmatpush.msrb.mxu2 %v6157_v53  ;;  %1237 = vmatpush.msrb.mxu3 %v6158_v8  ;;  %v6180_v53 = vld [vmem:[#allocation57_spill] sm:$0xff] }
 0x1ee   :  { %1178 = vmatpush.msrb.mxu0 %v6159_v31  ;;  %1198 = vmatpush.msrb.mxu1 %v6160_v23 }
 0x1ef   :  { %1218 = vmatpush.msrb.mxu2 %v6161_v57  ;;  %1238 = vmatpush.msrb.mxu3 %v6162_v54  ;;  %v6178_v57 = vld [vmem:[#allocation56_spill] sm:$0xff] }
 0x1f0   :  { %1179 = vmatpush.msrb.mxu0 %v6163_v33  ;;  %1199 = vmatpush.msrb.mxu1 %v6164_v63  ;;  %v6174_v33 = vld [vmem:[#allocation50_spill] sm:$0xff]  ;;  %v6175_v63 = vld [vmem:[#allocation76_spill] sm:$0xff] }
 0x1f1   :  { %1219 = vmatpush.msrb.mxu2 %v6165_v26  ;;  %1239 = vmatpush.msrb.mxu3 %v6166_v12  ;;  %v6176_v26 = vld [vmem:[#allocation55_spill] sm:$0xff]  ;;  %v6177_v12 = vld [vmem:[#allocation77_spill] sm:$0xff] }
 0x1f2   :  { %1180 = vmatpush.msrb.mxu0 %v6167_v14  ;;  %1200 = vmatpush.msrb.mxu1 %v6168_v49  ;;  %v362_v54 = vadd.f32 %v6176_v26, %v6175_v63  ;;  %v403_v14 = vadd.f32 %v6178_v57, %v6177_v12 }
 0x1f3   :  { %1220 = vmatpush.msrb.mxu2 %v6169_v52  ;;  %1240 = vmatpush.msrb.mxu3 %v6170_v18 }
 0x1f4   :  { %1181 = vmatpush.msrb.mxu0 %v6171_v27  ;;  %1201 = vmatpush.msrb.mxu1 %v6172_v44  ;;  %v6179_v27 = vld [vmem:[#allocation80_spill] sm:$0xff] }
 0x1f5   :  { %1221 = vmatpush.msrb.mxu2 %v6173_v35  ;;  %1241 = vmatpush.msrb.mxu3 %v6174_v33  ;;  %v444_v44 = vadd.f32 %v6180_v53, %v6179_v27 }
 0x251   :  { %v871_v23 = vpop.f32.mrf.mxu0  ;;  %v891_v49 = vpop.f32.mrf.mxu1 }
 0x252   :  { %v934_v31 = vadd.f32 %v871_v23, %v362_v54  ;;  %v935_v52 = vadd.f32 %v891_v49, %v403_v14  ;;  %v6181_v54 = vld [vmem:[#allocation82_spill] sm:$0xff] }
 0x254   :  { %v3527_v8 = vmul.f32 -1.442695, %v934_v31  ;;  %v3528_v18 = vmul.f32 -1.442695, %v935_v52  ;;  %v6182_v31 = vld [vmem:[#allocation58_spill] sm:$0xff] }
 0x255   :  { %v485_v14 = vadd.f32 %v6182_v31, %v6181_v54 }
 0x256   :  { %3616 = vpow2.f32 %v3527_v8 }
 0x257   :  { %3618 = vpow2.f32 %v3528_v18 }
 0x258   :  { %v911_v35 = vpop.f32.mrf.mxu2  ;;  %v931_v57 = vpop.f32.mrf.mxu3 }
 0x259   :  { %v936_v40 = vadd.f32 %v911_v35, %v444_v44  ;;  %v937_v52 = vadd.f32 %v931_v57, %v485_v14 }
 0x25b   :  { %v3529_v33 = vmul.f32 -1.442695, %v936_v40 }
 0x25c   :  { %v3617_v28 = vpop.eup %3616 }
 0x25d   :  { %v3619_v59 = vpop.eup %3618  ;;  %v947_v26 = vadd.f32 1.0, %v3617_v28  ;;  %3620 = vpow2.f32 %v3529_v33 }
 0x25e   :  { %v948_v63 = vadd.f32 1.0, %v3619_v59 }
 0x25f   :  { %3622 = vrcp.f32 %v947_v26  ;;  %v961_v27 = vand.u32 2147483648, %v947_v26  ;;  %v959_v33 = vand.u32 2147483647, %v947_v26  ;;  %vm955_vm10 = vweird.f32 %v947_v26 }
 0x260   :  { %3624 = vrcp.f32 %v948_v63  ;;  %v976_v28 = vand.u32 2147483648, %v948_v63  ;;  %v974_v4 = vand.u32 2147483647, %v948_v63  ;;  %vm970_vm11 = vweird.f32 %v948_v63 }
 0x261   :  { %vm960_vm14 = vcmp.eq.f32.partialorder %v959_v33, 8.507059e+37  ;;  %v6190_v33 = vld [vmem:[#allocation31_spill] sm:$0xff] }
 0x262   :  { %vm975_vm15 = vcmp.eq.f32.partialorder %v974_v4, 8.507059e+37 }
 0x263   :  { %v3621_v23 = vpop.eup %3620 }
 0x264   :  { %v949_v8 = vadd.f32 1.0, %v3621_v23  ;;  %v962_v23 = vor.u32 1.1754944e-38, %v961_v27 }
 0x265   :  { %v3623_v49 = vpop.eup %3622 }
 0x266   :  { %v3625_v53 = vpop.eup %3624  ;;  %v951_v18 = vmul.f32 %v3623_v49, %v947_v26  ;;  %3626 = vrcp.f32 %v949_v8  ;;  %vm956_vm8 = vweird.f32 %v3623_v49  ;;  %v991_v27 = vand.u32 2147483648, %v949_v8 }
 0x267   :  { %v966_v35 = vmul.f32 %v3625_v53, %v948_v63  ;;  %3628 = vtanh.f32 %v937_v52  ;;  %vm971_vm9 = vweird.f32 %v3625_v53  ;;  %vm957_vm12 = vmor %vm955_vm10, %vm956_vm8  ;;  %vm985_vm1 = vweird.f32 %v949_v8 }
 0x268   :  { %v952_v40 = vsub.f32 1.0, %v951_v18  ;;  %vm972_vm13 = vmor %vm970_vm11, %vm971_vm9  ;;  %v977_v18 = vor.u32 1.1754944e-38, %v976_v28  ;;  %v992_v28 = vor.u32 1.1754944e-38, %v991_v27  ;;  %v6202_v27 = vld [vmem:[#allocation43_spill] sm:$0xff] }
 0x269   :  { %v967_v44 = vsub.f32 1.0, %v966_v35 }
 0x26a   :  { %v953_v59 = vmul.f32 %v3623_v49, %v952_v40 }
 0x26b   :  { %v968_v12 = vmul.f32 %v3625_v53, %v967_v44 }
 0x26c   :  { %v3627_v38 = vpop.eup %3626  ;;  %v954_v31 = vadd.f32 %v3623_v49, %v953_v59 }
 0x26d   :  { %v981_v57 = vmul.f32 %v3627_v38, %v949_v8  ;;  %v969_v14 = vadd.f32 %v3625_v53, %v968_v12  ;;  %v3629_v52 = vpop.eup %3628  ;;  %vm986_vm0 = vweird.f32 %v3627_v38  ;;  %v989_v12 = vand.u32 2147483647, %v949_v8  ;;  %v6189_v8 = vld [vmem:[#allocation30_spill] sm:$0xff] }
 0x26e   :  { %v958_v35 = vsel %vm957_vm12, %v3623_v49, %v954_v31  ;;  %vm987_vm2 = vmor %vm985_vm1, %vm986_vm0  ;;  %v6191_v31 = vld [vmem:[#allocation32_spill] sm:$0xff] }
 0x26f   :  { %v982_v54 = vsub.f32 1.0, %v981_v57  ;;  %v963_v40 = vsel %vm960_vm14, %v962_v23, %v958_v35  ;;  %v973_v34 = vsel %vm972_vm13, %v3625_v53, %v969_v14  ;;  %vm990_vm3 = vcmp.eq.f32.partialorder %v989_v12, 8.507059e+37  ;;  %v6192_v57 = vld [vmem:[#allocation33_spill] sm:$0xff]  ;;  %v6193_v23 = vld [vmem:[#allocation34_spill] sm:$0xff]  ;;  %v6194_v14 = vld [vmem:[#allocation35_spill] sm:$0xff] }
 0x270   :  { %v978_v44 = vsel %vm975_vm15, %v977_v18, %v973_v34  ;;  %v997_v32 = vmul.f32 %v3629_v52, %v963_v40  ;;  %v6195_v18 = vld [vmem:[#allocation36_spill] sm:$0xff]  ;;  %v6196_v35 = vld [vmem:[#allocation37_spill] sm:$0xff]  ;;  %v6197_v52 = vld [vmem:[#allocation38_spill] sm:$0xff] }
 0x271   :  { %v983_v9 = vmul.f32 %v3627_v38, %v982_v54  ;;  %v996_v59 = vmul.f32 %v978_v44, %v4639_v7  ;;  %v6184_v7 = vld [vmem:[#allocation25_spill] sm:$0xff]  ;;  %v6198_v40 = vld [vmem:[#allocation39_spill] sm:$0xff]  ;;  %v6199_v44 = vld [vmem:[#allocation40_spill] sm:$0xff] }
 0x272   :  { %v6188_v54 = vld [vmem:[#allocation29_spill] sm:$0xff]  ;;  %v6203_v12 = vld [vmem:[#allocation44_spill] sm:$0xff] }
 0x273   :  { %v4721_v26 = vadd.f32 %v997_v32, %v996_v59  ;;  %v984_v63 = vadd.f32 %v3627_v38, %v983_v9  ;;  %v6185_v9 = vld [vmem:[#allocation26_spill] sm:$0xff]  ;;  %v6186_v32 = vld [vmem:[#allocation27_spill] sm:$0xff]  ;;  %v6200_v59 = vld [vmem:[#allocation41_spill] sm:$0xff] }
 0x275   :  { %3630 = vtanh.f32 %v4721_v26  ;;  %v988_v49 = vsel %vm987_vm2, %v3627_v38, %v984_v63  ;;  %v6187_v38 = vld [vmem:[#allocation28_spill] sm:$0xff]  ;;  %v6201_v63 = vld [vmem:[#allocation42_spill] sm:$0xff] }
 0x276   :  { %v993_v4 = vsel %vm990_vm3, %v992_v28, %v988_v49  ;;  %v6204_v49 = vld [vmem:[#allocation45_spill] sm:$0xff]  ;;  %v6205_v28 = vld [vmem:[#allocation46_spill] sm:$0xff] }
 0x27b   :  { %v3631_v53 = vpop.eup %3630 }
 0x27c   :  { %v4724_v34 = vmul.f32 %v3631_v53, %v993_v4  ;;  %v6206_v53 = vld [vmem:[#allocation47_spill] sm:$0xff]  ;;  %v6207_v4 = vld [vmem:[#allocation48_spill] sm:$0xff] }
 0x27e   :  { %6183 = vst [vmem:[#allocation52_spill] sm:$0xff] %v4724_v34  ;;  %1026 = vmatmul.f32.vlgmr.msra.gmra.mxu0 %v4724_v34  ;;  %1046 = vmatmul.f32.vlgmr.msra.gmra.mxu1 %v4724_v34 }
 0x27f   :  { %1066 = vmatmul.f32.vlgmr.msra.gmra.mxu2 %v4724_v34  ;;  %1086 = vmatmul.f32.vlgmr.msra.gmra.mxu3 %v4724_v34  ;;  %v6208_v34 = vld [vmem:[#allocation49_spill] sm:$0xff] }
 0x280   :  { %1322 = vmatpush.msra.mxu0 %v4166_v36  ;;  %1342 = vmatpush.msra.mxu1 %v4168_v37 }
 0x281   :  { %1362 = vmatpush.msra.mxu2 %v4170_v39  ;;  %1382 = vmatpush.msra.mxu3 %v4172_v41 }
 0x282   :  { %1323 = vmatpush.msra.mxu0 %v4174_v42  ;;  %1343 = vmatpush.msra.mxu1 %v4176_v43 }
 0x283   :  { %1363 = vmatpush.msra.mxu2 %v4178_v45  ;;  %1383 = vmatpush.msra.mxu3 %v4180_v46 }
 0x284   :  { %1324 = vmatpush.msra.mxu0 %v4184_v47  ;;  %1344 = vmatpush.msra.mxu1 %v4186_v48 }
 0x285   :  { %1364 = vmatpush.msra.mxu2 %v4189_v50  ;;  %1384 = vmatpush.msra.mxu3 %v4192_v51 }
 0x286   :  { %1325 = vmatpush.msra.mxu0 %v4200_v55  ;;  %1345 = vmatpush.msra.mxu1 %v4202_v56 }
 0x287   :  { %1365 = vmatpush.msra.mxu2 %v4205_v58  ;;  %1385 = vmatpush.msra.mxu3 %v4208_v60 }
 0x288   :  { %1326 = vmatpush.msra.mxu0 %v4210_v61  ;;  %1346 = vmatpush.msra.mxu1 %v4212_v62 }
 0x289   :  { %1366 = vmatpush.msra.mxu2 %v4214_v0  ;;  %1386 = vmatpush.msra.mxu3 %v4216_v1 }
 0x28a   :  { %1327 = vmatpush.msra.mxu0 %v4220_v2  ;;  %1347 = vmatpush.msra.mxu1 %v4222_v3 }
 0x28b   :  { %1367 = vmatpush.msra.mxu2 %v4225_v5  ;;  %1387 = vmatpush.msra.mxu3 %v4228_v6 }
 0x28c   :  { %1328 = vmatpush.msra.mxu0 %v4236_v10  ;;  %1348 = vmatpush.msra.mxu1 %v4238_v11 }
 0x28d   :  { %1368 = vmatpush.msra.mxu2 %v4241_v13  ;;  %1388 = vmatpush.msra.mxu3 %v4244_v15 }
 0x28e   :  { %1329 = vmatpush.msra.mxu0 %v4246_v16  ;;  %1349 = vmatpush.msra.mxu1 %v4248_v17 }
 0x28f   :  { %1369 = vmatpush.msra.mxu2 %v4250_v19  ;;  %1389 = vmatpush.msra.mxu3 %v4252_v20 }
 0x290   :  { %1330 = vmatpush.msra.mxu0 %v4256_v21  ;;  %1350 = vmatpush.msra.mxu1 %v4258_v22 }
 0x291   :  { %1370 = vmatpush.msra.mxu2 %v4261_v24  ;;  %1390 = vmatpush.msra.mxu3 %v4264_v25 }
 0x292   :  { %1331 = vmatpush.msra.mxu0 %v4272_v29  ;;  %1351 = vmatpush.msra.mxu1 %v4274_v30 }
 0x293   :  { %1371 = vmatpush.msra.mxu2 %v6184_v7  ;;  %1391 = vmatpush.msra.mxu3 %v6185_v9 }
 0x294   :  { %1332 = vmatpush.msra.mxu0 %v6186_v32  ;;  %1352 = vmatpush.msra.mxu1 %v6187_v38 }
 0x295   :  { %1372 = vmatpush.msra.mxu2 %v6188_v54  ;;  %1392 = vmatpush.msra.mxu3 %v6189_v8 }
 0x296   :  { %1333 = vmatpush.msra.mxu0 %v6190_v33  ;;  %1353 = vmatpush.msra.mxu1 %v6191_v31 }
 0x297   :  { %1373 = vmatpush.msra.mxu2 %v6192_v57  ;;  %1393 = vmatpush.msra.mxu3 %v6193_v23  ;;  %v6215_v57 = vld [vmem:[#allocation61_spill] sm:$0xff] }
 0x298   :  { %1334 = vmatpush.msra.mxu0 %v6194_v14  ;;  %1354 = vmatpush.msra.mxu1 %v6195_v18 }
 0x299   :  { %1374 = vmatpush.msra.mxu2 %v6196_v35  ;;  %1394 = vmatpush.msra.mxu3 %v6197_v52  ;;  %v6213_v35 = vld [vmem:[#allocation60_spill] sm:$0xff] }
 0x29a   :  { %1335 = vmatpush.msra.mxu0 %v6198_v40  ;;  %1355 = vmatpush.msra.mxu1 %v6199_v44  ;;  %v6209_v40 = vld [vmem:[#allocation50_spill] sm:$0xff]  ;;  %v6210_v44 = vld [vmem:[#allocation76_spill] sm:$0xff] }
 0x29b   :  { %1375 = vmatpush.msra.mxu2 %v6200_v59  ;;  %1395 = vmatpush.msra.mxu3 %v6201_v63  ;;  %v6211_v59 = vld [vmem:[#allocation59_spill] sm:$0xff]  ;;  %v6212_v63 = vld [vmem:[#allocation77_spill] sm:$0xff] }
 0x29c   :  { %1336 = vmatpush.msra.mxu0 %v6202_v27  ;;  %1356 = vmatpush.msra.mxu1 %v6203_v12  ;;  %v365_v52 = vadd.f32 %v6211_v59, %v6210_v44  ;;  %v406_v27 = vadd.f32 %v6213_v35, %v6212_v63 }
 0x29d   :  { %1376 = vmatpush.msra.mxu2 %v6204_v49  ;;  %1396 = vmatpush.msra.mxu3 %v6205_v28 }
 0x29e   :  { %1337 = vmatpush.msra.mxu0 %v6206_v53  ;;  %1357 = vmatpush.msra.mxu1 %v6207_v4  ;;  %v6214_v53 = vld [vmem:[#allocation80_spill] sm:$0xff] }
 0x29f   :  { %1377 = vmatpush.msra.mxu2 %v6208_v34  ;;  %1397 = vmatpush.msra.mxu3 %v6209_v40  ;;  %v447_v4 = vadd.f32 %v6215_v57, %v6214_v53 }
 0x2fb   :  { %v1027_v18 = vpop.f32.mrf.mxu0  ;;  %v1047_v12 = vpop.f32.mrf.mxu1 }
 0x2fc   :  { %v1090_v14 = vadd.f32 %v1027_v18, %v365_v52  ;;  %v1091_v49 = vadd.f32 %v1047_v12, %v406_v27  ;;  %v6216_v52 = vld [vmem:[#allocation82_spill] sm:$0xff] }
 0x2fe   :  { %v3530_v23 = vmul.f32 -1.442695, %v1090_v14  ;;  %v3531_v28 = vmul.f32 -1.442695, %v1091_v49  ;;  %v6217_v14 = vld [vmem:[#allocation62_spill] sm:$0xff] }
 0x2ff   :  { %v488_v27 = vadd.f32 %v6217_v14, %v6216_v52 }
 0x300   :  { %3632 = vpow2.f32 %v3530_v23 }
 0x301   :  { %3634 = vpow2.f32 %v3531_v28 }
 0x302   :  { %v1067_v34 = vpop.f32.mrf.mxu2  ;;  %v1087_v35 = vpop.f32.mrf.mxu3 }
 0x303   :  { %v1092_v31 = vadd.f32 %v1067_v34, %v447_v4  ;;  %v1093_v49 = vadd.f32 %v1087_v35, %v488_v27 }
 0x305   :  { %v3532_v40 = vmul.f32 -1.442695, %v1092_v31 }
 0x306   :  { %v3633_v33 = vpop.eup %3632 }
 0x307   :  { %v3635_v8 = vpop.eup %3634  ;;  %v1103_v59 = vadd.f32 1.0, %v3633_v33  ;;  %3636 = vpow2.f32 %v3532_v40 }
 0x308   :  { %v1104_v44 = vadd.f32 1.0, %v3635_v8 }
 0x309   :  { %3638 = vrcp.f32 %v1103_v59  ;;  %v1117_v53 = vand.u32 2147483648, %v1103_v59  ;;  %v1115_v40 = vand.u32 2147483647, %v1103_v59  ;;  %vm1111_vm6 = vweird.f32 %v1103_v59 }
 0x30a   :  { %3640 = vrcp.f32 %v1104_v44  ;;  %v1132_v33 = vand.u32 2147483648, %v1104_v44  ;;  %v1130_v54 = vand.u32 2147483647, %v1104_v44  ;;  %vm1126_vm7 = vweird.f32 %v1104_v44 }
 0x30b   :  { %vm1116_vm10 = vcmp.eq.f32.partialorder %v1115_v40, 8.507059e+37  ;;  %v6225_v40 = vld [vmem:[#allocation31_spill] sm:$0xff] }
 0x30c   :  { %vm1131_vm11 = vcmp.eq.f32.partialorder %v1130_v54, 8.507059e+37 }
 0x30d   :  { %v3637_v18 = vpop.eup %3636 }
 0x30e   :  { %v1105_v23 = vadd.f32 1.0, %v3637_v18  ;;  %v1118_v18 = vor.u32 1.1754944e-38, %v1117_v53 }
 0x30f   :  { %v3639_v12 = vpop.eup %3638 }
 0x310   :  { %v3641_v57 = vpop.eup %3640  ;;  %v1107_v28 = vmul.f32 %v3639_v12, %v1103_v59  ;;  %3642 = vrcp.f32 %v1105_v23  ;;  %vm1112_vm4 = vweird.f32 %v3639_v12  ;;  %v1147_v53 = vand.u32 2147483648, %v1105_v23 }
 0x311   :  { %v1122_v34 = vmul.f32 %v3641_v57, %v1104_v44  ;;  %3644 = vtanh.f32 %v1093_v49  ;;  %vm1127_vm5 = vweird.f32 %v3641_v57  ;;  %vm1113_vm8 = vmor %vm1111_vm6, %vm1112_vm4  ;;  %vm1141_vm13 = vweird.f32 %v1105_v23 }
 0x312   :  { %v1108_v31 = vsub.f32 1.0, %v1107_v28  ;;  %vm1128_vm9 = vmor %vm1126_vm7, %vm1127_vm5  ;;  %v1133_v28 = vor.u32 1.1754944e-38, %v1132_v33  ;;  %v1148_v33 = vor.u32 1.1754944e-38, %v1147_v53  ;;  %v6237_v53 = vld [vmem:[#allocation43_spill] sm:$0xff] }
 0x313   :  { %v1123_v4 = vsub.f32 1.0, %v1122_v34 }
 0x314   :  { %v1109_v8 = vmul.f32 %v3639_v12, %v1108_v31 }
 0x315   :  { %v1124_v63 = vmul.f32 %v3641_v57, %v1123_v4 }
 0x316   :  { %v3643_v38 = vpop.eup %3642  ;;  %v1110_v14 = vadd.f32 %v3639_v12, %v1109_v8 }
 0x317   :  { %v1137_v35 = vmul.f32 %v3643_v38, %v1105_v23  ;;  %v1125_v27 = vadd.f32 %v3641_v57, %v1124_v63  ;;  %v3645_v49 = vpop.eup %3644  ;;  %vm1142_vm12 = vweird.f32 %v3643_v38  ;;  %v1145_v63 = vand.u32 2147483647, %v1105_v23  ;;  %v6224_v23 = vld [vmem:[#allocation30_spill] sm:$0xff] }
 0x318   :  { %v1114_v34 = vsel %vm1113_vm8, %v3639_v12, %v1110_v14  ;;  %vm1143_vm14 = vmor %vm1141_vm13, %vm1142_vm12  ;;  %v6226_v14 = vld [vmem:[#allocation32_spill] sm:$0xff] }
 0x319   :  { %v1138_v52 = vsub.f32 1.0, %v1137_v35  ;;  %v1119_v31 = vsel %vm1116_vm10, %v1118_v18, %v1114_v34  ;;  %v1129_v32 = vsel %vm1128_vm9, %v3641_v57, %v1125_v27  ;;  %vm1146_vm15 = vcmp.eq.f32.partialorder %v1145_v63, 8.507059e+37  ;;  %v6227_v35 = vld [vmem:[#allocation33_spill] sm:$0xff]  ;;  %v6228_v18 = vld [vmem:[#allocation34_spill] sm:$0xff]  ;;  %v6229_v27 = vld [vmem:[#allocation35_spill] sm:$0xff] }
 0x31a   :  { %v1134_v4 = vsel %vm1131_vm11, %v1133_v28, %v1129_v32  ;;  %v1153_v9 = vmul.f32 %v3645_v49, %v1119_v31  ;;  %v6230_v28 = vld [vmem:[#allocation36_spill] sm:$0xff]  ;;  %v6231_v34 = vld [vmem:[#allocation37_spill] sm:$0xff]  ;;  %v6232_v49 = vld [vmem:[#allocation38_spill] sm:$0xff] }
 0x31b   :  { %v1139_v7 = vmul.f32 %v3643_v38, %v1138_v52  ;;  %v1152_v8 = vmul.f32 %v1134_v4, %v4721_v26  ;;  %v6219_v26 = vld [vmem:[#allocation25_spill] sm:$0xff]  ;;  %v6233_v31 = vld [vmem:[#allocation39_spill] sm:$0xff]  ;;  %v6234_v4 = vld [vmem:[#allocation40_spill] sm:$0xff] }
 0x31c   :  { %v6223_v52 = vld [vmem:[#allocation29_spill] sm:$0xff]  ;;  %v6238_v63 = vld [vmem:[#allocation44_spill] sm:$0xff] }
 0x31d   :  { %v4803_v59 = vadd.f32 %v1153_v9, %v1152_v8  ;;  %v1140_v44 = vadd.f32 %v3643_v38, %v1139_v7  ;;  %v6220_v7 = vld [vmem:[#allocation26_spill] sm:$0xff]  ;;  %v6221_v9 = vld [vmem:[#allocation27_spill] sm:$0xff]  ;;  %v6235_v8 = vld [vmem:[#allocation41_spill] sm:$0xff] }
 0x31f   :  { %3646 = vtanh.f32 %v4803_v59  ;;  %v1144_v12 = vsel %vm1143_vm14, %v3643_v38, %v1140_v44  ;;  %v6222_v38 = vld [vmem:[#allocation28_spill] sm:$0xff]  ;;  %v6236_v44 = vld [vmem:[#allocation42_spill] sm:$0xff] }
 0x320   :  { %v1149_v54 = vsel %vm1146_vm15, %v1148_v33, %v1144_v12  ;;  %v6239_v12 = vld [vmem:[#allocation45_spill] sm:$0xff]  ;;  %v6240_v33 = vld [vmem:[#allocation46_spill] sm:$0xff] }
 0x325   :  { %v3647_v57 = vpop.eup %3646 }
 0x326   :  { %v4806_v32 = vmul.f32 %v3647_v57, %v1149_v54  ;;  %v6241_v57 = vld [vmem:[#allocation47_spill] sm:$0xff]  ;;  %v6242_v54 = vld [vmem:[#allocation48_spill] sm:$0xff] }
 0x328   :  { %6218 = vst [vmem:[#allocation53_spill] sm:$0xff] %v4806_v32  ;;  %1182 = vmatmul.f32.vlgmr.msrb.gmra.mxu0 %v4806_v32  ;;  %1202 = vmatmul.f32.vlgmr.msrb.gmra.mxu1 %v4806_v32 }
 0x329   :  { %1222 = vmatmul.f32.vlgmr.msrb.gmra.mxu2 %v4806_v32  ;;  %1242 = vmatmul.f32.vlgmr.msrb.gmra.mxu3 %v4806_v32  ;;  %v6243_v32 = vld [vmem:[#allocation49_spill] sm:$0xff] }
 0x32a   :  { %1478 = vmatpush.msrb.mxu0 %v4166_v36  ;;  %1498 = vmatpush.msrb.mxu1 %v4168_v37 }
 0x32b   :  { %1518 = vmatpush.msrb.mxu2 %v4170_v39  ;;  %1538 = vmatpush.msrb.mxu3 %v4172_v41 }
 0x32c   :  { %1479 = vmatpush.msrb.mxu0 %v4174_v42  ;;  %1499 = vmatpush.msrb.mxu1 %v4176_v43 }
 0x32d   :  { %1519 = vmatpush.msrb.mxu2 %v4178_v45  ;;  %1539 = vmatpush.msrb.mxu3 %v4180_v46 }
 0x32e   :  { %1480 = vmatpush.msrb.mxu0 %v4184_v47  ;;  %1500 = vmatpush.msrb.mxu1 %v4186_v48 }
 0x32f   :  { %1520 = vmatpush.msrb.mxu2 %v4189_v50  ;;  %1540 = vmatpush.msrb.mxu3 %v4192_v51 }
 0x330   :  { %1481 = vmatpush.msrb.mxu0 %v4200_v55  ;;  %1501 = vmatpush.msrb.mxu1 %v4202_v56 }
 0x331   :  { %1521 = vmatpush.msrb.mxu2 %v4205_v58  ;;  %1541 = vmatpush.msrb.mxu3 %v4208_v60 }
 0x332   :  { %1482 = vmatpush.msrb.mxu0 %v4210_v61  ;;  %1502 = vmatpush.msrb.mxu1 %v4212_v62 }
 0x333   :  { %1522 = vmatpush.msrb.mxu2 %v4214_v0  ;;  %1542 = vmatpush.msrb.mxu3 %v4216_v1 }
 0x334   :  { %1483 = vmatpush.msrb.mxu0 %v4220_v2  ;;  %1503 = vmatpush.msrb.mxu1 %v4222_v3 }
 0x335   :  { %1523 = vmatpush.msrb.mxu2 %v4225_v5  ;;  %1543 = vmatpush.msrb.mxu3 %v4228_v6 }
 0x336   :  { %1484 = vmatpush.msrb.mxu0 %v4236_v10  ;;  %1504 = vmatpush.msrb.mxu1 %v4238_v11 }
 0x337   :  { %1524 = vmatpush.msrb.mxu2 %v4241_v13  ;;  %1544 = vmatpush.msrb.mxu3 %v4244_v15 }
 0x338   :  { %1485 = vmatpush.msrb.mxu0 %v4246_v16  ;;  %1505 = vmatpush.msrb.mxu1 %v4248_v17 }
 0x339   :  { %1525 = vmatpush.msrb.mxu2 %v4250_v19  ;;  %1545 = vmatpush.msrb.mxu3 %v4252_v20 }
 0x33a   :  { %1486 = vmatpush.msrb.mxu0 %v4256_v21  ;;  %1506 = vmatpush.msrb.mxu1 %v4258_v22 }
 0x33b   :  { %1526 = vmatpush.msrb.mxu2 %v4261_v24  ;;  %1546 = vmatpush.msrb.mxu3 %v4264_v25 }
 0x33c   :  { %1487 = vmatpush.msrb.mxu0 %v4272_v29  ;;  %1507 = vmatpush.msrb.mxu1 %v4274_v30 }
 0x33d   :  { %1527 = vmatpush.msrb.mxu2 %v6219_v26  ;;  %1547 = vmatpush.msrb.mxu3 %v6220_v7 }
 0x33e   :  { %1488 = vmatpush.msrb.mxu0 %v6221_v9  ;;  %1508 = vmatpush.msrb.mxu1 %v6222_v38 }
 0x33f   :  { %1528 = vmatpush.msrb.mxu2 %v6223_v52  ;;  %1548 = vmatpush.msrb.mxu3 %v6224_v23 }
 0x340   :  { %1489 = vmatpush.msrb.mxu0 %v6225_v40  ;;  %1509 = vmatpush.msrb.mxu1 %v6226_v14 }
 0x341   :  { %1529 = vmatpush.msrb.mxu2 %v6227_v35  ;;  %1549 = vmatpush.msrb.mxu3 %v6228_v18  ;;  %v6250_v35 = vld [vmem:[#allocation65_spill] sm:$0xff] }
 0x342   :  { %1490 = vmatpush.msrb.mxu0 %v6229_v27  ;;  %1510 = vmatpush.msrb.mxu1 %v6230_v28 }
 0x343   :  { %1530 = vmatpush.msrb.mxu2 %v6231_v34  ;;  %1550 = vmatpush.msrb.mxu3 %v6232_v49  ;;  %v6248_v34 = vld [vmem:[#allocation64_spill] sm:$0xff] }
 0x344   :  { %1491 = vmatpush.msrb.mxu0 %v6233_v31  ;;  %1511 = vmatpush.msrb.mxu1 %v6234_v4  ;;  %v6244_v31 = vld [vmem:[#allocation50_spill] sm:$0xff]  ;;  %v6245_v4 = vld [vmem:[#allocation76_spill] sm:$0xff] }
 0x345   :  { %1531 = vmatpush.msrb.mxu2 %v6235_v8  ;;  %1551 = vmatpush.msrb.mxu3 %v6236_v44  ;;  %v6246_v8 = vld [vmem:[#allocation63_spill] sm:$0xff]  ;;  %v6247_v44 = vld [vmem:[#allocation77_spill] sm:$0xff] }
 0x346   :  { %1492 = vmatpush.msrb.mxu0 %v6237_v53  ;;  %1512 = vmatpush.msrb.mxu1 %v6238_v63  ;;  %v368_v49 = vadd.f32 %v6246_v8, %v6245_v4  ;;  %v409_v53 = vadd.f32 %v6248_v34, %v6247_v44 }
 0x347   :  { %1532 = vmatpush.msrb.mxu2 %v6239_v12  ;;  %1552 = vmatpush.msrb.mxu3 %v6240_v33 }
 0x348   :  { %1493 = vmatpush.msrb.mxu0 %v6241_v57  ;;  %1513 = vmatpush.msrb.mxu1 %v6242_v54  ;;  %v6249_v57 = vld [vmem:[#allocation80_spill] sm:$0xff] }
 0x349   :  { %1533 = vmatpush.msrb.mxu2 %v6243_v32  ;;  %1553 = vmatpush.msrb.mxu3 %v6244_v31  ;;  %v450_v54 = vadd.f32 %v6250_v35, %v6249_v57 }
 0x3a5   :  { %v1183_v28 = vpop.f32.mrf.mxu0  ;;  %v1203_v63 = vpop.f32.mrf.mxu1 }
 0x3a6   :  { %v1246_v27 = vadd.f32 %v1183_v28, %v368_v49  ;;  %v1247_v12 = vadd.f32 %v1203_v63, %v409_v53  ;;  %v6251_v49 = vld [vmem:[#allocation82_spill] sm:$0xff] }
 0x3a8   :  { %v3533_v18 = vmul.f32 -1.442695, %v1246_v27  ;;  %v3534_v33 = vmul.f32 -1.442695, %v1247_v12  ;;  %v6252_v27 = vld [vmem:[#allocation68_spill] sm:$0xff] }
 0x3a9   :  { %v491_v53 = vadd.f32 %v6252_v27, %v6251_v49 }
 0x3aa   :  { %3648 = vpow2.f32 %v3533_v18 }
 0x3ab   :  { %3650 = vpow2.f32 %v3534_v33 }
 0x3ac   :  { %v1223_v32 = vpop.f32.mrf.mxu2  ;;  %v1243_v34 = vpop.f32.mrf.mxu3 }
 0x3ad   :  { %v1248_v14 = vadd.f32 %v1223_v32, %v450_v54  ;;  %v1249_v12 = vadd.f32 %v1243_v34, %v491_v53 }
 0x3af   :  { %v3535_v31 = vmul.f32 -1.442695, %v1248_v14 }
 0x3b0   :  { %v3649_v40 = vpop.eup %3648 }
 0x3b1   :  { %v3651_v23 = vpop.eup %3650  ;;  %v1259_v8 = vadd.f32 1.0, %v3649_v40  ;;  %3652 = vpow2.f32 %v3535_v31 }
 0x3b2   :  { %v1260_v4 = vadd.f32 1.0, %v3651_v23 }
 0x3b3   :  { %3654 = vrcp.f32 %v1259_v8  ;;  %v1273_v57 = vand.u32 2147483648, %v1259_v8  ;;  %v1271_v31 = vand.u32 2147483647, %v1259_v8  ;;  %vm1267_vm2 = vweird.f32 %v1259_v8 }
 0x3b4   :  { %3656 = vrcp.f32 %v1260_v4  ;;  %v1288_v40 = vand.u32 2147483648, %v1260_v4  ;;  %v1286_v52 = vand.u32 2147483647, %v1260_v4  ;;  %vm1282_vm3 = vweird.f32 %v1260_v4 }
 0x3b5   :  { %vm1272_vm6 = vcmp.eq.f32.partialorder %v1271_v31, 8.507059e+37 }
 0x3b6   :  { %vm1287_vm7 = vcmp.eq.f32.partialorder %v1286_v52, 8.507059e+37 }
 0x3b7   :  { %v3653_v28 = vpop.eup %3652 }
 0x3b8   :  { %v1261_v18 = vadd.f32 1.0, %v3653_v28  ;;  %v1274_v28 = vor.u32 1.1754944e-38, %v1273_v57 }
 0x3b9   :  { %v3655_v63 = vpop.eup %3654 }
 0x3ba   :  { %v3657_v35 = vpop.eup %3656  ;;  %v1263_v33 = vmul.f32 %v3655_v63, %v1259_v8  ;;  %3658 = vrcp.f32 %v1261_v18  ;;  %vm1268_vm0 = vweird.f32 %v3655_v63  ;;  %v1303_v57 = vand.u32 2147483648, %v1261_v18 }
 0x3bb   :  { %v1278_v32 = vmul.f32 %v3657_v35, %v1260_v4  ;;  %3660 = vtanh.f32 %v1249_v12  ;;  %vm1283_vm1 = vweird.f32 %v3657_v35  ;;  %vm1269_vm4 = vmor %vm1267_vm2, %vm1268_vm0  ;;  %vm1297_vm9 = vweird.f32 %v1261_v18 }
 0x3bc   :  { %v1264_v14 = vsub.f32 1.0, %v1263_v33  ;;  %vm1284_vm5 = vmor %vm1282_vm3, %vm1283_vm1  ;;  %v1289_v33 = vor.u32 1.1754944e-38, %v1288_v40  ;;  %v1304_v40 = vor.u32 1.1754944e-38, %v1303_v57 }
 0x3bd   :  { %v1279_v54 = vsub.f32 1.0, %v1278_v32 }
 0x3be   :  { %v1265_v23 = vmul.f32 %v3655_v63, %v1264_v14 }
 0x3bf   :  { %v1280_v44 = vmul.f32 %v3657_v35, %v1279_v54 }
 0x3c0   :  { %v3659_v38 = vpop.eup %3658  ;;  %v1266_v27 = vadd.f32 %v3655_v63, %v1265_v23 }
 0x3c1   :  { %v1293_v34 = vmul.f32 %v3659_v38, %v1261_v18  ;;  %v1281_v53 = vadd.f32 %v3657_v35, %v1280_v44  ;;  %v3661_v12 = vpop.eup %3660  ;;  %vm1298_vm8 = vweird.f32 %v3659_v38  ;;  %v1301_v44 = vand.u32 2147483647, %v1261_v18 }
 0x3c2   :  { %v1270_v32 = vsel %vm1269_vm4, %v3655_v63, %v1266_v27  ;;  %vm1299_vm10 = vmor %vm1297_vm9, %vm1298_vm8 }
 0x3c3   :  { %v1294_v49 = vsub.f32 1.0, %v1293_v34  ;;  %v1275_v14 = vsel %vm1272_vm6, %v1274_v28, %v1270_v32  ;;  %v1285_v9 = vsel %vm1284_vm5, %v3657_v35, %v1281_v53  ;;  %vm1302_vm11 = vcmp.eq.f32.partialorder %v1301_v44, 8.507059e+37  ;;  %v6285_v32 = vld [vmem:[#allocation82_spill] sm:$0xff] }
 0x3c4   :  { %v1290_v54 = vsel %vm1287_vm7, %v1289_v33, %v1285_v9  ;;  %v1309_v7 = vmul.f32 %v3661_v12, %v1275_v14  ;;  %v6286_v12 = vld [vmem:[#allocation72_spill] sm:$0xff] }
 0x3c5   :  { %v1295_v26 = vmul.f32 %v3659_v38, %v1294_v49  ;;  %v1308_v23 = vmul.f32 %v1290_v54, %v4803_v59  ;;  %v6283_v59 = vld [vmem:[#allocation80_spill] sm:$0xff]  ;;  %v494_v14 = vadd.f32 %v6286_v12, %v6285_v32  ;;  %v1819_v12 = vld [vmem:[#allocation10 + $0x1c8] sm:$0xff] }
 0x3c7   :  { %v4885_v8 = vadd.f32 %v1309_v7, %v1308_v23  ;;  %v1296_v4 = vadd.f32 %v3659_v38, %v1295_v26  ;;  %v6284_v26 = vld [vmem:[#allocation69_spill] sm:$0xff] }
 0x3c8   :  { %v453_v7 = vadd.f32 %v6284_v26, %v6283_v59 }
 0x3c9   :  { %3662 = vtanh.f32 %v4885_v8  ;;  %v1300_v63 = vsel %vm1299_vm10, %v3659_v38, %v1296_v4 }
 0x3ca   :  { %v1305_v52 = vsel %vm1302_vm11, %v1304_v40, %v1300_v63 }
 0x3cf   :  { %v3663_v35 = vpop.eup %3662 }
 0x3d0   :  { %v4888_v9 = vmul.f32 %v3663_v35, %v1305_v52 }
 0x3d2   :  { %1338 = vmatmul.f32.vlgmr.msra.gmra.mxu0 %v4888_v9  ;;  %1358 = vmatmul.f32.vlgmr.msra.gmra.mxu1 %v4888_v9 }
 0x3d3   :  { %1378 = vmatmul.f32.vlgmr.msra.gmra.mxu2 %v4888_v9  ;;  %1398 = vmatmul.f32.vlgmr.msra.gmra.mxu3 %v4888_v9 }
 0x3d4   :  { %1634 = vmatpush.msra.mxu0 %v4166_v36  ;;  %1654 = vmatpush.msra.mxu1 %v4168_v37  ;;  %v6253_v36 = vld [vmem:[#allocation25_spill] sm:$0xff]  ;;  %v6254_v37 = vld [vmem:[#allocation26_spill] sm:$0xff] }
 0x3d5   :  { %1674 = vmatpush.msra.mxu2 %v4170_v39  ;;  %1694 = vmatpush.msra.mxu3 %v4172_v41  ;;  %v6255_v39 = vld [vmem:[#allocation27_spill] sm:$0xff]  ;;  %v6256_v41 = vld [vmem:[#allocation28_spill] sm:$0xff] }
 0x3d6   :  { %1635 = vmatpush.msra.mxu0 %v4174_v42  ;;  %1655 = vmatpush.msra.mxu1 %v4176_v43  ;;  %v6257_v42 = vld [vmem:[#allocation29_spill] sm:$0xff]  ;;  %v6258_v43 = vld [vmem:[#allocation30_spill] sm:$0xff] }
 0x3d7   :  { %1675 = vmatpush.msra.mxu2 %v4178_v45  ;;  %1695 = vmatpush.msra.mxu3 %v4180_v46  ;;  %v6259_v45 = vld [vmem:[#allocation31_spill] sm:$0xff]  ;;  %v6260_v46 = vld [vmem:[#allocation32_spill] sm:$0xff] }
 0x3d8   :  { %1636 = vmatpush.msra.mxu0 %v4184_v47  ;;  %1656 = vmatpush.msra.mxu1 %v4186_v48  ;;  %v6261_v47 = vld [vmem:[#allocation33_spill] sm:$0xff]  ;;  %v6262_v48 = vld [vmem:[#allocation34_spill] sm:$0xff] }
 0x3d9   :  { %1676 = vmatpush.msra.mxu2 %v4189_v50  ;;  %1696 = vmatpush.msra.mxu3 %v4192_v51  ;;  %v6263_v50 = vld [vmem:[#allocation35_spill] sm:$0xff]  ;;  %v6264_v51 = vld [vmem:[#allocation36_spill] sm:$0xff] }
 0x3da   :  { %1637 = vmatpush.msra.mxu0 %v4200_v55  ;;  %1657 = vmatpush.msra.mxu1 %v4202_v56  ;;  %v6265_v55 = vld [vmem:[#allocation37_spill] sm:$0xff]  ;;  %v6266_v56 = vld [vmem:[#allocation38_spill] sm:$0xff] }
 0x3db   :  { %1677 = vmatpush.msra.mxu2 %v4205_v58  ;;  %1697 = vmatpush.msra.mxu3 %v4208_v60  ;;  %v6267_v58 = vld [vmem:[#allocation39_spill] sm:$0xff]  ;;  %v6268_v60 = vld [vmem:[#allocation40_spill] sm:$0xff] }
 0x3dc   :  { %1638 = vmatpush.msra.mxu0 %v4210_v61  ;;  %1658 = vmatpush.msra.mxu1 %v4212_v62  ;;  %v6269_v61 = vld [vmem:[#allocation41_spill] sm:$0xff]  ;;  %v6270_v62 = vld [vmem:[#allocation42_spill] sm:$0xff] }
 0x3dd   :  { %1678 = vmatpush.msra.mxu2 %v4214_v0  ;;  %1698 = vmatpush.msra.mxu3 %v4216_v1  ;;  %v6271_v0 = vld [vmem:[#allocation43_spill] sm:$0xff]  ;;  %v6272_v1 = vld [vmem:[#allocation44_spill] sm:$0xff] }
 0x3de   :  { %1639 = vmatpush.msra.mxu0 %v4220_v2  ;;  %1659 = vmatpush.msra.mxu1 %v4222_v3  ;;  %v6273_v2 = vld [vmem:[#allocation45_spill] sm:$0xff]  ;;  %v6274_v3 = vld [vmem:[#allocation46_spill] sm:$0xff] }
 0x3df   :  { %1679 = vmatpush.msra.mxu2 %v4225_v5  ;;  %1699 = vmatpush.msra.mxu3 %v4228_v6  ;;  %v6275_v5 = vld [vmem:[#allocation47_spill] sm:$0xff]  ;;  %v6276_v6 = vld [vmem:[#allocation48_spill] sm:$0xff] }
 0x3e0   :  { %1640 = vmatpush.msra.mxu0 %v4236_v10  ;;  %1660 = vmatpush.msra.mxu1 %v4238_v11  ;;  %v6277_v10 = vld [vmem:[#allocation49_spill] sm:$0xff]  ;;  %v6278_v11 = vld [vmem:[#allocation50_spill] sm:$0xff] }
 0x3e1   :  { %1680 = vmatpush.msra.mxu2 %v4241_v13  ;;  %1700 = vmatpush.msra.mxu3 %v4244_v15  ;;  %v6279_v13 = vld [vmem:[#allocation76_spill] sm:$0xff]  ;;  %v6280_v15 = vld [vmem:[#allocation66_spill] sm:$0xff] }
 0x3e2   :  { %1641 = vmatpush.msra.mxu0 %v4246_v16  ;;  %1661 = vmatpush.msra.mxu1 %v4248_v17  ;;  %v371_v16 = vadd.f32 %v6280_v15, %v6279_v13  ;;  %v6281_v17 = vld [vmem:[#allocation77_spill] sm:$0xff] }
 0x3e3   :  { %1681 = vmatpush.msra.mxu2 %v4250_v19  ;;  %1701 = vmatpush.msra.mxu3 %v4252_v20  ;;  %v6282_v19 = vld [vmem:[#allocation67_spill] sm:$0xff] }
 0x3e4   :  { %1642 = vmatpush.msra.mxu0 %v4256_v21  ;;  %1662 = vmatpush.msra.mxu1 %v4258_v22  ;;  %v412_v20 = vadd.f32 %v6282_v19, %v6281_v17 }
 0x3e5   :  { %1682 = vmatpush.msra.mxu2 %v4261_v24  ;;  %1702 = vmatpush.msra.mxu3 %v4264_v25 }
 0x3e6   :  { %1643 = vmatpush.msra.mxu0 %v4272_v29  ;;  %1663 = vmatpush.msra.mxu1 %v4274_v30 }
 0x3e7   :  { %1683 = vmatpush.msra.mxu2 %v6253_v36  ;;  %1703 = vmatpush.msra.mxu3 %v6254_v37 }
 0x3e8   :  { %1644 = vmatpush.msra.mxu0 %v6255_v39  ;;  %1664 = vmatpush.msra.mxu1 %v6256_v41 }
 0x3e9   :  { %1684 = vmatpush.msra.mxu2 %v6257_v42  ;;  %1704 = vmatpush.msra.mxu3 %v6258_v43 }
 0x3ea   :  { %1645 = vmatpush.msra.mxu0 %v6259_v45  ;;  %1665 = vmatpush.msra.mxu1 %v6260_v46 }
 0x3eb   :  { %1685 = vmatpush.msra.mxu2 %v6261_v47  ;;  %1705 = vmatpush.msra.mxu3 %v6262_v48 }
 0x3ec   :  { %1646 = vmatpush.msra.mxu0 %v6263_v50  ;;  %1666 = vmatpush.msra.mxu1 %v6264_v51 }
 0x3ed   :  { %1686 = vmatpush.msra.mxu2 %v6265_v55  ;;  %1706 = vmatpush.msra.mxu3 %v6266_v56 }
 0x3ee   :  { %1647 = vmatpush.msra.mxu0 %v6267_v58  ;;  %1667 = vmatpush.msra.mxu1 %v6268_v60 }
 0x3ef   :  { %1687 = vmatpush.msra.mxu2 %v6269_v61  ;;  %1707 = vmatpush.msra.mxu3 %v6270_v62 }
 0x3f0   :  { %1648 = vmatpush.msra.mxu0 %v6271_v0  ;;  %1668 = vmatpush.msra.mxu1 %v6272_v1 }
 0x3f1   :  { %1688 = vmatpush.msra.mxu2 %v6273_v2  ;;  %1708 = vmatpush.msra.mxu3 %v6274_v3 }
 0x3f2   :  { %1649 = vmatpush.msra.mxu0 %v6275_v5  ;;  %1669 = vmatpush.msra.mxu1 %v6276_v6 }
 0x3f3   :  { %1689 = vmatpush.msra.mxu2 %v6277_v10  ;;  %1709 = vmatpush.msra.mxu3 %v6278_v11 }
 0x44f   :  { %v1339_v21 = vpop.f32.mrf.mxu0  ;;  %v1359_v22 = vpop.f32.mrf.mxu1 }
 0x450   :  { %v1402_v24 = vadd.f32 %v1339_v21, %v371_v16  ;;  %v1403_v25 = vadd.f32 %v1359_v22, %v412_v20  ;;  %v1825_v20 = vld [vmem:[#allocation10 + $0x1f8] sm:$0xff] }
 0x452   :  { %v3536_v29 = vmul.f32 -1.442695, %v1402_v24  ;;  %v3537_v30 = vmul.f32 -1.442695, %v1403_v25  ;;  %v1888_v24 = vunpack.c.l.bf16 %v1825_v20  ;;  %v1889_v25 = vunpack.c.h.bf16 %v1825_v20  ;;  %v1808_v20 = vld [vmem:[#allocation10 + $0x170] sm:$0xff] }
 0x454   :  { %3664 = vpow2.f32 %v3536_v29  ;;  %v1822_v29 = vld [vmem:[#allocation10 + $0x1e0] sm:$0xff] }
 0x455   :  { %3666 = vpow2.f32 %v3537_v30  ;;  %v1823_v30 = vld [vmem:[#allocation10 + $0x1e8] sm:$0xff]  ;;  %v1882_v26 = vunpack.c.l.bf16 %v1822_v29 }
 0x456   :  { %v1379_v38 = vpop.f32.mrf.mxu2  ;;  %v1399_v53 = vpop.f32.mrf.mxu3 }
 0x457   :  { %v1404_v49 = vadd.f32 %v1379_v38, %v453_v7  ;;  %v1405_v4 = vadd.f32 %v1399_v53, %v494_v14  ;;  %v1883_v7 = vunpack.c.h.bf16 %v1822_v29  ;;  %v1884_v38 = vunpack.c.l.bf16 %v1823_v30  ;;  %v6289_v29 = vld [vmem:[#allocation73_spill] sm:$0xff] }
 0x459   :  { %v3538_v18 = vmul.f32 -1.442695, %v1404_v49  ;;  %v1885_v49 = vunpack.c.h.bf16 %v1823_v30  ;;  %v456_v30 = vadd.f32 %v6289_v29, %v6283_v59 }
 0x45a   :  { %v3665_v31 = vpop.eup %3664 }
 0x45b   :  { %v3667_v27 = vpop.eup %3666  ;;  %v1415_v34 = vadd.f32 1.0, %v3665_v31  ;;  %3668 = vpow2.f32 %v3538_v18  ;;  %v1820_v18 = vld [vmem:[#allocation10 + $0x1d0] sm:$0xff]  ;;  %v1821_v31 = vld [vmem:[#allocation10 + $0x1d8] sm:$0xff] }
 0x45c   :  { %v1416_v28 = vadd.f32 1.0, %v3667_v27  ;;  %v1878_v27 = vunpack.c.l.bf16 %v1820_v18  ;;  %v1881_v53 = vunpack.c.h.bf16 %v1821_v31 }
 0x45d   :  { %3670 = vrcp.f32 %v1415_v34  ;;  %v1429_v52 = vand.u32 2147483648, %v1415_v34  ;;  %v1427_v39 = vand.u32 2147483647, %v1415_v34  ;;  %vm1423_vm14 = vweird.f32 %v1415_v34 }
 0x45e   :  { %3672 = vrcp.f32 %v1416_v28  ;;  %v1444_v36 = vand.u32 2147483648, %v1416_v28  ;;  %v1442_v42 = vand.u32 2147483647, %v1416_v28  ;;  %vm1438_vm15 = vweird.f32 %v1416_v28 }
 0x45f   :  { %v1430_v47 = vor.u32 1.1754944e-38, %v1429_v52  ;;  %vm1428_vm2 = vcmp.eq.f32.partialorder %v1427_v39, 8.507059e+37  ;;  %v6288_v39 = vld [vmem:[#allocation71_spill] sm:$0xff] }
 0x460   :  { %v1445_v50 = vor.u32 1.1754944e-38, %v1444_v36  ;;  %vm1443_vm3 = vcmp.eq.f32.partialorder %v1442_v42, 8.507059e+37  ;;  %v6287_v36 = vld [vmem:[#allocation70_spill] sm:$0xff]  ;;  %v1814_v42 = vld [vmem:[#allocation10 + $0x1a0] sm:$0xff] }
 0x461   :  { %v3669_v33 = vpop.eup %3668 }
 0x462   :  { %v1417_v54 = vadd.f32 1.0, %v3669_v33  ;;  %v1818_v33 = vld [vmem:[#allocation10 + $0x1c0] sm:$0xff] }
 0x463   :  { %v3671_v23 = vpop.eup %3670  ;;  %v1874_v14 = vunpack.c.l.bf16 %v1818_v33 }
 0x464   :  { %v3673_v57 = vpop.eup %3672  ;;  %v1419_v44 = vmul.f32 %v3671_v23, %v1415_v34  ;;  %3674 = vrcp.f32 %v1417_v54  ;;  %vm1424_vm12 = vweird.f32 %v3671_v23  ;;  %v1459_v5 = vand.u32 2147483648, %v1417_v54 }
 0x465   :  { %v1434_v63 = vmul.f32 %v3673_v57, %v1416_v28  ;;  %3676 = vtanh.f32 %v1405_v4  ;;  %vm1439_vm13 = vweird.f32 %v3673_v57  ;;  %vm1425_vm0 = vmor %vm1423_vm14, %vm1424_vm12  ;;  %vm1453_vm5 = vweird.f32 %v1417_v54 }
 0x466   :  { %v1420_v40 = vsub.f32 1.0, %v1419_v44  ;;  %vm1440_vm1 = vmor %vm1438_vm15, %vm1439_vm13  ;;  %v1457_v6 = vand.u32 2147483647, %v1417_v54  ;;  %v1460_v11 = vor.u32 1.1754944e-38, %v1459_v5  ;;  %v1879_v34 = vunpack.c.h.bf16 %v1820_v18  ;;  %v1817_v44 = vld [vmem:[#allocation10 + $0x1b8] sm:$0xff]  ;;  %v1811_v5 = vld [vmem:[#allocation10 + $0x188] sm:$0xff] }
 0x467   :  { %v1435_v35 = vsub.f32 1.0, %v1434_v63  ;;  %v1880_v28 = vunpack.c.l.bf16 %v1821_v31  ;;  %v1877_v4 = vunpack.c.h.bf16 %v1819_v12  ;;  %v1873_v52 = vunpack.c.h.bf16 %v1817_v44 }
 0x468   :  { %v1421_v37 = vmul.f32 %v3671_v23, %v1420_v40  ;;  %vm1458_vm7 = vcmp.eq.f32.partialorder %v1457_v6, 8.507059e+37 }
 0x469   :  { %v1436_v41 = vmul.f32 %v3673_v57, %v1435_v35  ;;  %v1872_v35 = vunpack.c.l.bf16 %v1817_v44  ;;  %v1803_v44 = vld [vmem:[#allocation10 + $0x148] sm:$0xff] }
 0x46a   :  { %v3675_v43 = vpop.eup %3674  ;;  %v1422_v45 = vadd.f32 %v3671_v23, %v1421_v37  ;;  %v374_v37 = vadd.f32 %v6287_v36, %v6279_v13  ;;  %v1845_v36 = vunpack.c.h.bf16 %v1803_v44 }
 0x46b   :  { %v1449_v46 = vmul.f32 %v3675_v43, %v1417_v54  ;;  %v1437_v48 = vadd.f32 %v3673_v57, %v1436_v41  ;;  %v3677_v55 = vpop.eup %3676  ;;  %vm1454_vm4 = vweird.f32 %v3675_v43  ;;  %v1875_v54 = vunpack.c.h.bf16 %v1818_v33  ;;  %v1805_v33 = vld [vmem:[#allocation10 + $0x158] sm:$0xff] }
 0x46c   :  { %v1426_v51 = vsel %vm1425_vm0, %v3671_v23, %v1422_v45  ;;  %vm1455_vm6 = vmor %vm1453_vm5, %vm1454_vm4  ;;  %v1876_v23 = vunpack.c.l.bf16 %v1819_v12  ;;  %v415_v41 = vadd.f32 %v6288_v39, %v6281_v17  ;;  %v1866_v45 = vunpack.c.l.bf16 %v1814_v42 }
 0x46d   :  { %v1450_v56 = vsub.f32 1.0, %v1449_v46  ;;  %v1431_v58 = vsel %vm1428_vm2, %v1430_v47, %v1426_v51  ;;  %v1441_v60 = vsel %vm1440_vm1, %v3673_v57, %v1437_v48  ;;  %v1816_v57 = vld [vmem:[#allocation10 + $0x1b0] sm:$0xff]  ;;  %v1867_v46 = vunpack.c.h.bf16 %v1814_v42  ;;  %v1801_v42 = vld [vmem:[#allocation10 + $0x138] sm:$0xff] }
 0x46e   :  { %v1446_v61 = vsel %vm1443_vm3, %v1445_v50, %v1441_v60  ;;  %v1465_v62 = vmul.f32 %v3677_v55, %v1431_v58  ;;  %v1870_v63 = vunpack.c.l.bf16 %v1816_v57  ;;  %v1871_v40 = vunpack.c.h.bf16 %v1816_v57  ;;  %v1812_v55 = vld [vmem:[#allocation10 + $0x190] sm:$0xff]  ;;  %v1802_v57 = vld [vmem:[#allocation10 + $0x140] sm:$0xff] }
 0x46f   :  { %v1451_v0 = vmul.f32 %v3675_v43, %v1450_v56  ;;  %v1464_v1 = vmul.f32 %v1446_v61, %v4885_v8  ;;  %v1824_v8 = vld [vmem:[#allocation10 + $0x1f0] sm:$0xff]  ;;  %v1813_v56 = vld [vmem:[#allocation10 + $0x198] sm:$0xff]  ;;  %v1862_v61 = vunpack.c.l.bf16 %v1812_v55 }
 0x470   :  { %v1886_v21 = vunpack.c.l.bf16 %v1824_v8  ;;  %v1887_v22 = vunpack.c.h.bf16 %v1824_v8  ;;  %v1861_v8 = vunpack.c.h.bf16 %v1811_v5 }
 0x471   :  { %v4967_v2 = vadd.f32 %v1465_v62, %v1464_v1  ;;  %v1452_v3 = vadd.f32 %v3675_v43, %v1451_v0  ;;  %v1863_v62 = vunpack.c.h.bf16 %v1812_v55  ;;  %v1864_v0 = vunpack.c.l.bf16 %v1813_v56  ;;  %v1797_v55 = vld [vmem:[#allocation10 + $0x118] sm:$0xff] }
 0x472   :  { %v1865_v1 = vunpack.c.h.bf16 %v1813_v56  ;;  %v1841_v56 = vunpack.c.h.bf16 %v1801_v42 }
 0x473   :  { %3678 = vtanh.f32 %v4967_v2  ;;  %v1456_v10 = vsel %vm1455_vm6, %v3675_v43, %v1452_v3  ;;  %v1815_v43 = vld [vmem:[#allocation10 + $0x1a8] sm:$0xff]  ;;  %v1810_v3 = vld [vmem:[#allocation10 + $0x180] sm:$0xff] }
 0x474   :  { %v1461_v16 = vsel %vm1458_vm7, %v1460_v11, %v1456_v10  ;;  %v1868_v47 = vunpack.c.l.bf16 %v1815_v43  ;;  %v1869_v48 = vunpack.c.h.bf16 %v1815_v43  ;;  %v1858_v11 = vunpack.c.l.bf16 %v1810_v3 }
 0x479   :  { %v3679_v15 = vpop.eup %3678 }
 0x47a   :  { %v4970_v19 = vmul.f32 %v3679_v15, %v1461_v16  ;;  %v1859_v15 = vunpack.c.h.bf16 %v1810_v3  ;;  %v1860_v16 = vunpack.c.l.bf16 %v1811_v5  ;;  %v1795_v5 = vld [vmem:[#allocation10 + $0x108] sm:$0xff] }
 0x47b   :  { %v1828_v29 = vunpack.c.l.bf16 %v1795_v5 }
 0x47c   :  { %1494 = vmatmul.f32.vlgmr.msrb.gmra.mxu0 %v4970_v19  ;;  %1514 = vmatmul.f32.vlgmr.msrb.gmra.mxu1 %v4970_v19 }
 0x47d   :  { %1534 = vmatmul.f32.vlgmr.msrb.gmra.mxu2 %v4970_v19  ;;  %1554 = vmatmul.f32.vlgmr.msrb.gmra.mxu3 %v4970_v19 }
 0x47e   :  { %1998 = vmatpush.msrb.mxu0 %v1886_v21  ;;  %2039 = vmatpush.msrb.mxu1 %v1887_v22  ;;  %v1809_v21 = vld [vmem:[#allocation10 + $0x178] sm:$0xff]  ;;  %v1854_v22 = vunpack.c.l.bf16 %v1808_v20 }
 0x47f   :  { %2080 = vmatpush.msrb.mxu2 %v1888_v24  ;;  %2121 = vmatpush.msrb.mxu3 %v1889_v25  ;;  %v1855_v24 = vunpack.c.h.bf16 %v1808_v20  ;;  %v1856_v25 = vunpack.c.l.bf16 %v1809_v21  ;;  %v1833_v20 = vunpack.c.h.bf16 %v1797_v55 }
 0x480   :  { %1999 = vmatpush.msrb.mxu0 %v1882_v26  ;;  %2040 = vmatpush.msrb.mxu1 %v1883_v7  ;;  %v1857_v26 = vunpack.c.h.bf16 %v1809_v21  ;;  %v1806_v7 = vld [vmem:[#allocation10 + $0x160] sm:$0xff] }
 0x481   :  { %2081 = vmatpush.msrb.mxu2 %v1884_v38  ;;  %2122 = vmatpush.msrb.mxu3 %v1885_v49  ;;  %v1807_v38 = vld [vmem:[#allocation10 + $0x168] sm:$0xff]  ;;  %v1850_v18 = vunpack.c.l.bf16 %v1806_v7  ;;  %v1851_v31 = vunpack.c.h.bf16 %v1806_v7 }
 0x482   :  { %2000 = vmatpush.msrb.mxu0 %v1878_v27  ;;  %2041 = vmatpush.msrb.mxu1 %v1879_v34  ;;  %v1852_v27 = vunpack.c.l.bf16 %v1807_v38  ;;  %v1853_v34 = vunpack.c.h.bf16 %v1807_v38 }
 0x483   :  { %2082 = vmatpush.msrb.mxu2 %v1880_v28  ;;  %2123 = vmatpush.msrb.mxu3 %v1881_v53  ;;  %v1804_v53 = vld [vmem:[#allocation10 + $0x150] sm:$0xff] }
 0x484   :  { %2001 = vmatpush.msrb.mxu0 %v1874_v14  ;;  %2042 = vmatpush.msrb.mxu1 %v1875_v54  ;;  %v1846_v12 = vunpack.c.l.bf16 %v1804_v53  ;;  %v1847_v14 = vunpack.c.h.bf16 %v1804_v53  ;;  %v1848_v54 = vunpack.c.l.bf16 %v1805_v33 }
 0x485   :  { %2083 = vmatpush.msrb.mxu2 %v1876_v23  ;;  %2124 = vmatpush.msrb.mxu3 %v1877_v4  ;;  %v1849_v23 = vunpack.c.h.bf16 %v1805_v33 }
 0x486   :  { %2002 = vmatpush.msrb.mxu0 %v1870_v63  ;;  %2043 = vmatpush.msrb.mxu1 %v1871_v40  ;;  %v1842_v40 = vunpack.c.l.bf16 %v1802_v57 }
 0x487   :  { %2084 = vmatpush.msrb.mxu2 %v1872_v35  ;;  %2125 = vmatpush.msrb.mxu3 %v1873_v52  ;;  %v1843_v35 = vunpack.c.h.bf16 %v1802_v57  ;;  %v1844_v52 = vunpack.c.l.bf16 %v1803_v44 }
 0x488   :  { %2003 = vmatpush.msrb.mxu0 %v1866_v45  ;;  %2044 = vmatpush.msrb.mxu1 %v1867_v46 }
 0x489   :  { %2085 = vmatpush.msrb.mxu2 %v1868_v47  ;;  %2126 = vmatpush.msrb.mxu3 %v1869_v48  ;;  %v1840_v47 = vunpack.c.l.bf16 %v1801_v42  ;;  %v1798_v48 = vld [vmem:[#allocation10 + $0x120] sm:$0xff] }
 0x48a   :  { %2004 = vmatpush.msrb.mxu0 %v1862_v61  ;;  %2045 = vmatpush.msrb.mxu1 %v1863_v62  ;;  %v6290_v61 = vld [vmem:[#allocation78_spill] sm:$0xff] }
 0x48b   :  { %2086 = vmatpush.msrb.mxu2 %v1864_v0  ;;  %2127 = vmatpush.msrb.mxu3 %v1865_v1  ;;  %v497_v62 = vadd.f32 %v6290_v61, %v6285_v32  ;;  %v1835_v1 = vunpack.c.h.bf16 %v1798_v48  ;;  %v1919_v61 = vld [vmem:[#allocation12 + $0x1e0] sm:$0xff] }
 0x48c   :  { %2005 = vmatpush.msrb.mxu0 %v1858_v11  ;;  %2046 = vmatpush.msrb.mxu1 %v1859_v15 }
 0x48d   :  { %2087 = vmatpush.msrb.mxu2 %v1860_v16  ;;  %2128 = vmatpush.msrb.mxu3 %v1861_v8  ;;  %v1832_v16 = vunpack.c.l.bf16 %v1797_v55 }
 0x48e   :  { %2006 = vmatpush.msrb.mxu0 %v1854_v22  ;;  %2047 = vmatpush.msrb.mxu1 %v1855_v24 }
 0x48f   :  { %2088 = vmatpush.msrb.mxu2 %v1856_v25  ;;  %2129 = vmatpush.msrb.mxu3 %v1857_v26 }
 0x490   :  { %2007 = vmatpush.msrb.mxu0 %v1850_v18  ;;  %2048 = vmatpush.msrb.mxu1 %v1851_v31 }
 0x491   :  { %2089 = vmatpush.msrb.mxu2 %v1852_v27  ;;  %2130 = vmatpush.msrb.mxu3 %v1853_v34 }
 0x492   :  { %2008 = vmatpush.msrb.mxu0 %v1846_v12  ;;  %2049 = vmatpush.msrb.mxu1 %v1847_v14 }
 0x493   :  { %2090 = vmatpush.msrb.mxu2 %v1848_v54  ;;  %2131 = vmatpush.msrb.mxu3 %v1849_v23 }
 0x494   :  { %2009 = vmatpush.msrb.mxu0 %v1842_v40  ;;  %2050 = vmatpush.msrb.mxu1 %v1843_v35 }
 0x495   :  { %2091 = vmatpush.msrb.mxu2 %v1844_v52  ;;  %2132 = vmatpush.msrb.mxu3 %v1845_v36 }
 0x497   :  { %2092 = vmatpush.msrb.mxu2 %v1840_v47  ;;  %2133 = vmatpush.msrb.mxu3 %v1841_v56  ;;  %v6292_v56 = vld [vmem:[#allocation51_spill] sm:$0xff] }
 0x4f9   :  { %v1495_v50 = vpop.f32.mrf.mxu0  ;;  %v1515_v51 = vpop.f32.mrf.mxu1 }
 0x4fa   :  { %v1558_v58 = vadd.f32 %v1495_v50, %v374_v37  ;;  %v1559_v60 = vadd.f32 %v1515_v51, %v415_v41  ;;  %v1800_v41 = vld [vmem:[#allocation10 + $0x130] sm:$0xff]  ;;  %v1799_v50 = vld [vmem:[#allocation10 + $0x128] sm:$0xff] }
 0x4fb   :  { %v1838_v45 = vunpack.c.l.bf16 %v1800_v41  ;;  %v1839_v46 = vunpack.c.h.bf16 %v1800_v41  ;;  %v1796_v51 = vld [vmem:[#allocation10 + $0x110] sm:$0xff]  ;;  %v1836_v3 = vunpack.c.l.bf16 %v1799_v50 }
 0x4fc   :  { %v3539_v6 = vmul.f32 -1.442695, %v1558_v58  ;;  %v3540_v10 = vmul.f32 -1.442695, %v1559_v60  ;;  %v1834_v58 = vunpack.c.l.bf16 %v1798_v48  ;;  %v1794_v60 = vld [vmem:[#allocation10 + $0x100] sm:$0xff]  ;;  %v1830_v11 = vunpack.c.l.bf16 %v1796_v51 }
 0x4fd   :  { %2010 = vmatpush.msrb.mxu0 %v1838_v45  ;;  %2051 = vmatpush.msrb.mxu1 %v1839_v46  ;;  %v1831_v15 = vunpack.c.h.bf16 %v1796_v51  ;;  %v1826_v21 = vunpack.c.l.bf16 %v1794_v60  ;;  %v1827_v22 = vunpack.c.h.bf16 %v1794_v60  ;;  %v1921_v60 = vld [vmem:[#allocation12 + $0x1f0] sm:$0xff] }
 0x4fe   :  { %3680 = vpow2.f32 %v3539_v6  ;;  %2093 = vmatpush.msrb.mxu2 %v1836_v3  ;;  %v5025_v3 = vunpack.c.l.bf16 %v1919_v61 }
 0x4ff   :  { %3682 = vpow2.f32 %v3540_v10  ;;  %2011 = vmatpush.msrb.mxu0 %v1834_v58  ;;  %v1837_v10 = vunpack.c.h.bf16 %v1799_v50  ;;  %2052 = vmatpush.msrb.mxu1 %v1835_v1  ;;  %v6293_v58 = vld [vmem:[#allocation52_spill] sm:$0xff]  ;;  %v5023_v1 = vunpack.c.h.bf16 %v1921_v60 }
 0x500   :  { %v1535_v49 = vpop.f32.mrf.mxu2  ;;  %v1555_v0 = vpop.f32.mrf.mxu3  ;;  %2094 = vmatpush.msrb.mxu2 %v1832_v16  ;;  %6295 = vst [vmem:[#allocation55_spill] sm:$0xff] %v5025_v3 }
 0x501   :  { %v1560_v28 = vadd.f32 %v1535_v49, %v456_v30  ;;  %v1561_v25 = vadd.f32 %v1555_v0, %v497_v62  ;;  %2134 = vmatpush.msrb.mxu3 %v1837_v10  ;;  %2012 = vmatpush.msrb.mxu0 %v1830_v11  ;;  %v1829_v30 = vunpack.c.h.bf16 %v1795_v5  ;;  %v1922_v62 = vld [vmem:[#allocation12 + $0x1f8] sm:$0xff]  ;;  %v5021_v0 = vunpack.c.l.bf16 %v1921_v60  ;;  %6294 = vst [vmem:[#allocation54_spill] sm:$0xff] %v5023_v1  ;;  %v1917_v11 = vld [vmem:[#allocation12 + $0x1d0] sm:$0xff] }
 0x502   :  { %2053 = vmatpush.msrb.mxu1 %v1831_v15  ;;  %2095 = vmatpush.msrb.mxu2 %v1828_v29  ;;  %v5027_v5 = vunpack.c.h.bf16 %v1919_v61  ;;  %v5029_v10 = vunpack.c.l.bf16 %v1922_v62  ;;  %v5038_v16 = vunpack.c.l.bf16 %v1917_v11  ;;  %v1916_v29 = vld [vmem:[#allocation12 + $0x1c8] sm:$0xff] }
 0x503   :  { %v3541_v4 = vmul.f32 -1.442695, %v1560_v28  ;;  %2135 = vmatpush.msrb.mxu3 %v1833_v20  ;;  %2013 = vmatpush.msrb.mxu0 %v1826_v21  ;;  %v6298_v20 = vld [vmem:[#allocation53_spill] sm:$0xff]  ;;  %v5057_v21 = vunpack.c.h.bf16 %v1922_v62 }
 0x504   :  { %v3681_v63 = vpop.eup %3680  ;;  %2054 = vmatpush.msrb.mxu1 %v1827_v22  ;;  %6296 = vst [vmem:[#allocation56_spill] sm:$0xff] %v5027_v5  ;;  %v1918_v22 = vld [vmem:[#allocation12 + $0x1d8] sm:$0xff] }
 0x505   :  { %v3683_v37 = vpop.eup %3682  ;;  %v4982_v39 = vadd.f32 1.0, %v3681_v63  ;;  %3684 = vpow2.f32 %v3541_v4  ;;  %2136 = vmatpush.msrb.mxu3 %v1829_v30  ;;  %6297 = vst [vmem:[#allocation57_spill] sm:$0xff] %v5029_v10  ;;  %v5065_v30 = vunpack.c.h.bf16 %v1918_v22 }
 0x506   :  { %v4984_v43 = vadd.f32 1.0, %v3683_v37  ;;  %6299 = vst [vmem:[#allocation58_spill] sm:$0xff] %v5057_v21 }
 0x507   :  { %3686 = vrcp.f32 %v4982_v39  ;;  %v1585_v31 = vand.u32 2147483648, %v4982_v39  ;;  %v1583_v28 = vand.u32 2147483647, %v4982_v39  ;;  %vm1579_vm10 = vweird.f32 %v4982_v39 }
 0x508   :  { %3688 = vrcp.f32 %v4984_v43  ;;  %v1600_v27 = vand.u32 2147483648, %v4984_v43  ;;  %v1598_v33 = vand.u32 2147483647, %v4984_v43  ;;  %vm1594_vm11 = vweird.f32 %v4984_v43 }
 0x509   :  { %v1586_v23 = vor.u32 1.1754944e-38, %v1585_v31  ;;  %vm1584_vm14 = vcmp.eq.f32.partialorder %v1583_v28, 8.507059e+37  ;;  %v5079_v31 = vunpack.c.h.bf16 %v1916_v29 }
 0x50a   :  { %v1601_v57 = vor.u32 1.1754944e-38, %v1600_v27  ;;  %vm1599_vm15 = vcmp.eq.f32.partialorder %v1598_v33, 8.507059e+37  ;;  %v1914_v27 = vld [vmem:[#allocation12 + $0x1b8] sm:$0xff] }
 0x50b   :  { %v3685_v6 = vpop.eup %3684  ;;  %v5087_v28 = vunpack.c.h.bf16 %v1914_v27 }
 0x50c   :  { %v4990_v8 = vadd.f32 1.0, %v3685_v6  ;;  %v1920_v6 = vld [vmem:[#allocation12 + $0x1e8] sm:$0xff] }
 0x50d   :  { %v3687_v24 = vpop.eup %3686  ;;  %v5031_v15 = vunpack.c.l.bf16 %v1920_v6 }
 0x50e   :  { %v3689_v26 = vpop.eup %3688  ;;  %v1575_v7 = vmul.f32 %v3687_v24, %v4982_v39  ;;  %3690 = vrcp.f32 %v4990_v8  ;;  %vm1580_vm8 = vweird.f32 %v3687_v24  ;;  %v1615_v45 = vand.u32 2147483648, %v4990_v8 }
 0x50f   :  { %v1590_v38 = vmul.f32 %v3689_v26, %v4984_v43  ;;  %3692 = vtanh.f32 %v1561_v25  ;;  %vm1595_vm9 = vweird.f32 %v3689_v26  ;;  %vm1581_vm12 = vmor %vm1579_vm10, %vm1580_vm8  ;;  %vm1609_vm1 = vweird.f32 %v4990_v8  ;;  %v1915_v25 = vld [vmem:[#allocation12 + $0x1c0] sm:$0xff] }
 0x510   :  { %v1576_v49 = vsub.f32 1.0, %v1575_v7  ;;  %vm1596_vm13 = vmor %vm1594_vm11, %vm1595_vm9  ;;  %v1613_v46 = vand.u32 2147483647, %v4990_v8  ;;  %v1616_v48 = vor.u32 1.1754944e-38, %v1615_v45  ;;  %v1913_v7 = vld [vmem:[#allocation12 + $0x1b0] sm:$0xff]  ;;  %v1908_v45 = vld [vmem:[#allocation12 + $0x188] sm:$0xff] }
 0x511   :  { %v1591_v18 = vsub.f32 1.0, %v1590_v38  ;;  %v5072_v38 = vunpack.c.l.bf16 %v1916_v29  ;;  %v5127_v60 = vunpack.c.h.bf16 %v1908_v45 }
 0x512   :  { %v1577_v34 = vmul.f32 %v3687_v24, %v1576_v49  ;;  %vm1614_vm3 = vcmp.eq.f32.partialorder %v1613_v46, 8.507059e+37  ;;  %v5074_v49 = vunpack.c.l.bf16 %v1913_v7 }
 0x513   :  { %v1592_v53 = vmul.f32 %v3689_v26, %v1591_v18  ;;  %v5076_v18 = vunpack.c.h.bf16 %v1913_v7 }
 0x514   :  { %v3691_v12 = vpop.eup %3690  ;;  %v1578_v14 = vadd.f32 %v3687_v24, %v1577_v34  ;;  %v5084_v34 = vunpack.c.l.bf16 %v1914_v27  ;;  %v1899_v27 = vld [vmem:[#allocation12 + $0x140] sm:$0xff] }
 0x515   :  { %v1605_v54 = vmul.f32 %v3691_v12, %v4990_v8  ;;  %v1593_v4 = vadd.f32 %v3689_v26, %v1592_v53  ;;  %v3693_v63 = vpop.eup %3692  ;;  %vm1610_vm0 = vweird.f32 %v3691_v12  ;;  %v5040_v8 = vunpack.c.h.bf16 %v1917_v11  ;;  %v6300_v53 = vld [vmem:[#allocation74_spill] sm:$0xff] }
 0x516   :  { %v1582_v44 = vsel %vm1581_vm12, %v3687_v24, %v1578_v14  ;;  %vm1611_vm2 = vmor %vm1609_vm1, %vm1610_vm0  ;;  %v5060_v24 = vunpack.c.h.bf16 %v1920_v6  ;;  %v377_v33 = vadd.f32 %v6300_v53, %v6279_v13  ;;  %v1901_v11 = vld [vmem:[#allocation12 + $0x150] sm:$0xff]  ;;  %v1902_v53 = vld [vmem:[#allocation12 + $0x158] sm:$0xff] }
 0x517   :  { %v1606_v40 = vsub.f32 1.0, %v1605_v54  ;;  %v1587_v35 = vsel %vm1584_vm14, %v1586_v23, %v1582_v44  ;;  %v1597_v52 = vsel %vm1596_vm13, %v3689_v26, %v1593_v4  ;;  %v5069_v26 = vunpack.c.h.bf16 %v1915_v25  ;;  %v1911_v54 = vld [vmem:[#allocation12 + $0x1a0] sm:$0xff]  ;;  %v1912_v23 = vld [vmem:[#allocation12 + $0x1a8] sm:$0xff] }
 0x518   :  { %v1602_v36 = vsel %vm1599_vm15, %v1601_v57, %v1597_v52  ;;  %v1621_v37 = vmul.f32 %v3693_v63, %v1587_v35  ;;  %v5095_v4 = vunpack.c.l.bf16 %v1911_v54  ;;  %v5097_v57 = vunpack.c.h.bf16 %v1911_v54  ;;  %v1910_v35 = vld [vmem:[#allocation12 + $0x198] sm:$0xff]  ;;  %v1900_v54 = vld [vmem:[#allocation12 + $0x148] sm:$0xff] }
 0x519   :  { %v1607_v41 = vmul.f32 %v3691_v12, %v1606_v40  ;;  %v1620_v39 = vmul.f32 %v1602_v36, %v4967_v2  ;;  %v6291_v2 = vld [vmem:[#allocation83_spill] sm:$0xff]  ;;  %v5100_v44 = vunpack.c.l.bf16 %v1912_v23  ;;  %v5103_v13 = vunpack.c.h.bf16 %v1912_v23  ;;  %v1909_v40 = vld [vmem:[#allocation12 + $0x190] sm:$0xff] }
 0x51a   :  { %v5115_v46 = vunpack.c.h.bf16 %v1910_v35 }
 0x51b   :  { %v5003_v42 = vadd.f32 %v1621_v37, %v1620_v39  ;;  %v1608_v43 = vadd.f32 %v3691_v12, %v1607_v41  ;;  %v5107_v37 = vunpack.c.l.bf16 %v1909_v40  ;;  %v5109_v41 = vunpack.c.h.bf16 %v1909_v40  ;;  %v1907_v39 = vld [vmem:[#allocation12 + $0x180] sm:$0xff]  ;;  %v1897_v40 = vld [vmem:[#allocation12 + $0x130] sm:$0xff] }
 0x51d   :  { %3694 = vtanh.f32 %v5003_v42  ;;  %v1612_v47 = vsel %vm1611_vm2, %v3691_v12, %v1608_v43  ;;  %v6301_v12 = vld [vmem:[#allocation75_spill] sm:$0xff]  ;;  %v5112_v43 = vunpack.c.l.bf16 %v1910_v35  ;;  %v5160_v35 = vunpack.c.l.bf16 %v1899_v27 }
 0x51e   :  { %v1617_v51 = vsel %vm1614_vm3, %v1616_v48, %v1612_v47  ;;  %v418_v14 = vadd.f32 %v6301_v12, %v6281_v17  ;;  %v5147_v12 = vunpack.c.l.bf16 %v1901_v11 }
 0x51f   :  { %6307 = vst [vmem:[#allocation63_spill] sm:$0xff] %v5160_v35 }
 0x520   :  { %6303 = vst [vmem:[#allocation59_spill] sm:$0xff] %v5147_v12 }
 0x523   :  { %v3695_v50 = vpop.eup %3694 }
 0x524   :  { %v1624_v55 = vmul.f32 %v3695_v50, %v1617_v51  ;;  %v5119_v50 = vunpack.c.l.bf16 %v1907_v39  ;;  %v5121_v51 = vunpack.c.h.bf16 %v1907_v39 }
 0x526   :  { %1650 = vmatmul.f32.vlgmr.msra.gmra.mxu0 %v1624_v55  ;;  %1670 = vmatmul.f32.vlgmr.msra.gmra.mxu1 %v1624_v55 }
 0x527   :  { %1690 = vmatmul.f32.vlgmr.msra.gmra.mxu2 %v1624_v55  ;;  %1710 = vmatmul.f32.vlgmr.msra.gmra.mxu3 %v1624_v55 }
 0x528   :  { %2202 = vmatpush.msra.mxu0 %v5021_v0  ;;  %2222 = vmatpush.msra.mxu1 %v5023_v1 }
 0x529   :  { %2242 = vmatpush.msra.mxu2 %v5029_v10  ;;  %2262 = vmatpush.msra.mxu3 %v5057_v21 }
 0x52a   :  { %2203 = vmatpush.msra.mxu0 %v5025_v3  ;;  %2223 = vmatpush.msra.mxu1 %v5027_v5 }
 0x52b   :  { %2243 = vmatpush.msra.mxu2 %v5031_v15  ;;  %2263 = vmatpush.msra.mxu3 %v5060_v24 }
 0x52c   :  { %2204 = vmatpush.msra.mxu0 %v5038_v16  ;;  %2224 = vmatpush.msra.mxu1 %v5040_v8 }
 0x52d   :  { %2264 = vmatpush.msra.mxu3 %v5065_v30 }
 0x52e   :  { %2014 = vmatmul.f32.vlgmr.msrb.gmra.mxu0 %v6291_v2  ;;  %2055 = vmatmul.f32.vlgmr.msrb.gmra.mxu1 %v6291_v2 }
 0x52f   :  { %2096 = vmatmul.f32.vlgmr.msrb.gmra.mxu2 %v6291_v2  ;;  %2137 = vmatmul.f32.vlgmr.msrb.gmra.mxu3 %v6291_v2  ;;  %v5124_v2 = vunpack.c.l.bf16 %v1908_v45  ;;  %v5166_v45 = vunpack.c.l.bf16 %v1900_v54 }
 0x530   :  { %2225 = vmatpush.msra.mxu1 %v5069_v26  ;;  %2265 = vmatpush.msra.mxu3 %v5079_v31 }
 0x531   :  { %6309 = vst [vmem:[#allocation65_spill] sm:$0xff] %v5166_v45 }
 0x532   :  { %2226 = vmatpush.msra.mxu1 %v5076_v18  ;;  %2266 = vmatpush.msra.mxu3 %v5087_v28 }
 0x534   :  { %2227 = vmatpush.msra.mxu1 %v5097_v57  ;;  %2267 = vmatpush.msra.mxu3 %v5103_v13 }
 0x536   :  { %2017 = vmatmul.f32.gmra.mxu0 %v6292_v56  ;;  %2058 = vmatmul.f32.gmra.mxu1 %v6292_v56 }
 0x537   :  { %2099 = vmatmul.f32.gmra.mxu2 %v6292_v56  ;;  %2140 = vmatmul.f32.gmra.mxu3 %v6292_v56  ;;  %v1903_v56 = vld [vmem:[#allocation12 + $0x160] sm:$0xff] }
 0x538   :  { %2228 = vmatpush.msra.mxu1 %v5109_v41  ;;  %2268 = vmatpush.msra.mxu3 %v5115_v46  ;;  %v5135_v6 = vunpack.c.l.bf16 %v1903_v56  ;;  %v5140_v29 = vunpack.c.h.bf16 %v1903_v56  ;;  %v5172_v56 = vunpack.c.l.bf16 %v1897_v40 }
 0x53a   :  { %2229 = vmatpush.msra.mxu1 %v5121_v51  ;;  %2269 = vmatpush.msra.mxu3 %v5127_v60  ;;  %6311 = vst [vmem:[#allocation25_spill] sm:$0xff] %v5172_v56 }
 0x53e   :  { %2020 = vmatmul.f32.gmra.mxu0 %v6293_v58  ;;  %2061 = vmatmul.f32.gmra.mxu1 %v6293_v58 }
 0x53f   :  { %2102 = vmatmul.f32.gmra.mxu2 %v6293_v58  ;;  %2143 = vmatmul.f32.gmra.mxu3 %v6293_v58  ;;  %v1906_v58 = vld [vmem:[#allocation12 + $0x178] sm:$0xff] }
 0x540   :  { %v5142_v7 = vunpack.c.l.bf16 %v1906_v58 }
 0x546   :  { %2023 = vmatmul.f32.gmra.mxu0 %v6298_v20  ;;  %2064 = vmatmul.f32.gmra.mxu1 %v6298_v20 }
 0x547   :  { %2105 = vmatmul.f32.gmra.mxu2 %v6298_v20  ;;  %2146 = vmatmul.f32.gmra.mxu3 %v6298_v20  ;;  %v1904_v20 = vld [vmem:[#allocation12 + $0x168] sm:$0xff] }
 0x54e   :  { %2026 = vmatmul.f32.gmra.mxu0 %v4888_v9  ;;  %2067 = vmatmul.f32.gmra.mxu1 %v4888_v9 }
 0x54f   :  { %2108 = vmatmul.f32.gmra.mxu2 %v4888_v9  ;;  %2149 = vmatmul.f32.gmra.mxu3 %v4888_v9  ;;  %v5062_v9 = vunpack.c.l.bf16 %v1918_v22  ;;  %v6302_v22 = vld [vmem:[#allocation79_spill] sm:$0xff] }
 0x551   :  { %2244 = vmatpush.msra.mxu2 %v5062_v9 }
 0x553   :  { %2245 = vmatpush.msra.mxu2 %v5072_v38 }
 0x555   :  { %2246 = vmatpush.msra.mxu2 %v5084_v34 }
 0x556   :  { %2029 = vmatmul.f32.gmra.mxu0 %v4970_v19  ;;  %2070 = vmatmul.f32.gmra.mxu1 %v4970_v19 }
 0x557   :  { %2111 = vmatmul.f32.gmra.mxu2 %v4970_v19  ;;  %2152 = vmatmul.f32.gmra.mxu3 %v4970_v19  ;;  %v5067_v19 = vunpack.c.l.bf16 %v1915_v25  ;;  %v459_v25 = vadd.f32 %v6302_v22, %v6283_v59  ;;  %v5151_v59 = vunpack.c.l.bf16 %v1904_v20 }
 0x558   :  { %2247 = vmatpush.msra.mxu2 %v5100_v44 }
 0x559   :  { %2205 = vmatpush.msra.mxu0 %v5067_v19  ;;  %6305 = vst [vmem:[#allocation61_spill] sm:$0xff] %v5151_v59 }
 0x55a   :  { %2248 = vmatpush.msra.mxu2 %v5112_v43 }
 0x55b   :  { %2206 = vmatpush.msra.mxu0 %v5074_v49 }
 0x55c   :  { %2249 = vmatpush.msra.mxu2 %v5124_v2 }
 0x55d   :  { %2207 = vmatpush.msra.mxu0 %v5095_v4 }
 0x55e   :  { %2032 = vmatmul.f32.gmra.mxu0 %v1624_v55  ;;  %2073 = vmatmul.f32.gmra.mxu1 %v1624_v55 }
 0x55f   :  { %2114 = vmatmul.f32.gmra.mxu2 %v1624_v55  ;;  %2155 = vmatmul.f32.gmra.mxu3 %v1624_v55  ;;  %v1905_v55 = vld [vmem:[#allocation12 + $0x170] sm:$0xff] }
 0x560   :  { %2208 = vmatpush.msra.mxu0 %v5107_v37  ;;  %v5131_v61 = vunpack.c.l.bf16 %v1905_v55  ;;  %v5133_v62 = vunpack.c.h.bf16 %v1905_v55  ;;  %2250 = vmatpush.msra.mxu2 %v5142_v7 }
 0x562   :  { %2209 = vmatpush.msra.mxu0 %v5119_v50  ;;  %2230 = vmatpush.msra.mxu1 %v5133_v62 }
 0x563   :  { %2251 = vmatpush.msra.mxu2 %v5151_v59 }
 0x564   :  { %2210 = vmatpush.msra.mxu0 %v5131_v61  ;;  %2231 = vmatpush.msra.mxu1 %v5140_v29 }
 0x566   :  { %2211 = vmatpush.msra.mxu0 %v5135_v6 }
 0x568   :  { %2212 = vmatpush.msra.mxu0 %v5147_v12 }
 0x56a   :  { %2213 = vmatpush.msra.mxu0 %v5160_v35 }
 0x56c   :  { %2214 = vmatpush.msra.mxu0 %v5172_v56 }
 0x5a3   :  { %v1651_v63 = vpop.f32.mrf.mxu0  ;;  %v1671_v17 = vpop.f32.mrf.mxu1 }
 0x5a4   :  { %v1714_v52 = vadd.f32 %v1651_v63, %v377_v33  ;;  %v1715_v36 = vadd.f32 %v1671_v17, %v418_v14  ;;  %v5149_v14 = vunpack.c.h.bf16 %v1901_v11  ;;  %v5154_v63 = vunpack.c.l.bf16 %v1902_v53 }
 0x5a5   :  { %v5156_v17 = vunpack.c.h.bf16 %v1906_v58  ;;  %v5174_v58 = vunpack.c.h.bf16 %v1897_v40  ;;  %v5176_v11 = vunpack.c.h.bf16 %v1902_v53 }
 0x5a6   :  { %v3542_v47 = vmul.f32 -1.442695, %v1714_v52  ;;  %v3543_v48 = vmul.f32 -1.442695, %v1715_v36  ;;  %6304 = vst [vmem:[#allocation60_spill] sm:$0xff] %v5149_v14  ;;  %v5162_v52 = vunpack.c.h.bf16 %v1899_v27  ;;  %v1898_v36 = vld [vmem:[#allocation12 + $0x138] sm:$0xff]  ;;  %2232 = vmatpush.msra.mxu1 %v5149_v14  ;;  %2252 = vmatpush.msra.mxu2 %v5154_v63  ;;  %v5184_v27 = vunpack.c.h.bf16 %v1900_v54 }
 0x5a7   :  { %6306 = vst [vmem:[#allocation62_spill] sm:$0xff] %v5154_v63  ;;  %2270 = vmatpush.msra.mxu3 %v5156_v17  ;;  %v5197_v40 = vunpack.c.h.bf16 %v1898_v36  ;;  %v1893_v54 = vld [vmem:[#allocation12 + $0x110] sm:$0xff] }
 0x5a8   :  { %3696 = vpow2.f32 %v3542_v47  ;;  %6308 = vst [vmem:[#allocation64_spill] sm:$0xff] %v5162_v52  ;;  %v5168_v47 = vunpack.c.h.bf16 %v1904_v20  ;;  %v5182_v20 = vunpack.c.l.bf16 %v1898_v36  ;;  %2233 = vmatpush.msra.mxu1 %v5162_v52  ;;  %2253 = vmatpush.msra.mxu2 %v5166_v45  ;;  %v1891_v36 = vld [vmem:[#allocation12 + $0x100] sm:$0xff]  ;;  %v5208_v56 = vunpack.c.l.bf16 %v1893_v54 }
 0x5a9   :  { %3698 = vpow2.f32 %v3543_v48  ;;  %v1895_v48 = vld [vmem:[#allocation12 + $0x120] sm:$0xff]  ;;  %6312 = vst [vmem:[#allocation26_spill] sm:$0xff] %v5174_v58 }
 0x5aa   :  { %v1691_v33 = vpop.f32.mrf.mxu2  ;;  %6310 = vst [vmem:[#allocation68_spill] sm:$0xff] %v5168_v47  ;;  %2271 = vmatpush.msra.mxu3 %v5168_v47  ;;  %v5190_v53 = vunpack.c.l.bf16 %v1895_v48  ;;  %2234 = vmatpush.msra.mxu1 %v5174_v58  ;;  %v1711_v45 = vpop.f32.mrf.mxu3  ;;  %v5210_v58 = vunpack.c.h.bf16 %v1893_v54 }
 0x5ab   :  { %v1716_v23 = vadd.f32 %v1691_v33, %v459_v25  ;;  %6313 = vst [vmem:[#allocation27_spill] sm:$0xff] %v5176_v11  ;;  %2254 = vmatpush.msra.mxu2 %v5182_v20 }
 0x5ac   :  { %6314 = vst [vmem:[#allocation28_spill] sm:$0xff] %v5182_v20  ;;  %2272 = vmatpush.msra.mxu3 %v5176_v11  ;;  %2215 = vmatpush.msra.mxu0 %v5190_v53 }
 0x5ad   :  { %v3544_v39 = vmul.f32 -1.442695, %v1716_v23  ;;  %6315 = vst [vmem:[#allocation29_spill] sm:$0xff] %v5184_v27  ;;  %v5192_v23 = vunpack.c.h.bf16 %v1895_v48  ;;  %v1894_v48 = vld [vmem:[#allocation12 + $0x118] sm:$0xff] }
 0x5ae   :  { %v3697_v55 = vpop.eup %3696  ;;  %6316 = vst [vmem:[#allocation30_spill] sm:$0xff] %v5190_v53  ;;  %2273 = vmatpush.msra.mxu3 %v5184_v27  ;;  %v1892_v27 = vld [vmem:[#allocation12 + $0x108] sm:$0xff]  ;;  %2216 = vmatpush.msra.mxu0 %v5208_v56  ;;  %v5227_v54 = vunpack.c.h.bf16 %v1894_v48 }
 0x5af   :  { %v3699_v22 = vpop.eup %3698  ;;  %v5178_v25 = vadd.f32 1.0, %v3697_v55  ;;  %3700 = vpow2.f32 %v3544_v39  ;;  %6317 = vst [vmem:[#allocation31_spill] sm:$0xff] %v5192_v23  ;;  %v1896_v39 = vld [vmem:[#allocation12 + $0x128] sm:$0xff]  ;;  %2235 = vmatpush.msra.mxu1 %v5192_v23  ;;  %v5223_v23 = vunpack.c.l.bf16 %v1894_v48 }
 0x5b0   :  { %v5186_v33 = vadd.f32 1.0, %v3699_v22  ;;  %6318 = vst [vmem:[#allocation32_spill] sm:$0xff] %v5197_v40  ;;  %v6319_v55 = vld [vmem:[#allocation81_spill] sm:$0xff]  ;;  %v5212_v35 = vunpack.c.l.bf16 %v1896_v39  ;;  %2274 = vmatpush.msra.mxu3 %v5197_v40  ;;  %v5215_v20 = vunpack.c.h.bf16 %v1896_v39 }
 0x5b1   :  { %3702 = vrcp.f32 %v5178_v25  ;;  %v500_v22 = vadd.f32 %v6319_v55, %v6285_v32  ;;  %6320 = vst [vmem:[#allocation33_spill] sm:$0xff] %v5208_v56  ;;  %v5219_v32 = vunpack.c.l.bf16 %v1891_v36  ;;  %v5221_v55 = vunpack.c.h.bf16 %v1891_v36  ;;  %2236 = vmatpush.msra.mxu1 %v5210_v58 }
 0x5b2   :  { %3704 = vrcp.f32 %v5186_v33  ;;  %6321 = vst [vmem:[#allocation34_spill] sm:$0xff] %v5210_v58  ;;  %2255 = vmatpush.msra.mxu2 %v5212_v35  ;;  %2275 = vmatpush.msra.mxu3 %v5215_v20  ;;  %v5235_v36 = vunpack.c.h.bf16 %v1892_v27  ;;  %v1741_v58 = vand.u32 2147483648, %v5178_v25  ;;  %vm1735_vm6 = vweird.f32 %v5178_v25 }
 0x5b3   :  { %6322 = vst [vmem:[#allocation35_spill] sm:$0xff] %v5212_v35  ;;  %v1717_v63 = vadd.f32 %v1711_v45, %v500_v22  ;;  %2217 = vmatpush.msra.mxu0 %v5219_v32  ;;  %2237 = vmatpush.msra.mxu1 %v5221_v55  ;;  %vm1750_vm7 = vweird.f32 %v5186_v33 }
 0x5b4   :  { %6323 = vst [vmem:[#allocation36_spill] sm:$0xff] %v5215_v20  ;;  %2256 = vmatpush.msra.mxu2 %v5223_v23  ;;  %2276 = vmatpush.msra.mxu3 %v5227_v54 }
 0x5b5   :  { %v3701_v52 = vpop.eup %3700  ;;  %6324 = vst [vmem:[#allocation37_spill] sm:$0xff] %v5219_v32  ;;  %2354 = vmatpush.msrb.mxu0 %v5021_v0  ;;  %2374 = vmatpush.msrb.mxu1 %v5023_v1  ;;  %v1739_v32 = vand.u32 2147483647, %v5178_v25 }
 0x5b6   :  { %v5217_v11 = vadd.f32 1.0, %v3701_v52  ;;  %6325 = vst [vmem:[#allocation38_spill] sm:$0xff] %v5221_v55  ;;  %v5233_v52 = vunpack.c.l.bf16 %v1892_v27  ;;  %v1756_v27 = vand.u32 2147483648, %v5186_v33  ;;  %2277 = vmatpush.msra.mxu3 %v5235_v36 }
 0x5b7   :  { %6326 = vst [vmem:[#allocation39_spill] sm:$0xff] %v5223_v23  ;;  %v3703_v53 = vpop.eup %3702  ;;  %2355 = vmatpush.msrb.mxu0 %v5025_v3  ;;  %2375 = vmatpush.msrb.mxu1 %v5027_v5  ;;  %vm1740_vm10 = vcmp.eq.f32.partialorder %v1739_v32, 8.507059e+37 }
 0x5b8   :  { %6327 = vst [vmem:[#allocation40_spill] sm:$0xff] %v5227_v54  ;;  %v3705_v40 = vpop.eup %3704  ;;  %v1731_v39 = vmul.f32 %v3703_v53, %v5178_v25  ;;  %3706 = vrcp.f32 %v5217_v11  ;;  %vm1736_vm4 = vweird.f32 %v3703_v53  ;;  %2257 = vmatpush.msra.mxu2 %v5233_v52  ;;  %2414 = vmatpush.msrb.mxu3 %v5057_v21  ;;  %vm1765_vm13 = vweird.f32 %v5217_v11 }
 0x5b9   :  { %6328 = vst [vmem:[#allocation41_spill] sm:$0xff] %v5233_v52  ;;  %v1746_v45 = vmul.f32 %v3705_v40, %v5186_v33  ;;  %3708 = vtanh.f32 %v1717_v63  ;;  %vm1751_vm5 = vweird.f32 %v3705_v40  ;;  %vm1737_vm8 = vmor %vm1735_vm6, %vm1736_vm4  ;;  %2356 = vmatpush.msrb.mxu0 %v5038_v16  ;;  %2376 = vmatpush.msrb.mxu1 %v5040_v8 }
 0x5ba   :  { %6329 = vst [vmem:[#allocation42_spill] sm:$0xff] %v5235_v36  ;;  %v1732_v48 = vsub.f32 1.0, %v1731_v39  ;;  %2394 = vmatpush.msrb.mxu2 %v5029_v10  ;;  %2415 = vmatpush.msrb.mxu3 %v5060_v24  ;;  %vm1752_vm9 = vmor %vm1750_vm7, %vm1751_vm5 }
 0x5bb   :  { %v1747_v22 = vsub.f32 1.0, %v1746_v45  ;;  %v1754_v45 = vand.u32 2147483647, %v5186_v33  ;;  %2357 = vmatpush.msrb.mxu0 %v5067_v19  ;;  %2377 = vmatpush.msrb.mxu1 %v5069_v26 }
 0x5bc   :  { %v1733_v56 = vmul.f32 %v3703_v53, %v1732_v48  ;;  %2395 = vmatpush.msrb.mxu2 %v5031_v15  ;;  %2416 = vmatpush.msrb.mxu3 %v5065_v30 }
 0x5bd   :  { %v1748_v39 = vmul.f32 %v3705_v40, %v1747_v22  ;;  %v1742_v22 = vor.u32 1.1754944e-38, %v1741_v58  ;;  %vm1755_vm11 = vcmp.eq.f32.partialorder %v1754_v45, 8.507059e+37  ;;  %2358 = vmatpush.msrb.mxu0 %v5074_v49  ;;  %2378 = vmatpush.msrb.mxu1 %v5076_v18  ;;  %v6330_v45 = vld [vmem:[#allocation62_spill] sm:$0xff] }
 0x5be   :  { %v5252_v63 = vpop.eup %3706  ;;  %v1734_v1 = vadd.f32 %v3703_v53, %v1733_v56  ;;  %v1757_v56 = vor.u32 1.1754944e-38, %v1756_v27  ;;  %2396 = vmatpush.msrb.mxu2 %v5062_v9  ;;  %2417 = vmatpush.msrb.mxu3 %v5079_v31 }
 0x5bf   :  { %v1761_v48 = vmul.f32 %v5252_v63, %v5217_v11  ;;  %v1749_v10 = vadd.f32 %v3705_v40, %v1748_v39  ;;  %v3709_v33 = vpop.eup %3708  ;;  %vm1766_vm12 = vweird.f32 %v5252_v63  ;;  %2359 = vmatpush.msrb.mxu0 %v5095_v4  ;;  %2379 = vmatpush.msrb.mxu1 %v5097_v57 }
 0x5c0   :  { %v1738_v25 = vsel %vm1737_vm8, %v3703_v53, %v1734_v1  ;;  %2397 = vmatpush.msrb.mxu2 %v5072_v38  ;;  %2418 = vmatpush.msrb.mxu3 %v5087_v28  ;;  %vm1767_vm14 = vmor %vm1765_vm13, %vm1766_vm12 }
 0x5c1   :  { %v1762_v5 = vsub.f32 1.0, %v1761_v48  ;;  %v1743_v3 = vsel %vm1740_vm10, %v1742_v22, %v1738_v25  ;;  %v1753_v21 = vsel %vm1752_vm9, %v3705_v40, %v1749_v10  ;;  %2360 = vmatpush.msrb.mxu0 %v5107_v37  ;;  %2380 = vmatpush.msrb.mxu1 %v5109_v41  ;;  %v6332_v48 = vld [vmem:[#allocation63_spill] sm:$0xff]  ;;  %v2195_v22 = vld [vmem:[#allocation7 + $0x8] sm:$0xff] }
 0x5c2   :  { %v1758_v58 = vsel %vm1755_vm11, %v1757_v56, %v1753_v21  ;;  %v1777_v39 = vmul.f32 %v3709_v33, %v1743_v3  ;;  %2398 = vmatpush.msrb.mxu2 %v5084_v34  ;;  %2419 = vmatpush.msrb.mxu3 %v5103_v13  ;;  %v6333_v56 = vld [vmem:[#allocation64_spill] sm:$0xff]  ;;  %v6334_v25 = vld [vmem:[#allocation65_spill] sm:$0xff] }
 0x5c3   :  { %v1763_v1 = vmul.f32 %v5252_v63, %v1762_v5  ;;  %v1776_v53 = vmul.f32 %v1758_v58, %v5003_v42  ;;  %v1771_v42 = vand.u32 2147483648, %v5217_v11  ;;  %v1769_v5 = vand.u32 2147483647, %v5217_v11  ;;  %2361 = vmatpush.msrb.mxu0 %v5119_v50  ;;  %2381 = vmatpush.msrb.mxu1 %v5121_v51  ;;  %v6335_v33 = vld [vmem:[#allocation29_spill] sm:$0xff] }
 0x5c4   :  { %2399 = vmatpush.msrb.mxu2 %v5100_v44  ;;  %2420 = vmatpush.msrb.mxu3 %v5115_v46  ;;  %v6336_v58 = vld [vmem:[#allocation25_spill] sm:$0xff] }
 0x5c5   :  { %v1778_v10 = vadd.f32 %v1777_v39, %v1776_v53  ;;  %v1764_v3 = vadd.f32 %v5252_v63, %v1763_v1  ;;  %v1772_v40 = vor.u32 1.1754944e-38, %v1771_v42  ;;  %vm1770_vm15 = vcmp.eq.f32.partialorder %v1769_v5, 8.507059e+37  ;;  %2362 = vmatpush.msrb.mxu0 %v5131_v61  ;;  %2382 = vmatpush.msrb.mxu1 %v5133_v62  ;;  %v6337_v39 = vld [vmem:[#allocation26_spill] sm:$0xff]  ;;  %v6338_v1 = vld [vmem:[#allocation28_spill] sm:$0xff]  ;;  %v6342_v42 = vld [vmem:[#allocation33_spill] sm:$0xff] }
 0x5c6   :  { %2400 = vmatpush.msrb.mxu2 %v5112_v43  ;;  %2421 = vmatpush.msrb.mxu3 %v5127_v60  ;;  %v6339_v53 = vld [vmem:[#allocation32_spill] sm:$0xff]  ;;  %v6343_v5 = vld [vmem:[#allocation34_spill] sm:$0xff] }
 0x5c7   :  { %3710 = vtanh.f32 %v1778_v10  ;;  %1784 = vst [vmem:[#allocation18] sm:$0xff] %v1778_v10  ;;  %v1768_v21 = vsel %vm1767_vm14, %v5252_v63, %v1764_v3  ;;  %2363 = vmatpush.msrb.mxu0 %v5135_v6  ;;  %2383 = vmatpush.msrb.mxu1 %v5140_v29  ;;  %v6331_v63 = vld [vmem:[#allocation27_spill] sm:$0xff]  ;;  %v6340_v10 = vld [vmem:[#allocation30_spill] sm:$0xff] }
 0x5c8   :  { %2401 = vmatpush.msrb.mxu2 %v5124_v2  ;;  %v1773_v32 = vsel %vm1770_vm15, %v1772_v40, %v1768_v21  ;;  %2422 = vmatpush.msrb.mxu3 %v5156_v17  ;;  %v6341_v3 = vld [vmem:[#allocation31_spill] sm:$0xff]  ;;  %v6344_v21 = vld [vmem:[#allocation37_spill] sm:$0xff]  ;;  %v6345_v40 = vld [vmem:[#allocation54_spill] sm:$0xff] }
 0x5c9   :  { %2364 = vmatpush.msrb.mxu0 %v5147_v12  ;;  %2384 = vmatpush.msrb.mxu1 %v5149_v14 }
 0x5ca   :  { %2402 = vmatpush.msrb.mxu2 %v5142_v7  ;;  %2423 = vmatpush.msrb.mxu3 %v5168_v47 }
 0x5cb   :  { %2365 = vmatpush.msrb.mxu0 %v6332_v48  ;;  %2385 = vmatpush.msrb.mxu1 %v6333_v56 }
 0x5cc   :  { %2403 = vmatpush.msrb.mxu2 %v5151_v59  ;;  %2424 = vmatpush.msrb.mxu3 %v6331_v63 }
 0x5cd   :  { %v3711_v11 = vpop.eup %3710  ;;  %2366 = vmatpush.msrb.mxu0 %v6336_v58  ;;  %2386 = vmatpush.msrb.mxu1 %v6337_v39 }
 0x5ce   :  { %v1780_v27 = vmul.f32 %v3711_v11, %v1773_v32  ;;  %2404 = vmatpush.msrb.mxu2 %v6330_v45  ;;  %2425 = vmatpush.msrb.mxu3 %v6335_v33  ;;  %v6346_v11 = vld [vmem:[#allocation57_spill] sm:$0xff]  ;;  %v6347_v32 = vld [vmem:[#allocation58_spill] sm:$0xff] }
 0x5cf   :  { %2367 = vmatpush.msrb.mxu0 %v6340_v10  ;;  %2387 = vmatpush.msrb.mxu1 %v6341_v3 }
 0x5d0   :  { %2035 = vmatmul.f32.gmra.mxu0 %v1780_v27  ;;  %1783 = vst [vmem:[#allocation16] sm:$0xff] %v1780_v27  ;;  %2076 = vmatmul.f32.gmra.mxu1 %v1780_v27 }
 0x5d1   :  { %2117 = vmatmul.f32.gmra.mxu2 %v1780_v27  ;;  %2158 = vmatmul.f32.gmra.mxu3 %v1780_v27  ;;  %v6348_v27 = vld [vmem:[#allocation55_spill] sm:$0xff] }
 0x5d2   :  { %2405 = vmatpush.msrb.mxu2 %v6334_v25  ;;  %2426 = vmatpush.msrb.mxu3 %v6339_v53 }
 0x5d3   :  { %2368 = vmatpush.msrb.mxu0 %v6342_v42  ;;  %2388 = vmatpush.msrb.mxu1 %v6343_v5 }
 0x5d4   :  { %2406 = vmatpush.msrb.mxu2 %v6338_v1  ;;  %2427 = vmatpush.msrb.mxu3 %v5215_v20 }
 0x5d5   :  { %2369 = vmatpush.msrb.mxu0 %v6344_v21  ;;  %2389 = vmatpush.msrb.mxu1 %v5221_v55 }
 0x5d6   :  { %2407 = vmatpush.msrb.mxu2 %v5212_v35  ;;  %2428 = vmatpush.msrb.mxu3 %v5227_v54 }
 0x5d8   :  { %2218 = vmatmul.f32.vlgmr.msra.gmra.mxu0 %v2195_v22  ;;  %2238 = vmatmul.f32.vlgmr.msra.gmra.mxu1 %v2195_v22 }
 0x5d9   :  { %2258 = vmatmul.f32.vlgmr.msra.gmra.mxu2 %v2195_v22  ;;  %2278 = vmatmul.f32.vlgmr.msra.gmra.mxu3 %v2195_v22  ;;  %v6349_v22 = vld [vmem:[#allocation56_spill] sm:$0xff] }
 0x5da   :  { %2408 = vmatpush.msrb.mxu2 %v5223_v23  ;;  %2429 = vmatpush.msrb.mxu3 %v5235_v36 }
 0x5db   :  { %2506 = vmatpush.msra.mxu0 %v5021_v0  ;;  %2526 = vmatpush.msra.mxu1 %v6345_v40 }
 0x5dc   :  { %2409 = vmatpush.msrb.mxu2 %v5233_v52  ;;  %2566 = vmatpush.msra.mxu3 %v6347_v32 }
 0x5dd   :  { %2507 = vmatpush.msra.mxu0 %v6348_v27  ;;  %2527 = vmatpush.msra.mxu1 %v6349_v22 }
 0x5de   :  { %2546 = vmatpush.msra.mxu2 %v6346_v11  ;;  %2567 = vmatpush.msra.mxu3 %v5060_v24 }
 0x5df   :  { %2508 = vmatpush.msra.mxu0 %v5038_v16  ;;  %2528 = vmatpush.msra.mxu1 %v5040_v8 }
 0x5e0   :  { %2547 = vmatpush.msra.mxu2 %v5031_v15  ;;  %2568 = vmatpush.msra.mxu3 %v5065_v30 }
 0x5e1   :  { %2509 = vmatpush.msra.mxu0 %v5067_v19  ;;  %2529 = vmatpush.msra.mxu1 %v5069_v26 }
 0x5e2   :  { %2548 = vmatpush.msra.mxu2 %v5062_v9  ;;  %2569 = vmatpush.msra.mxu3 %v5079_v31 }
 0x5e3   :  { %2510 = vmatpush.msra.mxu0 %v5074_v49  ;;  %2530 = vmatpush.msra.mxu1 %v5076_v18 }
 0x5e4   :  { %2549 = vmatpush.msra.mxu2 %v5072_v38  ;;  %2570 = vmatpush.msra.mxu3 %v5087_v28 }
 0x5e5   :  { %2511 = vmatpush.msra.mxu0 %v5095_v4  ;;  %2531 = vmatpush.msra.mxu1 %v5097_v57 }
 0x5e6   :  { %2550 = vmatpush.msra.mxu2 %v5084_v34  ;;  %2571 = vmatpush.msra.mxu3 %v5103_v13 }
 0x5e7   :  { %2512 = vmatpush.msra.mxu0 %v5107_v37  ;;  %2532 = vmatpush.msra.mxu1 %v5109_v41 }
 0x5e8   :  { %2551 = vmatpush.msra.mxu2 %v5100_v44  ;;  %2572 = vmatpush.msra.mxu3 %v5115_v46 }
 0x5e9   :  { %2513 = vmatpush.msra.mxu0 %v5119_v50  ;;  %2533 = vmatpush.msra.mxu1 %v5121_v51 }
 0x5ea   :  { %2552 = vmatpush.msra.mxu2 %v5112_v43  ;;  %2573 = vmatpush.msra.mxu3 %v5127_v60 }
 0x5eb   :  { %2514 = vmatpush.msra.mxu0 %v5131_v61  ;;  %2534 = vmatpush.msra.mxu1 %v5133_v62 }
 0x5ec   :  { %2553 = vmatpush.msra.mxu2 %v5124_v2  ;;  %2574 = vmatpush.msra.mxu3 %v5156_v17 }
 0x5ed   :  { %2515 = vmatpush.msra.mxu0 %v5135_v6  ;;  %2535 = vmatpush.msra.mxu1 %v5140_v29 }
 0x5ee   :  { %2554 = vmatpush.msra.mxu2 %v5142_v7  ;;  %2575 = vmatpush.msra.mxu3 %v5168_v47 }
 0x5ef   :  { %2516 = vmatpush.msra.mxu0 %v5147_v12  ;;  %2536 = vmatpush.msra.mxu1 %v5149_v14 }
 0x5f0   :  { %2555 = vmatpush.msra.mxu2 %v5151_v59  ;;  %2576 = vmatpush.msra.mxu3 %v6331_v63 }
 0x5f1   :  { %2517 = vmatpush.msra.mxu0 %v6332_v48  ;;  %2537 = vmatpush.msra.mxu1 %v6333_v56 }
 0x5f2   :  { %2556 = vmatpush.msra.mxu2 %v6330_v45  ;;  %2577 = vmatpush.msra.mxu3 %v6335_v33 }
 0x5f3   :  { %2518 = vmatpush.msra.mxu0 %v6336_v58  ;;  %2538 = vmatpush.msra.mxu1 %v6337_v39 }
 0x5f4   :  { %2557 = vmatpush.msra.mxu2 %v6334_v25  ;;  %2578 = vmatpush.msra.mxu3 %v6339_v53 }
 0x5f5   :  { %2519 = vmatpush.msra.mxu0 %v6340_v10  ;;  %2539 = vmatpush.msra.mxu1 %v6341_v3  ;;  %v2015_v3 = vpop.f32.mrf.mxu0  ;;  %v2097_v10 = vpop.f32.mrf.mxu2 }
 0x5f6   :  { %2558 = vmatpush.msra.mxu2 %v6338_v1  ;;  %2579 = vmatpush.msra.mxu3 %v5215_v20 }
 0x5f7   :  { %2520 = vmatpush.msra.mxu0 %v6342_v42  ;;  %2540 = vmatpush.msra.mxu1 %v6343_v5  ;;  %v2138_v5 = vpop.f32.mrf.mxu3 }
 0x5f8   :  { %2559 = vmatpush.msra.mxu2 %v5212_v35  ;;  %2580 = vmatpush.msra.mxu3 %v5227_v54  ;;  %v2056_v35 = vpop.f32.mrf.mxu1 }
 0x5f9   :  { %2521 = vmatpush.msra.mxu0 %v6344_v21  ;;  %2541 = vmatpush.msra.mxu1 %v5221_v55 }
 0x5fa   :  { %2560 = vmatpush.msra.mxu2 %v5223_v23  ;;  %2581 = vmatpush.msra.mxu3 %v5235_v36 }
 0x5fc   :  { %2561 = vmatpush.msra.mxu2 %v5233_v52 }
 0x5fd   :  { %v5392_v20 = vpop.f32.mrf.mxu0  ;;  %v5396_v53 = vpop.f32.mrf.mxu2 }
 0x5fe   :  { %6350 = vst [vmem:[#allocation43_spill] sm:$0xff] %v5392_v20 }
 0x5ff   :  { %6352 = vst [vmem:[#allocation45_spill] sm:$0xff] %v5396_v53  ;;  %v5402_v21 = vpop.f32.mrf.mxu3 }
 0x600   :  { %v5394_v42 = vpop.f32.mrf.mxu1  ;;  %6355 = vst [vmem:[#allocation48_spill] sm:$0xff] %v5402_v21 }
 0x601   :  { %6351 = vst [vmem:[#allocation44_spill] sm:$0xff] %v5394_v42 }
 0x605   :  { %v5398_v23 = vpop.f32.mrf.mxu0  ;;  %v5404_v55 = vpop.f32.mrf.mxu2 }
 0x606   :  { %6353 = vst [vmem:[#allocation46_spill] sm:$0xff] %v5398_v23 }
 0x607   :  { %6356 = vst [vmem:[#allocation49_spill] sm:$0xff] %v5404_v55  ;;  %v5410_v1 = vpop.f32.mrf.mxu3 }
 0x608   :  { %v5400_v54 = vpop.f32.mrf.mxu1  ;;  %6359 = vst [vmem:[#allocation66_spill] sm:$0xff] %v5410_v1 }
 0x609   :  { %6354 = vst [vmem:[#allocation47_spill] sm:$0xff] %v5400_v54 }
 0x60d   :  { %v5406_v52 = vpop.f32.mrf.mxu0  ;;  %v5412_v20 = vpop.f32.mrf.mxu2 }
 0x60e   :  { %6357 = vst [vmem:[#allocation50_spill] sm:$0xff] %v5406_v52 }
 0x60f   :  { %6360 = vst [vmem:[#allocation77_spill] sm:$0xff] %v5412_v20  ;;  %v5418_v53 = vpop.f32.mrf.mxu3 }
 0x610   :  { %v5408_v36 = vpop.f32.mrf.mxu1  ;;  %6363 = vst [vmem:[#allocation69_spill] sm:$0xff] %v5418_v53 }
 0x611   :  { %6358 = vst [vmem:[#allocation76_spill] sm:$0xff] %v5408_v36 }
 0x615   :  { %v5414_v42 = vpop.f32.mrf.mxu0  ;;  %v5420_v23 = vpop.f32.mrf.mxu2 }
 0x616   :  { %6361 = vst [vmem:[#allocation67_spill] sm:$0xff] %v5414_v42 }
 0x617   :  { %6364 = vst [vmem:[#allocation82_spill] sm:$0xff] %v5420_v23  ;;  %v5426_v55 = vpop.f32.mrf.mxu3  ;;  %v3545_v23 = vld [vmem:[%s5890_s5 + $0x4] sm:$0xf]  ;;  %s4078_s5 = smov [#allocation16]  }
 0x618   :  { %v5416_v39 = vpop.f32.mrf.mxu1  ;;  %6367 = vst [vmem:[#allocation71_spill] sm:$0xff] %v5426_v55  ;;  %v5447_v55 = vperm.slane %v3545_v23, 1  ;;  %v5455_v25 = vperm.slane %v3545_v23, 2  ;;  %s3474_s26 = sshll.u32 %s4078_s5, 4  ;;  %s3475_s26 = int_to_ptr.vmem [resolvable:$true] %s3474_s26 }
 0x619   :  { %6362 = vst [vmem:[#allocation80_spill] sm:$0xff] %v5416_v39 }
 0x61a   :  { %6376 = vst [vmem:[#allocation79_spill] sm:$0xff] %v5447_v55  ;;  %v2098_v56 = vadd.f32 %v2097_v10, %v5455_v25 }
 0x61b   :  { %6379 = vst [vmem:[#allocation57_spill] sm:$0xff] %v5455_v25 }
 0x61d   :  { %v5422_v54 = vpop.f32.mrf.mxu0  ;;  %v5428_v52 = vpop.f32.mrf.mxu2 }
 0x61e   :  { %6365 = vst [vmem:[#allocation72_spill] sm:$0xff] %v5422_v54 }
 0x61f   :  { %6368 = vst [vmem:[#allocation73_spill] sm:$0xff] %v5428_v52  ;;  %v5434_v20 = vpop.f32.mrf.mxu3 }
 0x620   :  { %v5424_v21 = vpop.f32.mrf.mxu1  ;;  %6371 = vst [vmem:[#allocation51_spill] sm:$0xff] %v5434_v20 }
 0x621   :  { %6366 = vst [vmem:[#allocation70_spill] sm:$0xff] %v5424_v21  ;;  %v5445_v21 = vperm.slane %v3545_v23, 0 }
 0x623   :  { %6375 = vst [vmem:[#allocation75_spill] sm:$0xff] %v5445_v21 }
 0x625   :  { %v5430_v36 = vpop.f32.mrf.mxu0  ;;  %v5436_v42 = vpop.f32.mrf.mxu2 }
 0x626   :  { %6369 = vst [vmem:[#allocation78_spill] sm:$0xff] %v5430_v36  ;;  %v2016_v36 = vadd.f32 %v2015_v3, %v5445_v21 }
 0x627   :  { %6372 = vst [vmem:[#allocation52_spill] sm:$0xff] %v5436_v42  ;;  %v5451_v52 = vpop.f32.mrf.mxu3 }
 0x628   :  { %v5432_v1 = vpop.f32.mrf.mxu1  ;;  %6377 = vst [vmem:[#allocation81_spill] sm:$0xff] %v5451_v52 }
 0x629   :  { %6370 = vst [vmem:[#allocation83_spill] sm:$0xff] %v5432_v1  ;;  %v2057_v1 = vadd.f32 %v2056_v35, %v5447_v55 }
 0x64d   :  { %v5441_v39 = vpop.f32.mrf.mxu0  ;;  %v5443_v54 = vpop.f32.mrf.mxu1 }
 0x64e   :  { %6373 = vst [vmem:[#allocation53_spill] sm:$0xff] %v5441_v39 }
 0x64f   :  { %6374 = vst [vmem:[#allocation74_spill] sm:$0xff] %v5443_v54 }
 0x654   :  { %v5453_v20 = vpop.f32.mrf.mxu2  ;;  %v5458_v48 = vpop.f32.mrf.mxu3 }
 0x655   :  { %6378 = vst [vmem:[#allocation54_spill] sm:$0xff] %v5453_v20  ;;  %v2219_v42 = vpop.f32.mrf.mxu0  ;;  %v2239_v53 = vpop.f32.mrf.mxu1 }
 0x656   :  { %v2282_v58 = vadd.f32 %v2219_v42, %v2016_v36  ;;  %v2283_v33 = vadd.f32 %v2239_v53, %v2057_v1  ;;  %6380 = vst [vmem:[#allocation58_spill] sm:$0xff] %v5458_v48  ;;  %v5460_v36 = vperm.slane %v3545_v23, 3 }
 0x658   :  { %v3546_v39 = vmul.f32 -1.442695, %v2282_v58  ;;  %v3547_v54 = vmul.f32 -1.442695, %v2283_v33  ;;  %6381 = vst [vmem:[#allocation55_spill] sm:$0xff] %v5460_v36 }
 0x65a   :  { %3712 = vpow2.f32 %v3546_v39  ;;  %v2139_v39 = vadd.f32 %v2138_v5, %v5460_v36 }
 0x65b   :  { %3714 = vpow2.f32 %v3547_v54 }
 0x65c   :  { %v2259_v3 = vpop.f32.mrf.mxu2  ;;  %v2279_v58 = vpop.f32.mrf.mxu3 }
 0x65d   :  { %v2284_v35 = vadd.f32 %v2259_v3, %v2098_v56  ;;  %v2285_v53 = vadd.f32 %v2279_v58, %v2139_v39 }
 0x65f   :  { %v3548_v55 = vmul.f32 -1.442695, %v2284_v35 }
 0x660   :  { %v3713_v52 = vpop.eup %3712 }
 0x661   :  { %v3715_v21 = vpop.eup %3714  ;;  %v2295_v20 = vadd.f32 1.0, %v3713_v52  ;;  %3716 = vpow2.f32 %v3548_v55 }
 0x662   :  { %v2296_v63 = vadd.f32 1.0, %v3715_v21 }
 0x663   :  { %3718 = vrcp.f32 %v2295_v20  ;;  %v2309_v52 = vand.u32 2147483648, %v2295_v20  ;;  %v2307_v21 = vand.u32 2147483647, %v2295_v20  ;;  %vm2303_vm2 = vweird.f32 %v2295_v20 }
 0x664   :  { %3720 = vrcp.f32 %v2296_v63  ;;  %v2324_v55 = vand.u32 2147483648, %v2296_v63  ;;  %v2322_v25 = vand.u32 2147483647, %v2296_v63  ;;  %vm2318_vm3 = vweird.f32 %v2296_v63 }
 0x665   :  { %vm2308_vm6 = vcmp.eq.f32.partialorder %v2307_v21, 8.507059e+37  ;;  %v6388_v21 = vld [vmem:[#allocation63_spill] sm:$0xff] }
 0x666   :  { %vm2323_vm7 = vcmp.eq.f32.partialorder %v2322_v25, 8.507059e+37 }
 0x667   :  { %v3717_v33 = vpop.eup %3716 }
 0x668   :  { %v2297_v1 = vadd.f32 1.0, %v3717_v33  ;;  %v2310_v33 = vor.u32 1.1754944e-38, %v2309_v52 }
 0x669   :  { %v3719_v54 = vpop.eup %3718 }
 0x66a   :  { %v3721_v10 = vpop.eup %3720  ;;  %v2299_v42 = vmul.f32 %v3719_v54, %v2295_v20  ;;  %3722 = vrcp.f32 %v2297_v1  ;;  %vm2304_vm0 = vweird.f32 %v3719_v54  ;;  %v2339_v52 = vand.u32 2147483648, %v2297_v1 }
 0x66b   :  { %v2314_v56 = vmul.f32 %v3721_v10, %v2296_v63  ;;  %3724 = vtanh.f32 %v2285_v53  ;;  %vm2319_vm1 = vweird.f32 %v3721_v10  ;;  %vm2305_vm4 = vmor %vm2303_vm2, %vm2304_vm0  ;;  %vm2333_vm9 = vweird.f32 %v2297_v1 }
 0x66c   :  { %v2300_v3 = vsub.f32 1.0, %v2299_v42  ;;  %vm2320_vm5 = vmor %vm2318_vm3, %vm2319_vm1  ;;  %v2325_v42 = vor.u32 1.1754944e-38, %v2324_v55  ;;  %v2340_v55 = vor.u32 1.1754944e-38, %v2339_v52  ;;  %v6400_v52 = vld [vmem:[#allocation33_spill] sm:$0xff] }
 0x66d   :  { %v2315_v35 = vsub.f32 1.0, %v2314_v56  ;;  %v2197_v56 = vld [vmem:[#allocation9 + $0x8] sm:$0xff] }
 0x66e   :  { %v2301_v23 = vmul.f32 %v3719_v54, %v2300_v3 }
 0x66f   :  { %v2316_v48 = vmul.f32 %v3721_v10, %v2315_v35 }
 0x670   :  { %v3723_v45 = vpop.eup %3722  ;;  %v2302_v5 = vadd.f32 %v3719_v54, %v2301_v23 }
 0x671   :  { %v2329_v58 = vmul.f32 %v3723_v45, %v2297_v1  ;;  %v2317_v39 = vadd.f32 %v3721_v10, %v2316_v48  ;;  %v3725_v53 = vpop.eup %3724  ;;  %vm2334_vm8 = vweird.f32 %v3723_v45  ;;  %v2337_v48 = vand.u32 2147483647, %v2297_v1  ;;  %v6387_v1 = vld [vmem:[#allocation27_spill] sm:$0xff] }
 0x672   :  { %v2306_v36 = vsel %vm2305_vm4, %v3719_v54, %v2302_v5  ;;  %vm2335_vm10 = vmor %vm2333_vm9, %vm2334_vm8  ;;  %v6389_v5 = vld [vmem:[#allocation64_spill] sm:$0xff] }
 0x673   :  { %v2330_v3 = vsub.f32 1.0, %v2329_v58  ;;  %v2311_v14 = vsel %vm2308_vm6, %v2310_v33, %v2306_v36  ;;  %v2321_v12 = vsel %vm2320_vm5, %v3721_v10, %v2317_v39  ;;  %vm2338_vm11 = vcmp.eq.f32.partialorder %v2337_v48, 8.507059e+37  ;;  %v6390_v58 = vld [vmem:[#allocation65_spill] sm:$0xff]  ;;  %v6401_v48 = vld [vmem:[#allocation34_spill] sm:$0xff] }
 0x674   :  { %v2326_v35 = vsel %vm2323_vm7, %v2325_v42, %v2321_v12  ;;  %v2345_v47 = vmul.f32 %v3725_v53, %v2311_v14  ;;  %v6382_v12 = vld [vmem:[#allocation61_spill] sm:$0xff]  ;;  %v6383_v14 = vld [vmem:[#allocation68_spill] sm:$0xff]  ;;  %v6393_v42 = vld [vmem:[#allocation26_spill] sm:$0xff] }
 0x675   :  { %v2331_v59 = vmul.f32 %v3723_v45, %v2330_v3  ;;  %v2344_v23 = vmul.f32 %v2326_v35, %v2197_v56  ;;  %v6391_v33 = vld [vmem:[#allocation29_spill] sm:$0xff]  ;;  %v6394_v56 = vld [vmem:[#allocation28_spill] sm:$0xff]  ;;  %v6396_v3 = vld [vmem:[#allocation30_spill] sm:$0xff] }
 0x676   :  { %v6392_v39 = vld [vmem:[#allocation25_spill] sm:$0xff]  ;;  %v6395_v53 = vld [vmem:[#allocation32_spill] sm:$0xff]  ;;  %v6397_v35 = vld [vmem:[#allocation31_spill] sm:$0xff] }
 0x677   :  { %v5463_v20 = vadd.f32 %v2345_v47, %v2344_v23  ;;  %v2332_v63 = vadd.f32 %v3723_v45, %v2331_v59  ;;  %v6384_v59 = vld [vmem:[#allocation59_spill] sm:$0xff]  ;;  %v6385_v47 = vld [vmem:[#allocation60_spill] sm:$0xff] }
 0x678   :  { %v6398_v23 = vld [vmem:[#allocation35_spill] sm:$0xff] }
 0x679   :  { %3726 = vtanh.f32 %v5463_v20  ;;  %v2336_v54 = vsel %vm2335_vm10, %v3723_v45, %v2332_v63  ;;  %v6386_v45 = vld [vmem:[#allocation62_spill] sm:$0xff]  ;;  %v6399_v63 = vld [vmem:[#allocation36_spill] sm:$0xff] }
 0x67a   :  { %v2341_v10 = vsel %vm2338_vm11, %v2340_v55, %v2336_v54  ;;  %v6402_v54 = vld [vmem:[#allocation39_spill] sm:$0xff]  ;;  %v6403_v55 = vld [vmem:[#allocation40_spill] sm:$0xff] }
 0x67f   :  { %v3727_v36 = vpop.eup %3726 }
 0x680   :  { %v2348_v25 = vmul.f32 %v3727_v36, %v2341_v10  ;;  %v6404_v36 = vld [vmem:[#allocation37_spill] sm:$0xff]  ;;  %v6405_v10 = vld [vmem:[#allocation38_spill] sm:$0xff] }
 0x682   :  { %2370 = vmatmul.f32.vlgmr.msrb.gmra.mxu0 %v2348_v25  ;;  %2390 = vmatmul.f32.vlgmr.msrb.gmra.mxu1 %v2348_v25 }
 0x683   :  { %2410 = vmatmul.f32.vlgmr.msrb.gmra.mxu2 %v2348_v25  ;;  %2430 = vmatmul.f32.vlgmr.msrb.gmra.mxu3 %v2348_v25  ;;  %v6406_v25 = vld [vmem:[#allocation41_spill] sm:$0xff] }
 0x684   :  { %2658 = vmatpush.msrb.mxu0 %v5021_v0  ;;  %2678 = vmatpush.msrb.mxu1 %v6345_v40 }
 0x685   :  { %2698 = vmatpush.msrb.mxu2 %v6346_v11  ;;  %2718 = vmatpush.msrb.mxu3 %v6347_v32 }
 0x686   :  { %2659 = vmatpush.msrb.mxu0 %v6348_v27  ;;  %2679 = vmatpush.msrb.mxu1 %v6349_v22 }
 0x687   :  { %2699 = vmatpush.msrb.mxu2 %v5031_v15  ;;  %2719 = vmatpush.msrb.mxu3 %v5060_v24 }
 0x688   :  { %2660 = vmatpush.msrb.mxu0 %v5038_v16  ;;  %2680 = vmatpush.msrb.mxu1 %v5040_v8 }
 0x689   :  { %2700 = vmatpush.msrb.mxu2 %v5062_v9  ;;  %2720 = vmatpush.msrb.mxu3 %v5065_v30 }
 0x68a   :  { %2661 = vmatpush.msrb.mxu0 %v5067_v19  ;;  %2681 = vmatpush.msrb.mxu1 %v5069_v26 }
 0x68b   :  { %2701 = vmatpush.msrb.mxu2 %v5072_v38  ;;  %2721 = vmatpush.msrb.mxu3 %v5079_v31 }
 0x68c   :  { %2662 = vmatpush.msrb.mxu0 %v5074_v49  ;;  %2682 = vmatpush.msrb.mxu1 %v5076_v18 }
 0x68d   :  { %2702 = vmatpush.msrb.mxu2 %v5084_v34  ;;  %2722 = vmatpush.msrb.mxu3 %v5087_v28 }
 0x68e   :  { %2663 = vmatpush.msrb.mxu0 %v5095_v4  ;;  %2683 = vmatpush.msrb.mxu1 %v5097_v57 }
 0x68f   :  { %2703 = vmatpush.msrb.mxu2 %v5100_v44  ;;  %2723 = vmatpush.msrb.mxu3 %v5103_v13 }
 0x690   :  { %2664 = vmatpush.msrb.mxu0 %v5107_v37  ;;  %2684 = vmatpush.msrb.mxu1 %v5109_v41 }
 0x691   :  { %2704 = vmatpush.msrb.mxu2 %v5112_v43  ;;  %2724 = vmatpush.msrb.mxu3 %v5115_v46 }
 0x692   :  { %2665 = vmatpush.msrb.mxu0 %v5119_v50  ;;  %2685 = vmatpush.msrb.mxu1 %v5121_v51 }
 0x693   :  { %2705 = vmatpush.msrb.mxu2 %v5124_v2  ;;  %2725 = vmatpush.msrb.mxu3 %v5127_v60 }
 0x694   :  { %2666 = vmatpush.msrb.mxu0 %v5131_v61  ;;  %2686 = vmatpush.msrb.mxu1 %v5133_v62 }
 0x695   :  { %2706 = vmatpush.msrb.mxu2 %v5142_v7  ;;  %2726 = vmatpush.msrb.mxu3 %v5156_v17 }
 0x696   :  { %2667 = vmatpush.msrb.mxu0 %v5135_v6  ;;  %2687 = vmatpush.msrb.mxu1 %v5140_v29 }
 0x697   :  { %2707 = vmatpush.msrb.mxu2 %v6382_v12  ;;  %2727 = vmatpush.msrb.mxu3 %v6383_v14 }
 0x698   :  { %2668 = vmatpush.msrb.mxu0 %v6384_v59  ;;  %2688 = vmatpush.msrb.mxu1 %v6385_v47 }
 0x699   :  { %2708 = vmatpush.msrb.mxu2 %v6386_v45  ;;  %2728 = vmatpush.msrb.mxu3 %v6387_v1 }
 0x69a   :  { %2669 = vmatpush.msrb.mxu0 %v6388_v21  ;;  %2689 = vmatpush.msrb.mxu1 %v6389_v5 }
 0x69b   :  { %2709 = vmatpush.msrb.mxu2 %v6390_v58  ;;  %2729 = vmatpush.msrb.mxu3 %v6391_v33  ;;  %v6413_v58 = vld [vmem:[#allocation45_spill] sm:$0xff] }
 0x69c   :  { %2670 = vmatpush.msrb.mxu0 %v6392_v39  ;;  %2690 = vmatpush.msrb.mxu1 %v6393_v42 }
 0x69d   :  { %2710 = vmatpush.msrb.mxu2 %v6394_v56  ;;  %2730 = vmatpush.msrb.mxu3 %v6395_v53  ;;  %v6411_v56 = vld [vmem:[#allocation44_spill] sm:$0xff] }
 0x69e   :  { %2671 = vmatpush.msrb.mxu0 %v6396_v3  ;;  %2691 = vmatpush.msrb.mxu1 %v6397_v35  ;;  %v6407_v3 = vld [vmem:[#allocation42_spill] sm:$0xff]  ;;  %v6408_v35 = vld [vmem:[#allocation75_spill] sm:$0xff] }
 0x69f   :  { %2711 = vmatpush.msrb.mxu2 %v6398_v23  ;;  %2731 = vmatpush.msrb.mxu3 %v6399_v63  ;;  %v6409_v23 = vld [vmem:[#allocation43_spill] sm:$0xff] }
 0x6a0   :  { %2672 = vmatpush.msrb.mxu0 %v6400_v52  ;;  %2692 = vmatpush.msrb.mxu1 %v6401_v48  ;;  %v2019_v53 = vadd.f32 %v6409_v23, %v6408_v35  ;;  %v6410_v63 = vld [vmem:[#allocation79_spill] sm:$0xff] }
 0x6a1   :  { %2712 = vmatpush.msrb.mxu2 %v6402_v54  ;;  %2732 = vmatpush.msrb.mxu3 %v6403_v55  ;;  %v2060_v52 = vadd.f32 %v6411_v56, %v6410_v63 }
 0x6a2   :  { %2673 = vmatpush.msrb.mxu0 %v6404_v36  ;;  %2693 = vmatpush.msrb.mxu1 %v6405_v10  ;;  %v6412_v36 = vld [vmem:[#allocation57_spill] sm:$0xff] }
 0x6a3   :  { %2713 = vmatpush.msrb.mxu2 %v6406_v25  ;;  %2733 = vmatpush.msrb.mxu3 %v6407_v3  ;;  %v2101_v10 = vadd.f32 %v6413_v58, %v6412_v36 }
 0x6ff   :  { %v2371_v42 = vpop.f32.mrf.mxu0  ;;  %v2391_v48 = vpop.f32.mrf.mxu1 }
 0x700   :  { %v2434_v39 = vadd.f32 %v2371_v42, %v2019_v53  ;;  %v2435_v54 = vadd.f32 %v2391_v48, %v2060_v52  ;;  %v6414_v53 = vld [vmem:[#allocation55_spill] sm:$0xff] }
 0x702   :  { %v3549_v33 = vmul.f32 -1.442695, %v2434_v39  ;;  %v3550_v55 = vmul.f32 -1.442695, %v2435_v54  ;;  %v6415_v39 = vld [vmem:[#allocation48_spill] sm:$0xff] }
 0x703   :  { %v2142_v52 = vadd.f32 %v6415_v39, %v6414_v53 }
 0x704   :  { %3728 = vpow2.f32 %v3549_v33 }
 0x705   :  { %3730 = vpow2.f32 %v3550_v55 }
 0x706   :  { %v2411_v25 = vpop.f32.mrf.mxu2  ;;  %v2431_v56 = vpop.f32.mrf.mxu3 }
 0x707   :  { %v2436_v5 = vadd.f32 %v2411_v25, %v2101_v10  ;;  %v2437_v54 = vadd.f32 %v2431_v56, %v2142_v52 }
 0x709   :  { %v3551_v3 = vmul.f32 -1.442695, %v2436_v5 }
 0x70a   :  { %v3729_v21 = vpop.eup %3728 }
 0x70b   :  { %v3731_v1 = vpop.eup %3730  ;;  %v2447_v23 = vadd.f32 1.0, %v3729_v21  ;;  %3732 = vpow2.f32 %v3551_v3 }
 0x70c   :  { %v2448_v35 = vadd.f32 1.0, %v3731_v1 }
 0x70d   :  { %3734 = vrcp.f32 %v2447_v23  ;;  %v2461_v36 = vand.u32 2147483648, %v2447_v23  ;;  %v2459_v3 = vand.u32 2147483647, %v2447_v23  ;;  %vm2455_vm14 = vweird.f32 %v2447_v23 }
 0x70e   :  { %3736 = vrcp.f32 %v2448_v35  ;;  %v2476_v21 = vand.u32 2147483648, %v2448_v35  ;;  %v2474_v45 = vand.u32 2147483647, %v2448_v35  ;;  %vm2470_vm15 = vweird.f32 %v2448_v35 }
 0x70f   :  { %vm2460_vm2 = vcmp.eq.f32.partialorder %v2459_v3, 8.507059e+37  ;;  %v6422_v3 = vld [vmem:[#allocation63_spill] sm:$0xff] }
 0x710   :  { %vm2475_vm3 = vcmp.eq.f32.partialorder %v2474_v45, 8.507059e+37 }
 0x711   :  { %v3733_v42 = vpop.eup %3732 }
 0x712   :  { %v2449_v33 = vadd.f32 1.0, %v3733_v42  ;;  %v2462_v42 = vor.u32 1.1754944e-38, %v2461_v36 }
 0x713   :  { %v3735_v48 = vpop.eup %3734 }
 0x714   :  { %v3737_v58 = vpop.eup %3736  ;;  %v2451_v55 = vmul.f32 %v3735_v48, %v2447_v23  ;;  %3738 = vrcp.f32 %v2449_v33  ;;  %vm2456_vm12 = vweird.f32 %v3735_v48  ;;  %v2491_v36 = vand.u32 2147483648, %v2449_v33 }
 0x715   :  { %v2466_v10 = vmul.f32 %v3737_v58, %v2448_v35  ;;  %3740 = vtanh.f32 %v2437_v54  ;;  %vm2471_vm13 = vweird.f32 %v3737_v58  ;;  %vm2457_vm0 = vmor %vm2455_vm14, %vm2456_vm12  ;;  %vm2485_vm5 = vweird.f32 %v2449_v33 }
 0x716   :  { %v2452_v5 = vsub.f32 1.0, %v2451_v55  ;;  %vm2472_vm1 = vmor %vm2470_vm15, %vm2471_vm13  ;;  %v2477_v55 = vor.u32 1.1754944e-38, %v2476_v21  ;;  %v2492_v21 = vor.u32 1.1754944e-38, %v2491_v36  ;;  %v6434_v36 = vld [vmem:[#allocation33_spill] sm:$0xff] }
 0x717   :  { %v2467_v25 = vsub.f32 1.0, %v2466_v10 }
 0x718   :  { %v2453_v1 = vmul.f32 %v3735_v48, %v2452_v5 }
 0x719   :  { %v2468_v63 = vmul.f32 %v3737_v58, %v2467_v25 }
 0x71a   :  { %v3739_v47 = vpop.eup %3738  ;;  %v2454_v39 = vadd.f32 %v3735_v48, %v2453_v1 }
 0x71b   :  { %v2481_v56 = vmul.f32 %v3739_v47, %v2449_v33  ;;  %v2469_v52 = vadd.f32 %v3737_v58, %v2468_v63  ;;  %v3741_v54 = vpop.eup %3740  ;;  %vm2486_vm4 = vweird.f32 %v3739_v47  ;;  %v2489_v63 = vand.u32 2147483647, %v2449_v33  ;;  %v6421_v33 = vld [vmem:[#allocation27_spill] sm:$0xff] }
 0x71c   :  { %v2458_v10 = vsel %vm2457_vm0, %v3735_v48, %v2454_v39  ;;  %vm2487_vm6 = vmor %vm2485_vm5, %vm2486_vm4  ;;  %v6423_v39 = vld [vmem:[#allocation64_spill] sm:$0xff] }
 0x71d   :  { %v2482_v53 = vsub.f32 1.0, %v2481_v56  ;;  %v2463_v5 = vsel %vm2460_vm2, %v2462_v42, %v2458_v10  ;;  %v2473_v59 = vsel %vm2472_vm1, %v3737_v58, %v2469_v52  ;;  %vm2490_vm7 = vcmp.eq.f32.partialorder %v2489_v63, 8.507059e+37  ;;  %v6424_v56 = vld [vmem:[#allocation65_spill] sm:$0xff]  ;;  %v6428_v10 = vld [vmem:[#allocation28_spill] sm:$0xff]  ;;  %v6435_v63 = vld [vmem:[#allocation34_spill] sm:$0xff] }
 0x71e   :  { %v2478_v25 = vsel %vm2475_vm3, %v2477_v55, %v2473_v59  ;;  %v2497_v14 = vmul.f32 %v3741_v54, %v2463_v5  ;;  %v6425_v42 = vld [vmem:[#allocation29_spill] sm:$0xff]  ;;  %v6427_v55 = vld [vmem:[#allocation26_spill] sm:$0xff]  ;;  %v6429_v54 = vld [vmem:[#allocation32_spill] sm:$0xff] }
 0x71f   :  { %v2483_v12 = vmul.f32 %v3739_v47, %v2482_v53  ;;  %v2496_v1 = vmul.f32 %v2478_v25, %v5463_v20  ;;  %v6416_v20 = vld [vmem:[#allocation61_spill] sm:$0xff]  ;;  %v6420_v53 = vld [vmem:[#allocation62_spill] sm:$0xff]  ;;  %v6431_v25 = vld [vmem:[#allocation31_spill] sm:$0xff] }
 0x720   :  { %v6426_v52 = vld [vmem:[#allocation25_spill] sm:$0xff]  ;;  %v6430_v5 = vld [vmem:[#allocation30_spill] sm:$0xff] }
 0x721   :  { %v5539_v23 = vadd.f32 %v2497_v14, %v2496_v1  ;;  %v2484_v35 = vadd.f32 %v3739_v47, %v2483_v12  ;;  %v6417_v12 = vld [vmem:[#allocation68_spill] sm:$0xff]  ;;  %v6418_v14 = vld [vmem:[#allocation59_spill] sm:$0xff] }
 0x722   :  { %v6432_v1 = vld [vmem:[#allocation35_spill] sm:$0xff] }
 0x723   :  { %3742 = vtanh.f32 %v5539_v23  ;;  %v2488_v48 = vsel %vm2487_vm6, %v3739_v47, %v2484_v35  ;;  %v6419_v47 = vld [vmem:[#allocation60_spill] sm:$0xff] }
 0x724   :  { %v2493_v45 = vsel %vm2490_vm7, %v2492_v21, %v2488_v48  ;;  %v6433_v35 = vld [vmem:[#allocation36_spill] sm:$0xff]  ;;  %v6436_v48 = vld [vmem:[#allocation39_spill] sm:$0xff] }
 0x725   :  { %v6437_v21 = vld [vmem:[#allocation40_spill] sm:$0xff] }
 0x729   :  { %v3743_v58 = vpop.eup %3742 }
 0x72a   :  { %v2500_v59 = vmul.f32 %v3743_v58, %v2493_v45  ;;  %v6438_v58 = vld [vmem:[#allocation37_spill] sm:$0xff]  ;;  %v6439_v45 = vld [vmem:[#allocation38_spill] sm:$0xff] }
 0x72c   :  { %2522 = vmatmul.f32.vlgmr.msra.gmra.mxu0 %v2500_v59  ;;  %2542 = vmatmul.f32.vlgmr.msra.gmra.mxu1 %v2500_v59 }
 0x72d   :  { %2562 = vmatmul.f32.vlgmr.msra.gmra.mxu2 %v2500_v59  ;;  %2582 = vmatmul.f32.vlgmr.msra.gmra.mxu3 %v2500_v59  ;;  %v6440_v59 = vld [vmem:[#allocation41_spill] sm:$0xff] }
 0x72e   :  { %2810 = vmatpush.msra.mxu0 %v5021_v0  ;;  %2830 = vmatpush.msra.mxu1 %v6345_v40 }
 0x72f   :  { %2850 = vmatpush.msra.mxu2 %v6346_v11  ;;  %2870 = vmatpush.msra.mxu3 %v6347_v32 }
 0x730   :  { %2811 = vmatpush.msra.mxu0 %v6348_v27  ;;  %2831 = vmatpush.msra.mxu1 %v6349_v22 }
 0x731   :  { %2851 = vmatpush.msra.mxu2 %v5031_v15  ;;  %2871 = vmatpush.msra.mxu3 %v5060_v24 }
 0x732   :  { %2812 = vmatpush.msra.mxu0 %v5038_v16  ;;  %2832 = vmatpush.msra.mxu1 %v5040_v8 }
 0x733   :  { %2852 = vmatpush.msra.mxu2 %v5062_v9  ;;  %2872 = vmatpush.msra.mxu3 %v5065_v30 }
 0x734   :  { %2813 = vmatpush.msra.mxu0 %v5067_v19  ;;  %2833 = vmatpush.msra.mxu1 %v5069_v26 }
 0x735   :  { %2853 = vmatpush.msra.mxu2 %v5072_v38  ;;  %2873 = vmatpush.msra.mxu3 %v5079_v31 }
 0x736   :  { %2814 = vmatpush.msra.mxu0 %v5074_v49  ;;  %2834 = vmatpush.msra.mxu1 %v5076_v18 }
 0x737   :  { %2854 = vmatpush.msra.mxu2 %v5084_v34  ;;  %2874 = vmatpush.msra.mxu3 %v5087_v28 }
 0x738   :  { %2815 = vmatpush.msra.mxu0 %v5095_v4  ;;  %2835 = vmatpush.msra.mxu1 %v5097_v57 }
 0x739   :  { %2855 = vmatpush.msra.mxu2 %v5100_v44  ;;  %2875 = vmatpush.msra.mxu3 %v5103_v13 }
 0x73a   :  { %2816 = vmatpush.msra.mxu0 %v5107_v37  ;;  %2836 = vmatpush.msra.mxu1 %v5109_v41 }
 0x73b   :  { %2856 = vmatpush.msra.mxu2 %v5112_v43  ;;  %2876 = vmatpush.msra.mxu3 %v5115_v46 }
 0x73c   :  { %2817 = vmatpush.msra.mxu0 %v5119_v50  ;;  %2837 = vmatpush.msra.mxu1 %v5121_v51 }
 0x73d   :  { %2857 = vmatpush.msra.mxu2 %v5124_v2  ;;  %2877 = vmatpush.msra.mxu3 %v5127_v60 }
 0x73e   :  { %2818 = vmatpush.msra.mxu0 %v5131_v61  ;;  %2838 = vmatpush.msra.mxu1 %v5133_v62 }
 0x73f   :  { %2858 = vmatpush.msra.mxu2 %v5142_v7  ;;  %2878 = vmatpush.msra.mxu3 %v5156_v17 }
 0x740   :  { %2819 = vmatpush.msra.mxu0 %v5135_v6  ;;  %2839 = vmatpush.msra.mxu1 %v5140_v29 }
 0x741   :  { %2859 = vmatpush.msra.mxu2 %v6416_v20  ;;  %2879 = vmatpush.msra.mxu3 %v6417_v12 }
 0x742   :  { %2820 = vmatpush.msra.mxu0 %v6418_v14  ;;  %2840 = vmatpush.msra.mxu1 %v6419_v47 }
 0x743   :  { %2860 = vmatpush.msra.mxu2 %v6420_v53  ;;  %2880 = vmatpush.msra.mxu3 %v6421_v33 }
 0x744   :  { %2821 = vmatpush.msra.mxu0 %v6422_v3  ;;  %2841 = vmatpush.msra.mxu1 %v6423_v39 }
 0x745   :  { %2861 = vmatpush.msra.mxu2 %v6424_v56  ;;  %2881 = vmatpush.msra.mxu3 %v6425_v42  ;;  %v6447_v56 = vld [vmem:[#allocation49_spill] sm:$0xff] }
 0x746   :  { %2822 = vmatpush.msra.mxu0 %v6426_v52  ;;  %2842 = vmatpush.msra.mxu1 %v6427_v55 }
 0x747   :  { %2862 = vmatpush.msra.mxu2 %v6428_v10  ;;  %2882 = vmatpush.msra.mxu3 %v6429_v54  ;;  %v6445_v10 = vld [vmem:[#allocation47_spill] sm:$0xff] }
 0x748   :  { %2823 = vmatpush.msra.mxu0 %v6430_v5  ;;  %2843 = vmatpush.msra.mxu1 %v6431_v25  ;;  %v6441_v5 = vld [vmem:[#allocation42_spill] sm:$0xff]  ;;  %v6442_v25 = vld [vmem:[#allocation75_spill] sm:$0xff] }
 0x749   :  { %2863 = vmatpush.msra.mxu2 %v6432_v1  ;;  %2883 = vmatpush.msra.mxu3 %v6433_v35  ;;  %v6443_v1 = vld [vmem:[#allocation46_spill] sm:$0xff]  ;;  %v6444_v35 = vld [vmem:[#allocation79_spill] sm:$0xff] }
 0x74a   :  { %2824 = vmatpush.msra.mxu0 %v6434_v36  ;;  %2844 = vmatpush.msra.mxu1 %v6435_v63  ;;  %v2022_v54 = vadd.f32 %v6443_v1, %v6442_v25  ;;  %v2063_v36 = vadd.f32 %v6445_v10, %v6444_v35 }
 0x74b   :  { %2864 = vmatpush.msra.mxu2 %v6436_v48  ;;  %2884 = vmatpush.msra.mxu3 %v6437_v21 }
 0x74c   :  { %2825 = vmatpush.msra.mxu0 %v6438_v58  ;;  %2845 = vmatpush.msra.mxu1 %v6439_v45  ;;  %v6446_v58 = vld [vmem:[#allocation57_spill] sm:$0xff] }
 0x74d   :  { %2865 = vmatpush.msra.mxu2 %v6440_v59  ;;  %2885 = vmatpush.msra.mxu3 %v6441_v5  ;;  %v2104_v45 = vadd.f32 %v6447_v56, %v6446_v58 }
 0x7a9   :  { %v2523_v55 = vpop.f32.mrf.mxu0  ;;  %v2543_v63 = vpop.f32.mrf.mxu1 }
 0x7aa   :  { %v2586_v52 = vadd.f32 %v2523_v55, %v2022_v54  ;;  %v2587_v48 = vadd.f32 %v2543_v63, %v2063_v36  ;;  %v6448_v54 = vld [vmem:[#allocation55_spill] sm:$0xff] }
 0x7ac   :  { %v3552_v42 = vmul.f32 -1.442695, %v2586_v52  ;;  %v3553_v21 = vmul.f32 -1.442695, %v2587_v48  ;;  %v6449_v52 = vld [vmem:[#allocation66_spill] sm:$0xff] }
 0x7ad   :  { %v2145_v36 = vadd.f32 %v6449_v52, %v6448_v54 }
 0x7ae   :  { %3744 = vpow2.f32 %v3552_v42 }
 0x7af   :  { %3746 = vpow2.f32 %v3553_v21 }
 0x7b0   :  { %v2563_v59 = vpop.f32.mrf.mxu2  ;;  %v2583_v10 = vpop.f32.mrf.mxu3 }
 0x7b1   :  { %v2588_v39 = vadd.f32 %v2563_v59, %v2104_v45  ;;  %v2589_v48 = vadd.f32 %v2583_v10, %v2145_v36 }
 0x7b3   :  { %v3554_v5 = vmul.f32 -1.442695, %v2588_v39 }
 0x7b4   :  { %v3745_v3 = vpop.eup %3744 }
 0x7b5   :  { %v3747_v33 = vpop.eup %3746  ;;  %v2599_v1 = vadd.f32 1.0, %v3745_v3  ;;  %3748 = vpow2.f32 %v3554_v5 }
 0x7b6   :  { %v2600_v25 = vadd.f32 1.0, %v3747_v33 }
 0x7b7   :  { %3750 = vrcp.f32 %v2599_v1  ;;  %v2613_v58 = vand.u32 2147483648, %v2599_v1  ;;  %v2611_v5 = vand.u32 2147483647, %v2599_v1  ;;  %vm2607_vm10 = vweird.f32 %v2599_v1 }
 0x7b8   :  { %3752 = vrcp.f32 %v2600_v25  ;;  %v2628_v3 = vand.u32 2147483648, %v2600_v25  ;;  %v2626_v53 = vand.u32 2147483647, %v2600_v25  ;;  %vm2622_vm11 = vweird.f32 %v2600_v25 }
 0x7b9   :  { %vm2612_vm14 = vcmp.eq.f32.partialorder %v2611_v5, 8.507059e+37  ;;  %v6456_v5 = vld [vmem:[#allocation63_spill] sm:$0xff] }
 0x7ba   :  { %vm2627_vm15 = vcmp.eq.f32.partialorder %v2626_v53, 8.507059e+37 }
 0x7bb   :  { %v3749_v55 = vpop.eup %3748 }
 0x7bc   :  { %v2601_v42 = vadd.f32 1.0, %v3749_v55  ;;  %v2614_v55 = vor.u32 1.1754944e-38, %v2613_v58 }
 0x7bd   :  { %v3751_v63 = vpop.eup %3750 }
 0x7be   :  { %v3753_v56 = vpop.eup %3752  ;;  %v2603_v21 = vmul.f32 %v3751_v63, %v2599_v1  ;;  %3754 = vrcp.f32 %v2601_v42  ;;  %vm2608_vm8 = vweird.f32 %v3751_v63  ;;  %v2643_v58 = vand.u32 2147483648, %v2601_v42 }
 0x7bf   :  { %v2618_v45 = vmul.f32 %v3753_v56, %v2600_v25  ;;  %3756 = vtanh.f32 %v2589_v48  ;;  %vm2623_vm9 = vweird.f32 %v3753_v56  ;;  %vm2609_vm12 = vmor %vm2607_vm10, %vm2608_vm8  ;;  %vm2637_vm1 = vweird.f32 %v2601_v42 }
 0x7c0   :  { %v2604_v39 = vsub.f32 1.0, %v2603_v21  ;;  %vm2624_vm13 = vmor %vm2622_vm11, %vm2623_vm9  ;;  %v2629_v21 = vor.u32 1.1754944e-38, %v2628_v3  ;;  %v2644_v3 = vor.u32 1.1754944e-38, %v2643_v58  ;;  %v6468_v58 = vld [vmem:[#allocation33_spill] sm:$0xff] }
 0x7c1   :  { %v2619_v59 = vsub.f32 1.0, %v2618_v45 }
 0x7c2   :  { %v2605_v33 = vmul.f32 %v3751_v63, %v2604_v39 }
 0x7c3   :  { %v2620_v35 = vmul.f32 %v3753_v56, %v2619_v59 }
 0x7c4   :  { %v3755_v47 = vpop.eup %3754  ;;  %v2606_v52 = vadd.f32 %v3751_v63, %v2605_v33 }
 0x7c5   :  { %v2633_v10 = vmul.f32 %v3755_v47, %v2601_v42  ;;  %v2621_v36 = vadd.f32 %v3753_v56, %v2620_v35  ;;  %v3757_v48 = vpop.eup %3756  ;;  %vm2638_vm0 = vweird.f32 %v3755_v47  ;;  %v2641_v35 = vand.u32 2147483647, %v2601_v42  ;;  %v6455_v42 = vld [vmem:[#allocation27_spill] sm:$0xff] }
 0x7c6   :  { %v2610_v45 = vsel %vm2609_vm12, %v3751_v63, %v2606_v52  ;;  %vm2639_vm2 = vmor %vm2637_vm1, %vm2638_vm0  ;;  %v6457_v52 = vld [vmem:[#allocation64_spill] sm:$0xff] }
 0x7c7   :  { %v2634_v54 = vsub.f32 1.0, %v2633_v10  ;;  %v2615_v39 = vsel %vm2612_vm14, %v2614_v55, %v2610_v45  ;;  %v2625_v14 = vsel %vm2624_vm13, %v3753_v56, %v2621_v36  ;;  %vm2642_vm3 = vcmp.eq.f32.partialorder %v2641_v35, 8.507059e+37  ;;  %v6458_v10 = vld [vmem:[#allocation65_spill] sm:$0xff]  ;;  %v6462_v45 = vld [vmem:[#allocation28_spill] sm:$0xff]  ;;  %v6469_v35 = vld [vmem:[#allocation34_spill] sm:$0xff] }
 0x7c8   :  { %v2630_v59 = vsel %vm2627_vm15, %v2629_v21, %v2625_v14  ;;  %v2649_v12 = vmul.f32 %v3757_v48, %v2615_v39  ;;  %v6459_v55 = vld [vmem:[#allocation29_spill] sm:$0xff]  ;;  %v6461_v21 = vld [vmem:[#allocation26_spill] sm:$0xff]  ;;  %v6463_v48 = vld [vmem:[#allocation32_spill] sm:$0xff] }
 0x7c9   :  { %v2635_v20 = vmul.f32 %v3755_v47, %v2634_v54  ;;  %v2648_v33 = vmul.f32 %v2630_v59, %v5539_v23  ;;  %v6450_v23 = vld [vmem:[#allocation61_spill] sm:$0xff]  ;;  %v6454_v54 = vld [vmem:[#allocation62_spill] sm:$0xff]  ;;  %v6465_v59 = vld [vmem:[#allocation31_spill] sm:$0xff] }
 0x7ca   :  { %v6460_v36 = vld [vmem:[#allocation25_spill] sm:$0xff]  ;;  %v6464_v39 = vld [vmem:[#allocation30_spill] sm:$0xff] }
 0x7cb   :  { %v5615_v1 = vadd.f32 %v2649_v12, %v2648_v33  ;;  %v2636_v25 = vadd.f32 %v3755_v47, %v2635_v20  ;;  %v6451_v20 = vld [vmem:[#allocation68_spill] sm:$0xff]  ;;  %v6452_v12 = vld [vmem:[#allocation59_spill] sm:$0xff] }
 0x7cc   :  { %v6466_v33 = vld [vmem:[#allocation35_spill] sm:$0xff] }
 0x7cd   :  { %3758 = vtanh.f32 %v5615_v1  ;;  %v2640_v63 = vsel %vm2639_vm2, %v3755_v47, %v2636_v25  ;;  %v6453_v47 = vld [vmem:[#allocation60_spill] sm:$0xff] }
 0x7ce   :  { %v2645_v53 = vsel %vm2642_vm3, %v2644_v3, %v2640_v63  ;;  %v6467_v25 = vld [vmem:[#allocation36_spill] sm:$0xff]  ;;  %v6470_v63 = vld [vmem:[#allocation39_spill] sm:$0xff] }
 0x7cf   :  { %v6471_v3 = vld [vmem:[#allocation40_spill] sm:$0xff] }
 0x7d3   :  { %v3759_v56 = vpop.eup %3758 }
 0x7d4   :  { %v2652_v14 = vmul.f32 %v3759_v56, %v2645_v53  ;;  %v6472_v56 = vld [vmem:[#allocation37_spill] sm:$0xff]  ;;  %v6473_v53 = vld [vmem:[#allocation38_spill] sm:$0xff] }
 0x7d6   :  { %2674 = vmatmul.f32.vlgmr.msrb.gmra.mxu0 %v2652_v14  ;;  %2694 = vmatmul.f32.vlgmr.msrb.gmra.mxu1 %v2652_v14 }
 0x7d7   :  { %2714 = vmatmul.f32.vlgmr.msrb.gmra.mxu2 %v2652_v14  ;;  %2734 = vmatmul.f32.vlgmr.msrb.gmra.mxu3 %v2652_v14  ;;  %v6474_v14 = vld [vmem:[#allocation41_spill] sm:$0xff] }
 0x7d8   :  { %2962 = vmatpush.msrb.mxu0 %v5021_v0  ;;  %2982 = vmatpush.msrb.mxu1 %v6345_v40 }
 0x7d9   :  { %3002 = vmatpush.msrb.mxu2 %v6346_v11  ;;  %3022 = vmatpush.msrb.mxu3 %v6347_v32 }
 0x7da   :  { %2963 = vmatpush.msrb.mxu0 %v6348_v27  ;;  %2983 = vmatpush.msrb.mxu1 %v6349_v22 }
 0x7db   :  { %3003 = vmatpush.msrb.mxu2 %v5031_v15  ;;  %3023 = vmatpush.msrb.mxu3 %v5060_v24 }
 0x7dc   :  { %2964 = vmatpush.msrb.mxu0 %v5038_v16  ;;  %2984 = vmatpush.msrb.mxu1 %v5040_v8 }
 0x7dd   :  { %3004 = vmatpush.msrb.mxu2 %v5062_v9  ;;  %3024 = vmatpush.msrb.mxu3 %v5065_v30 }
 0x7de   :  { %2965 = vmatpush.msrb.mxu0 %v5067_v19  ;;  %2985 = vmatpush.msrb.mxu1 %v5069_v26 }
 0x7df   :  { %3005 = vmatpush.msrb.mxu2 %v5072_v38  ;;  %3025 = vmatpush.msrb.mxu3 %v5079_v31 }
 0x7e0   :  { %2966 = vmatpush.msrb.mxu0 %v5074_v49  ;;  %2986 = vmatpush.msrb.mxu1 %v5076_v18 }
 0x7e1   :  { %3006 = vmatpush.msrb.mxu2 %v5084_v34  ;;  %3026 = vmatpush.msrb.mxu3 %v5087_v28 }
 0x7e2   :  { %2967 = vmatpush.msrb.mxu0 %v5095_v4  ;;  %2987 = vmatpush.msrb.mxu1 %v5097_v57 }
 0x7e3   :  { %3007 = vmatpush.msrb.mxu2 %v5100_v44  ;;  %3027 = vmatpush.msrb.mxu3 %v5103_v13 }
 0x7e4   :  { %2968 = vmatpush.msrb.mxu0 %v5107_v37  ;;  %2988 = vmatpush.msrb.mxu1 %v5109_v41 }
 0x7e5   :  { %3008 = vmatpush.msrb.mxu2 %v5112_v43  ;;  %3028 = vmatpush.msrb.mxu3 %v5115_v46 }
 0x7e6   :  { %2969 = vmatpush.msrb.mxu0 %v5119_v50  ;;  %2989 = vmatpush.msrb.mxu1 %v5121_v51 }
 0x7e7   :  { %3009 = vmatpush.msrb.mxu2 %v5124_v2  ;;  %3029 = vmatpush.msrb.mxu3 %v5127_v60 }
 0x7e8   :  { %2970 = vmatpush.msrb.mxu0 %v5131_v61  ;;  %2990 = vmatpush.msrb.mxu1 %v5133_v62 }
 0x7e9   :  { %3010 = vmatpush.msrb.mxu2 %v5142_v7  ;;  %3030 = vmatpush.msrb.mxu3 %v5156_v17 }
 0x7ea   :  { %2971 = vmatpush.msrb.mxu0 %v5135_v6  ;;  %2991 = vmatpush.msrb.mxu1 %v5140_v29 }
 0x7eb   :  { %3011 = vmatpush.msrb.mxu2 %v6450_v23  ;;  %3031 = vmatpush.msrb.mxu3 %v6451_v20 }
 0x7ec   :  { %2972 = vmatpush.msrb.mxu0 %v6452_v12  ;;  %2992 = vmatpush.msrb.mxu1 %v6453_v47 }
 0x7ed   :  { %3012 = vmatpush.msrb.mxu2 %v6454_v54  ;;  %3032 = vmatpush.msrb.mxu3 %v6455_v42 }
 0x7ee   :  { %2973 = vmatpush.msrb.mxu0 %v6456_v5  ;;  %2993 = vmatpush.msrb.mxu1 %v6457_v52 }
 0x7ef   :  { %3013 = vmatpush.msrb.mxu2 %v6458_v10  ;;  %3033 = vmatpush.msrb.mxu3 %v6459_v55  ;;  %v6481_v10 = vld [vmem:[#allocation77_spill] sm:$0xff] }
 0x7f0   :  { %2974 = vmatpush.msrb.mxu0 %v6460_v36  ;;  %2994 = vmatpush.msrb.mxu1 %v6461_v21 }
 0x7f1   :  { %3014 = vmatpush.msrb.mxu2 %v6462_v45  ;;  %3034 = vmatpush.msrb.mxu3 %v6463_v48  ;;  %v6479_v45 = vld [vmem:[#allocation76_spill] sm:$0xff] }
 0x7f2   :  { %2975 = vmatpush.msrb.mxu0 %v6464_v39  ;;  %2995 = vmatpush.msrb.mxu1 %v6465_v59  ;;  %v6475_v39 = vld [vmem:[#allocation42_spill] sm:$0xff]  ;;  %v6476_v59 = vld [vmem:[#allocation75_spill] sm:$0xff] }
 0x7f3   :  { %3015 = vmatpush.msrb.mxu2 %v6466_v33  ;;  %3035 = vmatpush.msrb.mxu3 %v6467_v25  ;;  %v6477_v33 = vld [vmem:[#allocation50_spill] sm:$0xff]  ;;  %v6478_v25 = vld [vmem:[#allocation79_spill] sm:$0xff] }
 0x7f4   :  { %2976 = vmatpush.msrb.mxu0 %v6468_v58  ;;  %2996 = vmatpush.msrb.mxu1 %v6469_v35  ;;  %v2025_v48 = vadd.f32 %v6477_v33, %v6476_v59  ;;  %v2066_v58 = vadd.f32 %v6479_v45, %v6478_v25 }
 0x7f5   :  { %3016 = vmatpush.msrb.mxu2 %v6470_v63  ;;  %3036 = vmatpush.msrb.mxu3 %v6471_v3 }
 0x7f6   :  { %2977 = vmatpush.msrb.mxu0 %v6472_v56  ;;  %2997 = vmatpush.msrb.mxu1 %v6473_v53  ;;  %v6480_v56 = vld [vmem:[#allocation57_spill] sm:$0xff] }
 0x7f7   :  { %3017 = vmatpush.msrb.mxu2 %v6474_v14  ;;  %3037 = vmatpush.msrb.mxu3 %v6475_v39  ;;  %v2107_v53 = vadd.f32 %v6481_v10, %v6480_v56 }
 0x853   :  { %v2675_v21 = vpop.f32.mrf.mxu0  ;;  %v2695_v35 = vpop.f32.mrf.mxu1 }
 0x854   :  { %v2738_v36 = vadd.f32 %v2675_v21, %v2025_v48  ;;  %v2739_v63 = vadd.f32 %v2695_v35, %v2066_v58  ;;  %v6482_v48 = vld [vmem:[#allocation55_spill] sm:$0xff] }
 0x856   :  { %v3555_v55 = vmul.f32 -1.442695, %v2738_v36  ;;  %v3556_v3 = vmul.f32 -1.442695, %v2739_v63  ;;  %v6483_v36 = vld [vmem:[#allocation69_spill] sm:$0xff] }
 0x857   :  { %v2148_v58 = vadd.f32 %v6483_v36, %v6482_v48 }
 0x858   :  { %3760 = vpow2.f32 %v3555_v55 }
 0x859   :  { %3762 = vpow2.f32 %v3556_v3 }
 0x85a   :  { %v2715_v14 = vpop.f32.mrf.mxu2  ;;  %v2735_v45 = vpop.f32.mrf.mxu3 }
 0x85b   :  { %v2740_v52 = vadd.f32 %v2715_v14, %v2107_v53  ;;  %v2741_v63 = vadd.f32 %v2735_v45, %v2148_v58 }
 0x85d   :  { %v3557_v39 = vmul.f32 -1.442695, %v2740_v52 }
 0x85e   :  { %v3761_v5 = vpop.eup %3760 }
 0x85f   :  { %v3763_v42 = vpop.eup %3762  ;;  %v2751_v33 = vadd.f32 1.0, %v3761_v5  ;;  %3764 = vpow2.f32 %v3557_v39 }
 0x860   :  { %v2752_v59 = vadd.f32 1.0, %v3763_v42 }
 0x861   :  { %3766 = vrcp.f32 %v2751_v33  ;;  %v2765_v56 = vand.u32 2147483648, %v2751_v33  ;;  %v2763_v39 = vand.u32 2147483647, %v2751_v33  ;;  %vm2759_vm6 = vweird.f32 %v2751_v33 }
 0x862   :  { %3768 = vrcp.f32 %v2752_v59  ;;  %v2780_v5 = vand.u32 2147483648, %v2752_v59  ;;  %v2778_v54 = vand.u32 2147483647, %v2752_v59  ;;  %vm2774_vm7 = vweird.f32 %v2752_v59 }
 0x863   :  { %vm2764_vm10 = vcmp.eq.f32.partialorder %v2763_v39, 8.507059e+37  ;;  %v6490_v39 = vld [vmem:[#allocation63_spill] sm:$0xff] }
 0x864   :  { %vm2779_vm11 = vcmp.eq.f32.partialorder %v2778_v54, 8.507059e+37 }
 0x865   :  { %v3765_v21 = vpop.eup %3764 }
 0x866   :  { %v2753_v55 = vadd.f32 1.0, %v3765_v21  ;;  %v2766_v21 = vor.u32 1.1754944e-38, %v2765_v56 }
 0x867   :  { %v3767_v35 = vpop.eup %3766 }
 0x868   :  { %v3769_v10 = vpop.eup %3768  ;;  %v2755_v3 = vmul.f32 %v3767_v35, %v2751_v33  ;;  %3770 = vrcp.f32 %v2753_v55  ;;  %vm2760_vm4 = vweird.f32 %v3767_v35  ;;  %v2795_v56 = vand.u32 2147483648, %v2753_v55 }
 0x869   :  { %v2770_v53 = vmul.f32 %v3769_v10, %v2752_v59  ;;  %3772 = vtanh.f32 %v2741_v63  ;;  %vm2775_vm5 = vweird.f32 %v3769_v10  ;;  %vm2761_vm8 = vmor %vm2759_vm6, %vm2760_vm4  ;;  %vm2789_vm13 = vweird.f32 %v2753_v55 }
 0x86a   :  { %v2756_v52 = vsub.f32 1.0, %v2755_v3  ;;  %vm2776_vm9 = vmor %vm2774_vm7, %vm2775_vm5  ;;  %v2781_v3 = vor.u32 1.1754944e-38, %v2780_v5  ;;  %v2796_v5 = vor.u32 1.1754944e-38, %v2795_v56  ;;  %v6502_v56 = vld [vmem:[#allocation33_spill] sm:$0xff] }
 0x86b   :  { %v2771_v14 = vsub.f32 1.0, %v2770_v53 }
 0x86c   :  { %v2757_v42 = vmul.f32 %v3767_v35, %v2756_v52 }
 0x86d   :  { %v2772_v25 = vmul.f32 %v3769_v10, %v2771_v14 }
 0x86e   :  { %v3771_v47 = vpop.eup %3770  ;;  %v2758_v36 = vadd.f32 %v3767_v35, %v2757_v42 }
 0x86f   :  { %v2785_v45 = vmul.f32 %v3771_v47, %v2753_v55  ;;  %v2773_v58 = vadd.f32 %v3769_v10, %v2772_v25  ;;  %v3773_v63 = vpop.eup %3772  ;;  %vm2790_vm12 = vweird.f32 %v3771_v47  ;;  %v2793_v25 = vand.u32 2147483647, %v2753_v55  ;;  %v6489_v55 = vld [vmem:[#allocation27_spill] sm:$0xff] }
 0x870   :  { %v2762_v53 = vsel %vm2761_vm8, %v3767_v35, %v2758_v36  ;;  %vm2791_vm14 = vmor %vm2789_vm13, %vm2790_vm12  ;;  %v6491_v36 = vld [vmem:[#allocation64_spill] sm:$0xff] }
 0x871   :  { %v2786_v48 = vsub.f32 1.0, %v2785_v45  ;;  %v2767_v52 = vsel %vm2764_vm10, %v2766_v21, %v2762_v53  ;;  %v2777_v12 = vsel %vm2776_vm9, %v3769_v10, %v2773_v58  ;;  %vm2794_vm15 = vcmp.eq.f32.partialorder %v2793_v25, 8.507059e+37  ;;  %v6492_v45 = vld [vmem:[#allocation65_spill] sm:$0xff]  ;;  %v6496_v53 = vld [vmem:[#allocation28_spill] sm:$0xff]  ;;  %v6503_v25 = vld [vmem:[#allocation34_spill] sm:$0xff] }
 0x872   :  { %v2782_v14 = vsel %vm2779_vm11, %v2781_v3, %v2777_v12  ;;  %v2801_v20 = vmul.f32 %v3773_v63, %v2767_v52  ;;  %v6493_v21 = vld [vmem:[#allocation29_spill] sm:$0xff]  ;;  %v6495_v3 = vld [vmem:[#allocation26_spill] sm:$0xff]  ;;  %v6497_v63 = vld [vmem:[#allocation32_spill] sm:$0xff] }
 0x873   :  { %v2787_v23 = vmul.f32 %v3771_v47, %v2786_v48  ;;  %v2800_v42 = vmul.f32 %v2782_v14, %v5615_v1  ;;  %v6484_v1 = vld [vmem:[#allocation61_spill] sm:$0xff]  ;;  %v6488_v48 = vld [vmem:[#allocation62_spill] sm:$0xff]  ;;  %v6499_v14 = vld [vmem:[#allocation31_spill] sm:$0xff] }
 0x874   :  { %v6494_v58 = vld [vmem:[#allocation25_spill] sm:$0xff]  ;;  %v6498_v52 = vld [vmem:[#allocation30_spill] sm:$0xff] }
 0x875   :  { %v5691_v33 = vadd.f32 %v2801_v20, %v2800_v42  ;;  %v2788_v59 = vadd.f32 %v3771_v47, %v2787_v23  ;;  %v6485_v23 = vld [vmem:[#allocation68_spill] sm:$0xff]  ;;  %v6486_v20 = vld [vmem:[#allocation59_spill] sm:$0xff] }
 0x876   :  { %v6500_v42 = vld [vmem:[#allocation35_spill] sm:$0xff] }
 0x877   :  { %3774 = vtanh.f32 %v5691_v33  ;;  %v2792_v35 = vsel %vm2791_vm14, %v3771_v47, %v2788_v59  ;;  %v6487_v47 = vld [vmem:[#allocation60_spill] sm:$0xff] }
 0x878   :  { %v2797_v54 = vsel %vm2794_vm15, %v2796_v5, %v2792_v35  ;;  %v6501_v59 = vld [vmem:[#allocation36_spill] sm:$0xff]  ;;  %v6504_v35 = vld [vmem:[#allocation39_spill] sm:$0xff] }
 0x879   :  { %v6505_v5 = vld [vmem:[#allocation40_spill] sm:$0xff] }
 0x87d   :  { %v3775_v10 = vpop.eup %3774 }
 0x87e   :  { %v2804_v12 = vmul.f32 %v3775_v10, %v2797_v54  ;;  %v6506_v10 = vld [vmem:[#allocation37_spill] sm:$0xff]  ;;  %v6507_v54 = vld [vmem:[#allocation38_spill] sm:$0xff] }
 0x880   :  { %2826 = vmatmul.f32.vlgmr.msra.gmra.mxu0 %v2804_v12  ;;  %2846 = vmatmul.f32.vlgmr.msra.gmra.mxu1 %v2804_v12 }
 0x881   :  { %2866 = vmatmul.f32.vlgmr.msra.gmra.mxu2 %v2804_v12  ;;  %2886 = vmatmul.f32.vlgmr.msra.gmra.mxu3 %v2804_v12  ;;  %v6508_v12 = vld [vmem:[#allocation41_spill] sm:$0xff] }
 0x882   :  { %3114 = vmatpush.msra.mxu0 %v5021_v0  ;;  %3134 = vmatpush.msra.mxu1 %v6345_v40 }
 0x883   :  { %3154 = vmatpush.msra.mxu2 %v6346_v11  ;;  %3174 = vmatpush.msra.mxu3 %v6347_v32 }
 0x884   :  { %3115 = vmatpush.msra.mxu0 %v6348_v27  ;;  %3135 = vmatpush.msra.mxu1 %v6349_v22 }
 0x885   :  { %3155 = vmatpush.msra.mxu2 %v5031_v15  ;;  %3175 = vmatpush.msra.mxu3 %v5060_v24 }
 0x886   :  { %3116 = vmatpush.msra.mxu0 %v5038_v16  ;;  %3136 = vmatpush.msra.mxu1 %v5040_v8 }
 0x887   :  { %3156 = vmatpush.msra.mxu2 %v5062_v9  ;;  %3176 = vmatpush.msra.mxu3 %v5065_v30 }
 0x888   :  { %3117 = vmatpush.msra.mxu0 %v5067_v19  ;;  %3137 = vmatpush.msra.mxu1 %v5069_v26 }
 0x889   :  { %3157 = vmatpush.msra.mxu2 %v5072_v38  ;;  %3177 = vmatpush.msra.mxu3 %v5079_v31 }
 0x88a   :  { %3118 = vmatpush.msra.mxu0 %v5074_v49  ;;  %3138 = vmatpush.msra.mxu1 %v5076_v18 }
 0x88b   :  { %3158 = vmatpush.msra.mxu2 %v5084_v34  ;;  %3178 = vmatpush.msra.mxu3 %v5087_v28 }
 0x88c   :  { %3119 = vmatpush.msra.mxu0 %v5095_v4  ;;  %3139 = vmatpush.msra.mxu1 %v5097_v57 }
 0x88d   :  { %3159 = vmatpush.msra.mxu2 %v5100_v44  ;;  %3179 = vmatpush.msra.mxu3 %v5103_v13 }
 0x88e   :  { %3120 = vmatpush.msra.mxu0 %v5107_v37  ;;  %3140 = vmatpush.msra.mxu1 %v5109_v41 }
 0x88f   :  { %3160 = vmatpush.msra.mxu2 %v5112_v43  ;;  %3180 = vmatpush.msra.mxu3 %v5115_v46 }
 0x890   :  { %3121 = vmatpush.msra.mxu0 %v5119_v50  ;;  %3141 = vmatpush.msra.mxu1 %v5121_v51 }
 0x891   :  { %3161 = vmatpush.msra.mxu2 %v5124_v2  ;;  %3181 = vmatpush.msra.mxu3 %v5127_v60 }
 0x892   :  { %3122 = vmatpush.msra.mxu0 %v5131_v61  ;;  %3142 = vmatpush.msra.mxu1 %v5133_v62 }
 0x893   :  { %3162 = vmatpush.msra.mxu2 %v5142_v7  ;;  %3182 = vmatpush.msra.mxu3 %v5156_v17 }
 0x894   :  { %3123 = vmatpush.msra.mxu0 %v5135_v6  ;;  %3143 = vmatpush.msra.mxu1 %v5140_v29 }
 0x895   :  { %3163 = vmatpush.msra.mxu2 %v6484_v1  ;;  %3183 = vmatpush.msra.mxu3 %v6485_v23 }
 0x896   :  { %3124 = vmatpush.msra.mxu0 %v6486_v20  ;;  %3144 = vmatpush.msra.mxu1 %v6487_v47 }
 0x897   :  { %3164 = vmatpush.msra.mxu2 %v6488_v48  ;;  %3184 = vmatpush.msra.mxu3 %v6489_v55 }
 0x898   :  { %3125 = vmatpush.msra.mxu0 %v6490_v39  ;;  %3145 = vmatpush.msra.mxu1 %v6491_v36 }
 0x899   :  { %3165 = vmatpush.msra.mxu2 %v6492_v45  ;;  %3185 = vmatpush.msra.mxu3 %v6493_v21  ;;  %v6515_v45 = vld [vmem:[#allocation82_spill] sm:$0xff] }
 0x89a   :  { %3126 = vmatpush.msra.mxu0 %v6494_v58  ;;  %3146 = vmatpush.msra.mxu1 %v6495_v3 }
 0x89b   :  { %3166 = vmatpush.msra.mxu2 %v6496_v53  ;;  %3186 = vmatpush.msra.mxu3 %v6497_v63  ;;  %v6513_v53 = vld [vmem:[#allocation80_spill] sm:$0xff] }
 0x89c   :  { %3127 = vmatpush.msra.mxu0 %v6498_v52  ;;  %3147 = vmatpush.msra.mxu1 %v6499_v14  ;;  %v6509_v52 = vld [vmem:[#allocation42_spill] sm:$0xff]  ;;  %v6510_v14 = vld [vmem:[#allocation75_spill] sm:$0xff] }
 0x89d   :  { %3167 = vmatpush.msra.mxu2 %v6500_v42  ;;  %3187 = vmatpush.msra.mxu3 %v6501_v59  ;;  %v6511_v42 = vld [vmem:[#allocation67_spill] sm:$0xff] }
 0x89e   :  { %3128 = vmatpush.msra.mxu0 %v6502_v56  ;;  %3148 = vmatpush.msra.mxu1 %v6503_v25  ;;  %v2028_v63 = vadd.f32 %v6511_v42, %v6510_v14  ;;  %v6512_v59 = vld [vmem:[#allocation79_spill] sm:$0xff] }
 0x89f   :  { %3168 = vmatpush.msra.mxu2 %v6504_v35  ;;  %3188 = vmatpush.msra.mxu3 %v6505_v5  ;;  %v2069_v56 = vadd.f32 %v6513_v53, %v6512_v59 }
 0x8a0   :  { %3129 = vmatpush.msra.mxu0 %v6506_v10  ;;  %3149 = vmatpush.msra.mxu1 %v6507_v54  ;;  %v6514_v10 = vld [vmem:[#allocation57_spill] sm:$0xff] }
 0x8a1   :  { %3169 = vmatpush.msra.mxu2 %v6508_v12  ;;  %3189 = vmatpush.msra.mxu3 %v6509_v52  ;;  %v2110_v54 = vadd.f32 %v6515_v45, %v6514_v10 }
 0x8fd   :  { %v2827_v3 = vpop.f32.mrf.mxu0  ;;  %v2847_v25 = vpop.f32.mrf.mxu1 }
 0x8fe   :  { %v2890_v58 = vadd.f32 %v2827_v3, %v2028_v63  ;;  %v2891_v35 = vadd.f32 %v2847_v25, %v2069_v56  ;;  %v6516_v63 = vld [vmem:[#allocation55_spill] sm:$0xff] }
 0x900   :  { %v3558_v21 = vmul.f32 -1.442695, %v2890_v58  ;;  %v3559_v5 = vmul.f32 -1.442695, %v2891_v35  ;;  %v6517_v58 = vld [vmem:[#allocation71_spill] sm:$0xff] }
 0x901   :  { %v2151_v56 = vadd.f32 %v6517_v58, %v6516_v63 }
 0x902   :  { %3776 = vpow2.f32 %v3558_v21 }
 0x903   :  { %3778 = vpow2.f32 %v3559_v5 }
 0x904   :  { %v2867_v12 = vpop.f32.mrf.mxu2  ;;  %v2887_v53 = vpop.f32.mrf.mxu3 }
 0x905   :  { %v2892_v36 = vadd.f32 %v2867_v12, %v2110_v54  ;;  %v2893_v35 = vadd.f32 %v2887_v53, %v2151_v56 }
 0x907   :  { %v3560_v52 = vmul.f32 -1.442695, %v2892_v36 }
 0x908   :  { %v3777_v39 = vpop.eup %3776 }
 0x909   :  { %v3779_v55 = vpop.eup %3778  ;;  %v2903_v42 = vadd.f32 1.0, %v3777_v39  ;;  %3780 = vpow2.f32 %v3560_v52 }
 0x90a   :  { %v2904_v14 = vadd.f32 1.0, %v3779_v55 }
 0x90b   :  { %3782 = vrcp.f32 %v2903_v42  ;;  %v2917_v10 = vand.u32 2147483648, %v2903_v42  ;;  %v2915_v52 = vand.u32 2147483647, %v2903_v42  ;;  %vm2911_vm2 = vweird.f32 %v2903_v42 }
 0x90c   :  { %3784 = vrcp.f32 %v2904_v14  ;;  %v2932_v39 = vand.u32 2147483648, %v2904_v14  ;;  %v2930_v48 = vand.u32 2147483647, %v2904_v14  ;;  %vm2926_vm3 = vweird.f32 %v2904_v14 }
 0x90d   :  { %vm2916_vm6 = vcmp.eq.f32.partialorder %v2915_v52, 8.507059e+37 }
 0x90e   :  { %vm2931_vm7 = vcmp.eq.f32.partialorder %v2930_v48, 8.507059e+37 }
 0x90f   :  { %v3781_v3 = vpop.eup %3780 }
 0x910   :  { %v2905_v21 = vadd.f32 1.0, %v3781_v3  ;;  %v2918_v3 = vor.u32 1.1754944e-38, %v2917_v10 }
 0x911   :  { %v3783_v25 = vpop.eup %3782 }
 0x912   :  { %v3785_v45 = vpop.eup %3784  ;;  %v2907_v5 = vmul.f32 %v3783_v25, %v2903_v42  ;;  %3786 = vrcp.f32 %v2905_v21  ;;  %vm2912_vm0 = vweird.f32 %v3783_v25  ;;  %v2947_v10 = vand.u32 2147483648, %v2905_v21 }
 0x913   :  { %v2922_v54 = vmul.f32 %v3785_v45, %v2904_v14  ;;  %3788 = vtanh.f32 %v2893_v35  ;;  %vm2927_vm1 = vweird.f32 %v3785_v45  ;;  %vm2913_vm4 = vmor %vm2911_vm2, %vm2912_vm0  ;;  %vm2941_vm9 = vweird.f32 %v2905_v21 }
 0x914   :  { %v2908_v36 = vsub.f32 1.0, %v2907_v5  ;;  %vm2928_vm5 = vmor %vm2926_vm3, %vm2927_vm1  ;;  %v2933_v5 = vor.u32 1.1754944e-38, %v2932_v39  ;;  %v2948_v39 = vor.u32 1.1754944e-38, %v2947_v10 }
 0x915   :  { %v2923_v12 = vsub.f32 1.0, %v2922_v54 }
 0x916   :  { %v2909_v55 = vmul.f32 %v3783_v25, %v2908_v36 }
 0x917   :  { %v2924_v59 = vmul.f32 %v3785_v45, %v2923_v12 }
 0x918   :  { %v3787_v47 = vpop.eup %3786  ;;  %v2910_v58 = vadd.f32 %v3783_v25, %v2909_v55 }
 0x919   :  { %v2937_v53 = vmul.f32 %v3787_v47, %v2905_v21  ;;  %v2925_v56 = vadd.f32 %v3785_v45, %v2924_v59  ;;  %v3789_v35 = vpop.eup %3788  ;;  %vm2942_vm8 = vweird.f32 %v3787_v47  ;;  %v2945_v59 = vand.u32 2147483647, %v2905_v21 }
 0x91a   :  { %v2914_v54 = vsel %vm2913_vm4, %v3783_v25, %v2910_v58  ;;  %vm2943_vm10 = vmor %vm2941_vm9, %vm2942_vm8 }
 0x91b   :  { %v2938_v63 = vsub.f32 1.0, %v2937_v53  ;;  %v2919_v36 = vsel %vm2916_vm6, %v2918_v3, %v2914_v54  ;;  %v2929_v20 = vsel %vm2928_vm5, %v3785_v45, %v2925_v56  ;;  %vm2946_vm11 = vcmp.eq.f32.partialorder %v2945_v59, 8.507059e+37  ;;  %v6550_v54 = vld [vmem:[#allocation55_spill] sm:$0xff] }
 0x91c   :  { %v2934_v12 = vsel %vm2931_vm7, %v2933_v5, %v2929_v20  ;;  %v2953_v23 = vmul.f32 %v3789_v35, %v2919_v36  ;;  %v6551_v35 = vld [vmem:[#allocation51_spill] sm:$0xff] }
 0x91d   :  { %v2939_v1 = vmul.f32 %v3787_v47, %v2938_v63  ;;  %v2952_v55 = vmul.f32 %v2934_v12, %v5691_v33  ;;  %v6548_v33 = vld [vmem:[#allocation57_spill] sm:$0xff]  ;;  %v2154_v36 = vadd.f32 %v6551_v35, %v6550_v54 }
 0x91f   :  { %v5767_v42 = vadd.f32 %v2953_v23, %v2952_v55  ;;  %v2940_v14 = vadd.f32 %v3787_v47, %v2939_v1  ;;  %v6549_v1 = vld [vmem:[#allocation73_spill] sm:$0xff] }
 0x920   :  { %v2113_v23 = vadd.f32 %v6549_v1, %v6548_v33 }
 0x921   :  { %3790 = vtanh.f32 %v5767_v42  ;;  %v2944_v25 = vsel %vm2943_vm10, %v3787_v47, %v2940_v14 }
 0x922   :  { %v2949_v48 = vsel %vm2946_vm11, %v2948_v39, %v2944_v25 }
 0x927   :  { %v3791_v45 = vpop.eup %3790 }
 0x928   :  { %v2956_v20 = vmul.f32 %v3791_v45, %v2949_v48 }
 0x92a   :  { %2978 = vmatmul.f32.vlgmr.msrb.gmra.mxu0 %v2956_v20  ;;  %2998 = vmatmul.f32.vlgmr.msrb.gmra.mxu1 %v2956_v20 }
 0x92b   :  { %3018 = vmatmul.f32.vlgmr.msrb.gmra.mxu2 %v2956_v20  ;;  %3038 = vmatmul.f32.vlgmr.msrb.gmra.mxu3 %v2956_v20 }
 0x92c   :  { %3266 = vmatpush.msrb.mxu0 %v5021_v0  ;;  %3286 = vmatpush.msrb.mxu1 %v6345_v40  ;;  %v6518_v0 = vld [vmem:[#allocation61_spill] sm:$0xff] }
 0x92d   :  { %3306 = vmatpush.msrb.mxu2 %v6346_v11  ;;  %3326 = vmatpush.msrb.mxu3 %v6347_v32 }
 0x92e   :  { %3267 = vmatpush.msrb.mxu0 %v6348_v27  ;;  %3287 = vmatpush.msrb.mxu1 %v6349_v22 }
 0x92f   :  { %3307 = vmatpush.msrb.mxu2 %v5031_v15  ;;  %3327 = vmatpush.msrb.mxu3 %v5060_v24  ;;  %v6519_v15 = vld [vmem:[#allocation68_spill] sm:$0xff]  ;;  %v6522_v24 = vld [vmem:[#allocation62_spill] sm:$0xff] }
 0x930   :  { %3268 = vmatpush.msrb.mxu0 %v5038_v16  ;;  %3288 = vmatpush.msrb.mxu1 %v5040_v8  ;;  %v6520_v16 = vld [vmem:[#allocation59_spill] sm:$0xff]  ;;  %v6521_v8 = vld [vmem:[#allocation60_spill] sm:$0xff] }
 0x931   :  { %3308 = vmatpush.msrb.mxu2 %v5062_v9  ;;  %3328 = vmatpush.msrb.mxu3 %v5065_v30  ;;  %v6523_v9 = vld [vmem:[#allocation27_spill] sm:$0xff] }
 0x932   :  { %3269 = vmatpush.msrb.mxu0 %v5067_v19  ;;  %3289 = vmatpush.msrb.mxu1 %v5069_v26  ;;  %v6524_v30 = vld [vmem:[#allocation63_spill] sm:$0xff]  ;;  %v6525_v19 = vld [vmem:[#allocation64_spill] sm:$0xff]  ;;  %v6526_v26 = vld [vmem:[#allocation65_spill] sm:$0xff] }
 0x933   :  { %3309 = vmatpush.msrb.mxu2 %v5072_v38  ;;  %3329 = vmatpush.msrb.mxu3 %v5079_v31  ;;  %v6527_v38 = vld [vmem:[#allocation29_spill] sm:$0xff]  ;;  %v6530_v31 = vld [vmem:[#allocation28_spill] sm:$0xff] }
 0x934   :  { %3270 = vmatpush.msrb.mxu0 %v5074_v49  ;;  %3290 = vmatpush.msrb.mxu1 %v5076_v18  ;;  %v6528_v49 = vld [vmem:[#allocation25_spill] sm:$0xff]  ;;  %v6529_v18 = vld [vmem:[#allocation26_spill] sm:$0xff] }
 0x935   :  { %3310 = vmatpush.msrb.mxu2 %v5084_v34  ;;  %3330 = vmatpush.msrb.mxu3 %v5087_v28  ;;  %v6531_v34 = vld [vmem:[#allocation32_spill] sm:$0xff]  ;;  %v6532_v28 = vld [vmem:[#allocation30_spill] sm:$0xff] }
 0x936   :  { %3271 = vmatpush.msrb.mxu0 %v5095_v4  ;;  %3291 = vmatpush.msrb.mxu1 %v5097_v57  ;;  %v6533_v4 = vld [vmem:[#allocation31_spill] sm:$0xff] }
 0x937   :  { %3311 = vmatpush.msrb.mxu2 %v5100_v44  ;;  %3331 = vmatpush.msrb.mxu3 %v5103_v13  ;;  %v6534_v57 = vld [vmem:[#allocation35_spill] sm:$0xff]  ;;  %v6535_v44 = vld [vmem:[#allocation36_spill] sm:$0xff]  ;;  %v6536_v13 = vld [vmem:[#allocation33_spill] sm:$0xff] }
 0x938   :  { %3272 = vmatpush.msrb.mxu0 %v5107_v37  ;;  %3292 = vmatpush.msrb.mxu1 %v5109_v41  ;;  %v6537_v37 = vld [vmem:[#allocation34_spill] sm:$0xff]  ;;  %v6538_v41 = vld [vmem:[#allocation39_spill] sm:$0xff] }
 0x939   :  { %3312 = vmatpush.msrb.mxu2 %v5112_v43  ;;  %3332 = vmatpush.msrb.mxu3 %v5115_v46  ;;  %v6539_v43 = vld [vmem:[#allocation40_spill] sm:$0xff]  ;;  %v6540_v46 = vld [vmem:[#allocation37_spill] sm:$0xff] }
 0x93a   :  { %3273 = vmatpush.msrb.mxu0 %v5119_v50  ;;  %3293 = vmatpush.msrb.mxu1 %v5121_v51  ;;  %v6541_v50 = vld [vmem:[#allocation38_spill] sm:$0xff]  ;;  %v6542_v51 = vld [vmem:[#allocation41_spill] sm:$0xff] }
 0x93b   :  { %3313 = vmatpush.msrb.mxu2 %v5124_v2  ;;  %3333 = vmatpush.msrb.mxu3 %v5127_v60  ;;  %v6543_v2 = vld [vmem:[#allocation42_spill] sm:$0xff]  ;;  %v6544_v60 = vld [vmem:[#allocation75_spill] sm:$0xff] }
 0x93c   :  { %3274 = vmatpush.msrb.mxu0 %v5131_v61  ;;  %3294 = vmatpush.msrb.mxu1 %v5133_v62  ;;  %v6545_v61 = vld [vmem:[#allocation72_spill] sm:$0xff] }
 0x93d   :  { %3314 = vmatpush.msrb.mxu2 %v5142_v7  ;;  %3334 = vmatpush.msrb.mxu3 %v5156_v17  ;;  %v2031_v62 = vadd.f32 %v6545_v61, %v6544_v60 }
 0x93e   :  { %3275 = vmatpush.msrb.mxu0 %v5135_v6  ;;  %3295 = vmatpush.msrb.mxu1 %v5140_v29  ;;  %v6546_v6 = vld [vmem:[#allocation79_spill] sm:$0xff]  ;;  %v6547_v29 = vld [vmem:[#allocation70_spill] sm:$0xff] }
 0x93f   :  { %3315 = vmatpush.msrb.mxu2 %v6518_v0  ;;  %3335 = vmatpush.msrb.mxu3 %v6519_v15  ;;  %v2072_v7 = vadd.f32 %v6547_v29, %v6546_v6 }
 0x940   :  { %3276 = vmatpush.msrb.mxu0 %v6520_v16  ;;  %3296 = vmatpush.msrb.mxu1 %v6521_v8 }
 0x941   :  { %3316 = vmatpush.msrb.mxu2 %v6522_v24  ;;  %3336 = vmatpush.msrb.mxu3 %v6523_v9 }
 0x942   :  { %3277 = vmatpush.msrb.mxu0 %v6524_v30  ;;  %3297 = vmatpush.msrb.mxu1 %v6525_v19 }
 0x943   :  { %3317 = vmatpush.msrb.mxu2 %v6526_v26  ;;  %3337 = vmatpush.msrb.mxu3 %v6527_v38 }
 0x944   :  { %3278 = vmatpush.msrb.mxu0 %v6528_v49  ;;  %3298 = vmatpush.msrb.mxu1 %v6529_v18 }
 0x945   :  { %3318 = vmatpush.msrb.mxu2 %v6530_v31  ;;  %3338 = vmatpush.msrb.mxu3 %v6531_v34 }
 0x946   :  { %3279 = vmatpush.msrb.mxu0 %v6532_v28  ;;  %3299 = vmatpush.msrb.mxu1 %v6533_v4 }
 0x947   :  { %3319 = vmatpush.msrb.mxu2 %v6534_v57  ;;  %3339 = vmatpush.msrb.mxu3 %v6535_v44 }
 0x948   :  { %3280 = vmatpush.msrb.mxu0 %v6536_v13  ;;  %3300 = vmatpush.msrb.mxu1 %v6537_v37 }
 0x949   :  { %3320 = vmatpush.msrb.mxu2 %v6538_v41  ;;  %3340 = vmatpush.msrb.mxu3 %v6539_v43 }
 0x94a   :  { %3281 = vmatpush.msrb.mxu0 %v6540_v46  ;;  %3301 = vmatpush.msrb.mxu1 %v6541_v50 }
 0x94b   :  { %3321 = vmatpush.msrb.mxu2 %v6542_v51  ;;  %3341 = vmatpush.msrb.mxu3 %v6543_v2 }
 0x9a7   :  { %v2979_v17 = vpop.f32.mrf.mxu0  ;;  %v2999_v40 = vpop.f32.mrf.mxu1 }
 0x9a8   :  { %v3042_v11 = vadd.f32 %v2979_v17, %v2031_v62  ;;  %v3043_v32 = vadd.f32 %v2999_v40, %v2072_v7  ;;  %v6553_v7 = vld [vmem:[#allocation83_spill] sm:$0xff] }
 0x9a9   :  { %v2075_v17 = vadd.f32 %v6553_v7, %v6546_v6  ;;  %v3432_v7 = vld [vmem:[#allocation13 + $0x70] sm:$0xff] }
 0x9aa   :  { %v3561_v27 = vmul.f32 -1.442695, %v3042_v11  ;;  %v3562_v22 = vmul.f32 -1.442695, %v3043_v32 }
 0x9ac   :  { %3792 = vpow2.f32 %v3561_v27 }
 0x9ad   :  { %3794 = vpow2.f32 %v3562_v22 }
 0x9ae   :  { %v3019_v47 = vpop.f32.mrf.mxu2  ;;  %v3039_v56 = vpop.f32.mrf.mxu3 }
 0x9af   :  { %v3044_v63 = vadd.f32 %v3019_v47, %v2113_v23  ;;  %v3045_v14 = vadd.f32 %v3039_v56, %v2154_v36  ;;  %v6554_v23 = vld [vmem:[#allocation52_spill] sm:$0xff]  ;;  %v6555_v36 = vld [vmem:[#allocation81_spill] sm:$0xff] }
 0x9b0   :  { %v2116_v47 = vadd.f32 %v6554_v23, %v6548_v33  ;;  %v6556_v23 = vld [vmem:[#allocation53_spill] sm:$0xff] }
 0x9b1   :  { %v3563_v21 = vmul.f32 -1.442695, %v3044_v63 }
 0x9b2   :  { %v3793_v52 = vpop.eup %3792 }
 0x9b3   :  { %v3795_v58 = vpop.eup %3794  ;;  %v3055_v53 = vadd.f32 1.0, %v3793_v52  ;;  %3796 = vpow2.f32 %v3563_v21 }
 0x9b4   :  { %v3056_v3 = vadd.f32 1.0, %v3795_v58 }
 0x9b5   :  { %3798 = vrcp.f32 %v3055_v53  ;;  %v3069_v48 = vand.u32 2147483648, %v3055_v53  ;;  %v3067_v15 = vand.u32 2147483647, %v3055_v53  ;;  %vm3063_vm14 = vweird.f32 %v3055_v53 }
 0x9b6   :  { %3800 = vrcp.f32 %v3056_v3  ;;  %v3084_v20 = vand.u32 2147483648, %v3056_v3  ;;  %v3082_v8 = vand.u32 2147483647, %v3056_v3  ;;  %vm3078_vm15 = vweird.f32 %v3056_v3 }
 0x9b7   :  { %v3070_v19 = vor.u32 1.1754944e-38, %v3069_v48  ;;  %vm3068_vm2 = vcmp.eq.f32.partialorder %v3067_v15, 8.507059e+37 }
 0x9b8   :  { %v3085_v38 = vor.u32 1.1754944e-38, %v3084_v20  ;;  %vm3083_vm3 = vcmp.eq.f32.partialorder %v3082_v8, 8.507059e+37 }
 0x9b9   :  { %v3797_v5 = vpop.eup %3796 }
 0x9ba   :  { %v3057_v12 = vadd.f32 1.0, %v3797_v5 }
 0x9bb   :  { %v3799_v55 = vpop.eup %3798 }
 0x9bc   :  { %v3801_v10 = vpop.eup %3800  ;;  %v3059_v59 = vmul.f32 %v3799_v55, %v3055_v53  ;;  %3802 = vrcp.f32 %v3057_v12  ;;  %vm3064_vm12 = vweird.f32 %v3799_v55  ;;  %v3099_v43 = vand.u32 2147483648, %v3057_v12 }
 0x9bd   :  { %v3074_v25 = vmul.f32 %v3801_v10, %v3056_v3  ;;  %3804 = vtanh.f32 %v3045_v14  ;;  %vm3079_vm13 = vweird.f32 %v3801_v10  ;;  %vm3065_vm0 = vmor %vm3063_vm14, %vm3064_vm12  ;;  %vm3093_vm5 = vweird.f32 %v3057_v12 }
 0x9be   :  { %v3060_v39 = vsub.f32 1.0, %v3059_v59  ;;  %vm3080_vm1 = vmor %vm3078_vm15, %vm3079_vm13  ;;  %v3097_v46 = vand.u32 2147483647, %v3057_v12  ;;  %v3100_v51 = vor.u32 1.1754944e-38, %v3099_v43 }
 0x9bf   :  { %v3075_v45 = vsub.f32 1.0, %v3074_v25 }
 0x9c0   :  { %v3061_v0 = vmul.f32 %v3799_v55, %v3060_v39  ;;  %vm3098_vm7 = vcmp.eq.f32.partialorder %v3097_v46, 8.507059e+37 }
 0x9c1   :  { %v3076_v16 = vmul.f32 %v3801_v10, %v3075_v45 }
 0x9c2   :  { %v3803_v24 = vpop.eup %3802  ;;  %v3062_v9 = vadd.f32 %v3799_v55, %v3061_v0 }
 0x9c3   :  { %v3089_v30 = vmul.f32 %v3803_v24, %v3057_v12  ;;  %v3077_v26 = vadd.f32 %v3801_v10, %v3076_v16  ;;  %v3805_v18 = vpop.eup %3804  ;;  %vm3094_vm4 = vweird.f32 %v3803_v24  ;;  %v2157_v12 = vadd.f32 %v6555_v36, %v6550_v54 }
 0x9c4   :  { %v3066_v49 = vsel %vm3065_vm0, %v3799_v55, %v3062_v9  ;;  %vm3095_vm6 = vmor %vm3093_vm5, %vm3094_vm4 }
 0x9c5   :  { %v3090_v31 = vsub.f32 1.0, %v3089_v30  ;;  %v3071_v34 = vsel %vm3068_vm2, %v3070_v19, %v3066_v49  ;;  %v3081_v28 = vsel %vm3080_vm1, %v3801_v10, %v3077_v26 }
 0x9c6   :  { %v3086_v4 = vsel %vm3083_vm3, %v3085_v38, %v3081_v28  ;;  %v3105_v57 = vmul.f32 %v3805_v18, %v3071_v34 }
 0x9c7   :  { %v3091_v44 = vmul.f32 %v3803_v24, %v3090_v31  ;;  %v3104_v13 = vmul.f32 %v3086_v4, %v5767_v42  ;;  %v6552_v42 = vld [vmem:[#allocation78_spill] sm:$0xff] }
 0x9c8   :  { %v2034_v29 = vadd.f32 %v6552_v42, %v6544_v60 }
 0x9c9   :  { %v5843_v37 = vadd.f32 %v3105_v57, %v3104_v13  ;;  %v3092_v41 = vadd.f32 %v3803_v24, %v3091_v44 }
 0x9cb   :  { %3806 = vtanh.f32 %v5843_v37  ;;  %v3096_v50 = vsel %vm3095_vm6, %v3803_v24, %v3092_v41 }
 0x9cc   :  { %v3101_v61 = vsel %vm3098_vm7, %v3100_v51, %v3096_v50 }
 0x9d1   :  { %v3807_v2 = vpop.eup %3806 }
 0x9d2   :  { %v3108_v62 = vmul.f32 %v3807_v2, %v3101_v61 }
 0x9d4   :  { %3130 = vmatmul.f32.vlgmr.msra.gmra.mxu0 %v3108_v62  ;;  %3150 = vmatmul.f32.vlgmr.msra.gmra.mxu1 %v3108_v62 }
 0x9d5   :  { %3170 = vmatmul.f32.vlgmr.msra.gmra.mxu2 %v3108_v62  ;;  %3190 = vmatmul.f32.vlgmr.msra.gmra.mxu3 %v3108_v62 }
 0xa51   :  { %v3131_v40 = vpop.f32.mrf.mxu0  ;;  %v3151_v11 = vpop.f32.mrf.mxu1 }
 0xa52   :  { %v3194_v32 = vadd.f32 %v3131_v40, %v2034_v29  ;;  %v3195_v27 = vadd.f32 %v3151_v11, %v2075_v17  ;;  %v3431_v17 = vld [vmem:[#allocation13 + $0x68] sm:$0xff]  ;;  %v3430_v40 = vld [vmem:[#allocation13 + $0x60] sm:$0xff]  ;;  %v3429_v11 = vld [vmem:[#allocation13 + $0x58] sm:$0xff] }
 0xa54   :  { %v3564_v22 = vmul.f32 -1.442695, %v3194_v32  ;;  %v3565_v1 = vmul.f32 -1.442695, %v3195_v27  ;;  %v3428_v32 = vld [vmem:[#allocation13 + $0x50] sm:$0xff]  ;;  %v3427_v27 = vld [vmem:[#allocation13 + $0x48] sm:$0xff] }
 0xa56   :  { %3808 = vpow2.f32 %v3564_v22  ;;  %v3426_v22 = vld [vmem:[#allocation13 + $0x40] sm:$0xff] }
 0xa57   :  { %3810 = vpow2.f32 %v3565_v1  ;;  %v3425_v1 = vld [vmem:[#allocation13 + $0x38] sm:$0xff] }
 0xa58   :  { %v3171_v63 = vpop.f32.mrf.mxu2  ;;  %v3191_v5 = vpop.f32.mrf.mxu3 }
 0xa59   :  { %v3196_v21 = vadd.f32 %v3171_v63, %v2116_v47  ;;  %v3197_v10 = vadd.f32 %v3191_v5, %v2157_v12  ;;  %v2037_v47 = vadd.f32 %v6556_v23, %v6544_v60  ;;  %v6557_v63 = vld [vmem:[#allocation74_spill] sm:$0xff]  ;;  %v3423_v5 = vld [vmem:[#allocation13 + $0x28] sm:$0xff]  ;;  %v3422_v12 = vld [vmem:[#allocation13 + $0x20] sm:$0xff] }
 0xa5a   :  { %v6558_v60 = vld [vmem:[#allocation54_spill] sm:$0xff] }
 0xa5b   :  { %v3566_v52 = vmul.f32 -1.442695, %v3196_v21  ;;  %v2078_v21 = vadd.f32 %v6557_v63, %v6546_v6  ;;  %v3420_v6 = vld [vmem:[#allocation13 + $0x10] sm:$0xff] }
 0xa5c   :  { %v3809_v58 = vpop.eup %3808 }
 0xa5d   :  { %v3811_v53 = vpop.eup %3810  ;;  %v3207_v3 = vadd.f32 1.0, %v3809_v58  ;;  %3812 = vpow2.f32 %v3566_v52 }
 0xa5e   :  { %v3208_v56 = vadd.f32 1.0, %v3811_v53  ;;  %v3424_v53 = vld [vmem:[#allocation13 + $0x30] sm:$0xff] }
 0xa5f   :  { %3814 = vrcp.f32 %v3207_v3  ;;  %v3221_v20 = vand.u32 2147483648, %v3207_v3  ;;  %v3219_v16 = vand.u32 2147483647, %v3207_v3  ;;  %vm3215_vm10 = vweird.f32 %v3207_v3 }
 0xa60   :  { %3816 = vrcp.f32 %v3208_v56  ;;  %v3236_v0 = vand.u32 2147483648, %v3208_v56  ;;  %v3234_v24 = vand.u32 2147483647, %v3208_v56  ;;  %vm3230_vm11 = vweird.f32 %v3208_v56 }
 0xa61   :  { %v3222_v26 = vor.u32 1.1754944e-38, %v3221_v20  ;;  %vm3220_vm14 = vcmp.eq.f32.partialorder %v3219_v16, 8.507059e+37 }
 0xa62   :  { %v3237_v49 = vor.u32 1.1754944e-38, %v3236_v0  ;;  %vm3235_vm15 = vcmp.eq.f32.partialorder %v3234_v24, 8.507059e+37 }
 0xa63   :  { %v3813_v35 = vpop.eup %3812 }
 0xa64   :  { %v3209_v55 = vadd.f32 1.0, %v3813_v35 }
 0xa65   :  { %v3815_v14 = vpop.eup %3814 }
 0xa66   :  { %v3817_v59 = vpop.eup %3816  ;;  %v3211_v25 = vmul.f32 %v3815_v14, %v3207_v3  ;;  %3818 = vrcp.f32 %v3209_v55  ;;  %vm3216_vm8 = vweird.f32 %v3815_v14  ;;  %v3251_v50 = vand.u32 2147483648, %v3209_v55 }
 0xa67   :  { %v3226_v39 = vmul.f32 %v3817_v59, %v3208_v56  ;;  %3820 = vtanh.f32 %v3197_v10  ;;  %vm3231_vm9 = vweird.f32 %v3817_v59  ;;  %vm3217_vm12 = vmor %vm3215_vm10, %vm3216_vm8  ;;  %vm3245_vm1 = vweird.f32 %v3209_v55 }
 0xa68   :  { %v3212_v45 = vsub.f32 1.0, %v3211_v25  ;;  %vm3232_vm13 = vmor %vm3230_vm11, %vm3231_vm9  ;;  %v3249_v51 = vand.u32 2147483647, %v3209_v55  ;;  %v3252_v61 = vor.u32 1.1754944e-38, %v3251_v50  ;;  %v3419_v25 = vld [vmem:[#allocation13 + $0x8] sm:$0xff] }
 0xa69   :  { %v3227_v48 = vsub.f32 1.0, %v3226_v39 }
 0xa6a   :  { %v3213_v15 = vmul.f32 %v3815_v14, %v3212_v45  ;;  %vm3250_vm3 = vcmp.eq.f32.partialorder %v3249_v51, 8.507059e+37  ;;  %v3418_v45 = vld [vmem:[#allocation13] sm:$0xff] }
 0xa6b   :  { %v3228_v8 = vmul.f32 %v3817_v59, %v3227_v48 }
 0xa6c   :  { %v3819_v9 = vpop.eup %3818  ;;  %v3214_v30 = vadd.f32 %v3815_v14, %v3213_v15 }
 0xa6d   :  { %v3241_v19 = vmul.f32 %v3819_v9, %v3209_v55  ;;  %v3229_v38 = vadd.f32 %v3817_v59, %v3228_v8  ;;  %v3821_v31 = vpop.eup %3820  ;;  %vm3246_vm0 = vweird.f32 %v3819_v9  ;;  %v3421_v55 = vld [vmem:[#allocation13 + $0x18] sm:$0xff]  ;;  %v6559_v8 = vld [vmem:[#allocation58_spill] sm:$0xff] }
 0xa6e   :  { %v3218_v18 = vsel %vm3217_vm12, %v3815_v14, %v3214_v30  ;;  %vm3247_vm2 = vmor %vm3245_vm1, %vm3246_vm0  ;;  %v2119_v14 = vadd.f32 %v6558_v60, %v6548_v33  ;;  %v2160_v24 = vadd.f32 %v6559_v8, %v6550_v54 }
 0xa6f   :  { %v3242_v34 = vsub.f32 1.0, %v3241_v19  ;;  %v3223_v28 = vsel %vm3220_vm14, %v3222_v26, %v3218_v18  ;;  %v3233_v4 = vsel %vm3232_vm13, %v3817_v59, %v3229_v38 }
 0xa70   :  { %v3238_v57 = vsel %vm3235_vm15, %v3237_v49, %v3233_v4  ;;  %v3257_v44 = vmul.f32 %v3821_v31, %v3223_v28 }
 0xa71   :  { %v3243_v13 = vmul.f32 %v3819_v9, %v3242_v34  ;;  %v3256_v41 = vmul.f32 %v3238_v57, %v5843_v37  ;;  %v3433_v37 = vld [vmem:[#allocation13 + $0x78] sm:$0xff] }
 0xa72   :  { %3438 = vmatpush.msra.mxu0 %v3433_v37 }
 0xa73   :  { %v5855_v43 = vadd.f32 %v3257_v44, %v3256_v41  ;;  %v3244_v46 = vadd.f32 %v3819_v9, %v3243_v13 }
 0xa74   :  { %3439 = vmatpush.msra.mxu0 %v3432_v7 }
 0xa75   :  { %3822 = vtanh.f32 %v5855_v43  ;;  %v3248_v2 = vsel %vm3247_vm2, %v3819_v9, %v3244_v46 }
 0xa76   :  { %v3253_v42 = vsel %vm3250_vm3, %v3252_v61, %v3248_v2  ;;  %3440 = vmatpush.msra.mxu0 %v3431_v17 }
 0xa78   :  { %3441 = vmatpush.msra.mxu0 %v3430_v40 }
 0xa7a   :  { %3442 = vmatpush.msra.mxu0 %v3429_v11 }
 0xa7b   :  { %v3823_v62 = vpop.eup %3822 }
 0xa7c   :  { %v3260_v29 = vmul.f32 %v3823_v62, %v3253_v42  ;;  %3443 = vmatpush.msra.mxu0 %v3428_v32 }
 0xa7e   :  { %3282 = vmatmul.f32.vlgmr.msrb.gmra.mxu0 %v3260_v29  ;;  %3302 = vmatmul.f32.vlgmr.msrb.gmra.mxu1 %v3260_v29 }
 0xa7f   :  { %3322 = vmatmul.f32.vlgmr.msrb.gmra.mxu2 %v3260_v29  ;;  %3342 = vmatmul.f32.vlgmr.msrb.gmra.mxu3 %v3260_v29 }
 0xa80   :  { %3444 = vmatpush.msra.mxu0 %v3427_v27 }
 0xa82   :  { %3445 = vmatpush.msra.mxu0 %v3426_v22 }
 0xa84   :  { %3446 = vmatpush.msra.mxu0 %v3425_v1 }
 0xa86   :  { %3447 = vmatpush.msra.mxu0 %v3424_v53 }
 0xa88   :  { %3448 = vmatpush.msra.mxu0 %v3423_v5 }
 0xa8a   :  { %3449 = vmatpush.msra.mxu0 %v3422_v12 }
 0xa8c   :  { %3450 = vmatpush.msra.mxu0 %v3421_v55 }
 0xa8e   :  { %3451 = vmatpush.msra.mxu0 %v3420_v6 }
 0xa90   :  { %3452 = vmatpush.msra.mxu0 %v3419_v25 }
 0xa92   :  { %3453 = vmatpush.msra.mxu0 %v3418_v45 }
 0xafb   :  { %v3283_v52 = vpop.f32.mrf.mxu0  ;;  %v3303_v58 = vpop.f32.mrf.mxu1 }
 0xafc   :  { %v3346_v3 = vadd.f32 %v3283_v52, %v2037_v47  ;;  %v3347_v56 = vadd.f32 %v3303_v58, %v2078_v21 }
 0xafe   :  { %v3567_v35 = vmul.f32 -1.442695, %v3346_v3  ;;  %v3568_v36 = vmul.f32 -1.442695, %v3347_v56 }
 0xb00   :  { %3824 = vpow2.f32 %v3567_v35 }
 0xb01   :  { %3826 = vpow2.f32 %v3568_v36 }
 0xb02   :  { %v3323_v10 = vpop.f32.mrf.mxu2  ;;  %v3343_v16 = vpop.f32.mrf.mxu3 }
 0xb03   :  { %v3348_v59 = vadd.f32 %v3323_v10, %v2119_v14  ;;  %v3349_v19 = vadd.f32 %v3343_v16, %v2160_v24 }
 0xb05   :  { %v3569_v39 = vmul.f32 -1.442695, %v3348_v59 }
 0xb06   :  { %v3825_v48 = vpop.eup %3824 }
 0xb07   :  { %v3827_v20 = vpop.eup %3826  ;;  %v3359_v0 = vadd.f32 1.0, %v3825_v48  ;;  %3828 = vpow2.f32 %v3569_v39 }
 0xb08   :  { %v3360_v15 = vadd.f32 1.0, %v3827_v20 }
 0xb09   :  { %3830 = vrcp.f32 %v3359_v0  ;;  %v3373_v34 = vand.u32 2147483648, %v3359_v0  ;;  %v3371_v57 = vand.u32 2147483647, %v3359_v0  ;;  %vm3367_vm6 = vweird.f32 %v3359_v0 }
 0xb0a   :  { %3832 = vrcp.f32 %v3360_v15  ;;  %v3388_v28 = vand.u32 2147483648, %v3360_v15  ;;  %v3386_v13 = vand.u32 2147483647, %v3360_v15  ;;  %vm3382_vm7 = vweird.f32 %v3360_v15 }
 0xb0b   :  { %v3374_v50 = vor.u32 1.1754944e-38, %v3373_v34  ;;  %vm3372_vm10 = vcmp.eq.f32.partialorder %v3371_v57, 8.507059e+37 }
 0xb0c   :  { %v3389_v2 = vor.u32 1.1754944e-38, %v3388_v28  ;;  %vm3387_vm11 = vcmp.eq.f32.partialorder %v3386_v13, 8.507059e+37 }
 0xb0d   :  { %v3829_v33 = vpop.eup %3828 }
 0xb0e   :  { %v3361_v9 = vadd.f32 1.0, %v3829_v33 }
 0xb0f   :  { %v3831_v30 = vpop.eup %3830 }
 0xb10   :  { %v3833_v26 = vpop.eup %3832  ;;  %v3363_v38 = vmul.f32 %v3831_v30, %v3359_v0  ;;  %3834 = vrcp.f32 %v3361_v9  ;;  %vm3368_vm4 = vweird.f32 %v3831_v30  ;;  %v3403_v22 = vand.u32 2147483648, %v3361_v9 }
 0xb11   :  { %v3378_v49 = vmul.f32 %v3833_v26, %v3360_v15  ;;  %3836 = vtanh.f32 %v3349_v19  ;;  %vm3383_vm5 = vweird.f32 %v3833_v26  ;;  %vm3369_vm8 = vmor %vm3367_vm6, %vm3368_vm4  ;;  %vm3397_vm13 = vweird.f32 %v3361_v9 }
 0xb12   :  { %v3364_v18 = vsub.f32 1.0, %v3363_v38  ;;  %vm3384_vm9 = vmor %vm3382_vm7, %vm3383_vm5  ;;  %v3401_v1 = vand.u32 2147483647, %v3361_v9  ;;  %v3404_v47 = vor.u32 1.1754944e-38, %v3403_v22 }
 0xb13   :  { %v3379_v31 = vsub.f32 1.0, %v3378_v49 }
 0xb14   :  { %v3365_v4 = vmul.f32 %v3831_v30, %v3364_v18  ;;  %vm3402_vm15 = vcmp.eq.f32.partialorder %v3401_v1, 8.507059e+37 }
 0xb15   :  { %v3380_v44 = vmul.f32 %v3833_v26, %v3379_v31 }
 0xb16   :  { %v3835_v41 = vpop.eup %3834  ;;  %v3366_v54 = vadd.f32 %v3831_v30, %v3365_v4 }
 0xb17   :  { %v3393_v46 = vmul.f32 %v3835_v41, %v3361_v9  ;;  %v3381_v51 = vadd.f32 %v3833_v26, %v3380_v44  ;;  %v3837_v62 = vpop.eup %3836  ;;  %vm3398_vm12 = vweird.f32 %v3835_v41 }
 0xb18   :  { %v3370_v61 = vsel %vm3369_vm8, %v3831_v30, %v3366_v54  ;;  %vm3399_vm14 = vmor %vm3397_vm13, %vm3398_vm12 }
 0xb19   :  { %v3394_v42 = vsub.f32 1.0, %v3393_v46  ;;  %v3375_v29 = vsel %vm3372_vm10, %v3374_v50, %v3370_v61  ;;  %v3385_v37 = vsel %vm3384_vm9, %v3833_v26, %v3381_v51 }
 0xb1a   :  { %v3390_v7 = vsel %vm3387_vm11, %v3389_v2, %v3385_v37  ;;  %v3409_v17 = vmul.f32 %v3837_v62, %v3375_v29 }
 0xb1b   :  { %v3395_v40 = vmul.f32 %v3835_v41, %v3394_v42  ;;  %v3408_v11 = vmul.f32 %v3390_v7, %v5855_v43  ;;  %v3583_v43 = vld [vmem:[%s5892_s7] ss:$0 sm:$0xff] }
 0xb1d   :  { %v3410_v32 = vadd.f32 %v3409_v17, %v3408_v11  ;;  %v3396_v27 = vadd.f32 %v3835_v41, %v3395_v40 }
 0xb1f   :  { %3838 = vtanh.f32 %v3410_v32  ;;  %3417 = vst [vmem:[#allocation18 + $0x8] sm:$0xff] %v3410_v32  ;;  %v3400_v23 = vsel %vm3399_vm14, %v3835_v41, %v3396_v27 }
 0xb20   :  { %v3405_v21 = vsel %vm3402_vm15, %v3404_v47, %v3400_v23 }
 0xb25   :  { %v3839_v63 = vpop.eup %3838 }
 0xb26   :  { %v3412_v52 = vmul.f32 %v3839_v63, %v3405_v21 }
 0xb28   :  { %3454 = vmatmul.f32.vlgmr.msra.gmra.mxu0 %v3412_v52  ;;  %3415 = vst [vmem:[#allocation16 + $0x8] sm:$0xff] %v3412_v52 }
 0xb29   :  { %3482 = dma.vmem_to_hbm [thread:$0]  %s3475_s26, 256, %s3477_s29, [#allocation17], %s4069_s21, %s4069_s21, %s4070_s22  }
 0xb2a   :  { %3495 = dma.vmem_to_hbm [thread:$0]  %s3488_s30, 256, %s3490_s13, [#allocation17], %s4069_s21, %s4069_s21, %s4070_s22  }
 0xba5   :  { %v3455_v58 = vpop.f32.mrf.mxu0 }
 0xba6   :  { %v3456_v53 = vadd.f32 %v3583_v43, %v3455_v58 }
 0xba8   :  { %3458 = vst [vmem:[#allocation15] sm:$0xff] %v3456_v53 }
 0xba9   :  { %3469 = dma.vmem_to_hbm [thread:$0]  %s3465_s16, 128, %s3467_s18, [#allocation6]  }
 0xbaa   :  { %4064 = dma.done.wait [#allocation6], 128  }
 0xbab   :  { %4065 = vsyncadd [#allocation6], 4294967168 }
 0xbac   :  { %4066 = dma.done.wait [#allocation17], 512  }
 0xbad   :  { %4067 = vsyncadd [#allocation17], 4294966784 }
 0xbae   :  { %3508 = vsyncpa [#allocation5], 1 }
 0xbaf   :  { %3509 = vsyncpa [#allocation8], 1 }
 0xbb0   :  { %3510 = vsyncpa [#allocation11], 1 }
 0xbb1   :  { %3511 = vsyncpa [#allocation14], 1 }
 0xbb2   :  { %3512 = vsyncpa [#allocation6], 1 }
 0xbb3   :  { %3513 = vsyncpa [#allocation17], 1 }

</bundles_post_ra>
